<compile_context>
chip_gen: v5e
topology: v5e:2x2
jax: 0.10.0
libtpu: 0.0.40
codegen_flags: <defaults>
</compile_context>

<pallas_src>
import functools

import numpy as np
import jax
import jax.numpy as jnp
from jax.experimental import pallas as pl
from jax.experimental.pallas import tpu as pltpu

K = 7                          # ConvTranspose2d kernel size
PAD_T = 1                      # ConvTranspose2d padding
CONV_PAD = K - 1 - PAD_T       # equivalent direct-conv padding (= 5)
GROW = K - 1 - 2 * PAD_T       # spatial growth per layer (= 4)
ALPHAS = (-1.3153, -6.5811, -4.1687, 0.0658)
OUT_SIZE = 29                  # F.interpolate(size=29)


# ----------------------------------------------------------------------------
# Fused kernel: 4 x (conv-as-tap-matmuls + leaky gate) + bilinear resize.
# One grid step processes B lane-batched images; everything stays in VMEM.
# ----------------------------------------------------------------------------
def _fused_kernel(x_ref, m1, t1, m2, t2, m3, t3, m4, t4, rhc_ref, rwt_ref, o_ref):
    a = x_ref[0].astype(jnp.float32)                     # (Cin*Hin, B*Win)
    for m_ref, t_ref, alpha in zip((m1, m2, m3, m4), (t1, t2, t3, t4), ALPHAS):
        # Z = sum_kw (M_kw @ a) @ kron(I_B, T_kw) : pure MXU, no lane shuffles.
        p = jnp.dot(m_ref[0], a, preferred_element_type=jnp.float32)
        z = jnp.dot(p, t_ref[0], preferred_element_type=jnp.float32)
        for kw in range(1, K):
            p = jnp.dot(m_ref[kw], a, preferred_element_type=jnp.float32)
            z = z + jnp.dot(p, t_ref[kw], preferred_element_type=jnp.float32)
        a = jnp.where(z > 0, z, z * alpha)               # leaky gate (f32 VPU)
    # bilinear resize: block-diagonal row-sampling matrix on the left,
    # per-image block-diagonal column-sampling matrix on the right.
    t = jnp.dot(rhc_ref[...], a, preferred_element_type=jnp.float32)    # (C*29, B*W4)
    out = jnp.dot(t, rwt_ref[...], preferred_element_type=jnp.float32)  # (C*29, B*29)
    o_ref[0] = out.astype(o_ref.dtype)


# ----------------------------------------------------------------------------
# Host-side (numpy) weight preprocessing - done ONCE, outside the jitted fwd.
# ----------------------------------------------------------------------------
def _resize_matrix_np(in_size, out_size):
    # PyTorch bilinear, align_corners=False (half-pixel) sampling matrix.
    dst = np.arange(out_size, dtype=np.float64)
    src = (dst + 0.5) * (in_size / out_size) - 0.5
    src = np.maximum(src, 0.0)
    i0 = np.minimum(np.floor(src).astype(np.int64), in_size - 1)
    i1 = np.minimum(i0 + 1, in_size - 1)
    frac = src - i0
    m = np.zeros((out_size, in_size), dtype=np.float32)
    m[np.arange(out_size), i0] += (1.0 - frac).astype(np.float32)
    m[np.arange(out_size), i1] += frac.astype(np.float32)
    return m


def _tap_band_mats_np(w_d, h_in):
    """Per-width-tap band matrices M_kw, shape (K, Cout*Hout, Cin*Hin).

    (M_kw @ a)[co*Hout+i, w] = sum_{ci,kh} w_d[co,ci,kh,kw] * x[ci, i+kh-PAD, w]
    (out-of-range height taps are zero rows of the band -> no H padding needed).
    """
    c_out, c_in = w_d.shape[0], w_d.shape[1]
    h_out = h_in + GROW
    bands = np.stack([np.eye(h_out, h_in, k=kh - CONV_PAD, dtype=np.float32)
                      for kh in range(K)])                    # (K, Ho, Hin)
    m = np.einsum("ockw,khp->wohcp", w_d, bands)              # (K, Cout, Ho, Cin, Hin)
    return np.ascontiguousarray(m.reshape(K, c_out * h_out, c_in * h_in),
                                dtype=np.float32)


def _tap_shift_mats_np(w_in, lane_batch):
    """Per-width-tap shift matrices kron(I_B, T_kw), shape (K, B*Win, B*Wout)."""
    w_out = w_in + GROW
    eye_b = np.eye(lane_batch, dtype=np.float32)
    ts = [np.kron(eye_b, np.eye(w_in, w_out, k=CONV_PAD - kw, dtype=np.float32))
          for kw in range(K)]
    return np.ascontiguousarray(np.stack(ts), dtype=np.float32)


def build_params(w_t, lane_batch, C, H, W):
    """Build all constant matrices once (numpy, host)."""
    w_t = np.asarray(w_t, dtype=np.float32)
    # ConvTranspose2d(stride=1) == direct conv with flipped kernel & swapped io.
    w_d = np.ascontiguousarray(np.transpose(w_t[:, :, ::-1, ::-1], (1, 0, 2, 3)))
    params = []
    h, w = H, W
    for _ in ALPHAS:
        params.append(_tap_band_mats_np(w_d, h))              # M_kw stack
        params.append(_tap_shift_mats_np(w, lane_batch))      # kron(I_B, T_kw) stack
        h += GROW
        w += GROW
    rh = _resize_matrix_np(h, OUT_SIZE)                        # (29, H4)
    rhc = np.kron(np.eye(C, dtype=np.float32), rh)             # (C*29, C*H4)
    rwtb = np.kron(np.eye(lane_batch, dtype=np.float32),
                   _resize_matrix_np(w, OUT_SIZE).T)           # (B*W4, B*29)
    params += [rhc, rwtb]
    return tuple(jnp.asarray(p) for p in params)


def _pick_lane_batch(n_batch, w_final):
    """Largest B | N with >=2 grid steps (v7x megacore) and <= ~256 lanes."""
    best = 1
    for b in range(1, n_batch + 1):
        if n_batch % b:
            continue
        if n_batch >= 2 and n_batch // b < 2:
            continue
        if b * w_final > 256:
            continue
        best = b
    return best


# ----------------------------------------------------------------------------
# Jitted forward: layout reshapes + one fused pallas_call.
# ----------------------------------------------------------------------------
def fused_forward(x_nchw, params, lane_batch):
    N, C, H, W = x_nchw.shape
    B = lane_batch
    G = N // B
    # channel-major row slab, B images side-by-side on the lane axis
    x2d = (x_nchw.reshape(G, B, C, H, W)
           .transpose(0, 2, 3, 1, 4)
           .reshape(G, C * H, B * W))

    def full(arr):
        return pl.BlockSpec(arr.shape, lambda n: (0,) * arr.ndim)

    out2d = pl.pallas_call(
        _fused_kernel,
        out_shape=jax.ShapeDtypeStruct((G, C * OUT_SIZE, B * OUT_SIZE), x_nchw.dtype),
        grid=(G,),
        in_specs=[pl.BlockSpec((1, C * H, B * W), lambda n: (n, 0, 0))]
                 + [full(p) for p in params],
        out_specs=pl.BlockSpec((1, C * OUT_SIZE, B * OUT_SIZE), lambda n: (n, 0, 0)),
        compiler_params=pltpu.CompilerParams(dimension_semantics=("parallel",)),
    )(x2d, *params)

    out = (out2d.reshape(G, C, OUT_SIZE, B, OUT_SIZE)
           .transpose(0, 3, 1, 2, 4)
           .reshape(N, C, OUT_SIZE, OUT_SIZE))
    return out


# ----------------------------------------------------------------------------
# Pure-JAX reference (no Pallas) for a numerical sanity check.
# ----------------------------------------------------------------------------
def _reference(x_nchw, w_t):
    w_conv = jnp.transpose(w_t[:, :, ::-1, ::-1], (2, 3, 0, 1))     # HWIO
    h = jnp.transpose(x_nchw, (0, 2, 3, 1))
    for alpha in ALPHAS:
        h = jax.lax.conv_general_dilated(
            h, w_conv, (1, 1), [(CONV_PAD, CONV_PAD)] * 2,
            dimension_numbers=("NHWC", "HWIO", "NHWC"))
        h = jnp.where(h > 0, h, h * alpha)
    rh = jnp.asarray(_resize_matrix_np(h.shape[1], OUT_SIZE))
    rw = jnp.asarray(_resize_matrix_np(h.shape[2], OUT_SIZE))
    return jnp.einsum("ip,npqc,jq->ncij", rh, h, rw)


if __name__ == "__main__":
    key = jax.random.PRNGKey(0)
    kx, kwt = jax.random.split(key)
    # TODO(synk): the original module builds ConvTranspose2d(3, 16, ...) but re-applies
    # it to its own 16-channel output (PyTorch would reject that); we use Cin == Cout so
    # the 4x repeated transposed conv is well-defined.
    N, C, H, W = 4, 4, 16, 12
    W_FINAL = W + len(ALPHAS) * GROW
    B = _pick_lane_batch(N, W_FINAL)                 # -> 2 (lane-batch, 2 grid steps)

    x = jax.random.normal(kx, (N, C, H, W), dtype=jnp.float32)
    w_t = 0.05 * jax.random.normal(kwt, (C, C, K, K), dtype=jnp.float32)

    # Weight preprocessing hoisted out of the forward: build constant matrices once.
    params = build_params(np.asarray(w_t), B, C, H, W)
    fwd = jax.jit(functools.partial(fused_forward, lane_batch=B))

    out = jax.block_until_ready(fwd(x, params))
    ref = jax.block_until_ready(_reference(x, w_t))

    assert out.shape == (N, C, OUT_SIZE, OUT_SIZE), out.shape
    err = float(jnp.max(jnp.abs(out - ref)))
    assert jnp.allclose(out, ref, rtol=1e-3, atol=2e-3), err
    print("KERNEL_OK")
</pallas_src>

<mosaic_0001>
module attributes {stable_mosaic.version = 11 : i64} {
  func.func @_fused_kernel(%arg0: i32, %arg1: memref<1x64x24xf32, #tpu.memory_space<vmem>>, %arg2: memref<7x80x64xf32, #tpu.memory_space<vmem>>, %arg3: memref<7x24x32xf32, #tpu.memory_space<vmem>>, %arg4: memref<7x96x80xf32, #tpu.memory_space<vmem>>, %arg5: memref<7x32x40xf32, #tpu.memory_space<vmem>>, %arg6: memref<7x112x96xf32, #tpu.memory_space<vmem>>, %arg7: memref<7x40x48xf32, #tpu.memory_space<vmem>>, %arg8: memref<7x128x112xf32, #tpu.memory_space<vmem>>, %arg9: memref<7x48x56xf32, #tpu.memory_space<vmem>>, %arg10: memref<116x128xf32, #tpu.memory_space<vmem>>, %arg11: memref<56x58xf32, #tpu.memory_space<vmem>>, %arg12: memref<1x116x58xf32, #tpu.memory_space<vmem>>) attributes {dimension_semantics = [#tpu.dimension_semantics<parallel>], iteration_bounds = array<i64: 2>, scalar_prefetch = 0 : i64, scratch_operands = 0 : i64, tpu.core_type = #tpu.core_type<tc>, window_params = [{transform_indices = @transform_0, window_bounds = array<i64: 1, 64, 24>}, {pipeline_mode = #tpu.pipeline_mode<synchronous>, transform_indices = @transform_1, window_bounds = array<i64: 7, 80, 64>}, {pipeline_mode = #tpu.pipeline_mode<synchronous>, transform_indices = @transform_2, window_bounds = array<i64: 7, 24, 32>}, {pipeline_mode = #tpu.pipeline_mode<synchronous>, transform_indices = @transform_3, window_bounds = array<i64: 7, 96, 80>}, {pipeline_mode = #tpu.pipeline_mode<synchronous>, transform_indices = @transform_4, window_bounds = array<i64: 7, 32, 40>}, {pipeline_mode = #tpu.pipeline_mode<synchronous>, transform_indices = @transform_5, window_bounds = array<i64: 7, 112, 96>}, {pipeline_mode = #tpu.pipeline_mode<synchronous>, transform_indices = @transform_6, window_bounds = array<i64: 7, 40, 48>}, {pipeline_mode = #tpu.pipeline_mode<synchronous>, transform_indices = @transform_7, window_bounds = array<i64: 7, 128, 112>}, {pipeline_mode = #tpu.pipeline_mode<synchronous>, transform_indices = @transform_8, window_bounds = array<i64: 7, 48, 56>}, {pipeline_mode = #tpu.pipeline_mode<synchronous>, transform_indices = @transform_9, window_bounds = array<i64: 116, 128>}, {pipeline_mode = #tpu.pipeline_mode<synchronous>, transform_indices = @transform_10, window_bounds = array<i64: 56, 58>}, {transform_indices = @transform_11, window_bounds = array<i64: 1, 116, 58>}]} {
    %c0 = arith.constant 0 : index
    %c0_0 = arith.constant 0 : index
    %c0_1 = arith.constant 0 : index
    %0 = vector.load %arg1[%c0, %c0_0, %c0_1] : memref<1x64x24xf32, #tpu.memory_space<vmem>>, vector<1x64x24xf32>
    %1 = vector.shape_cast %0 : vector<1x64x24xf32> to vector<64x24xf32>
    %c0_2 = arith.constant 0 : index
    %c0_3 = arith.constant 0 : index
    %c0_4 = arith.constant 0 : index
    %2 = vector.load %arg2[%c0_2, %c0_3, %c0_4] : memref<7x80x64xf32, #tpu.memory_space<vmem>>, vector<1x80x64xf32>
    %3 = vector.shape_cast %2 : vector<1x80x64xf32> to vector<80x64xf32>
    %cst = arith.constant dense<0.000000e+00> : vector<80x24xf32>
    %4 = tpu.matmul %3, %1, %cst {dimension_numbers = #tpu.dot_dimension_numbers<[1], [0], [0], [1], [0, 0, 1, 1], [], []>} : vector<80x64xf32>, vector<64x24xf32>, vector<80x24xf32> -> vector<80x24xf32>
    %c0_5 = arith.constant 0 : index
    %c0_6 = arith.constant 0 : index
    %c0_7 = arith.constant 0 : index
    %5 = vector.load %arg3[%c0_5, %c0_6, %c0_7] : memref<7x24x32xf32, #tpu.memory_space<vmem>>, vector<1x24x32xf32>
    %6 = vector.shape_cast %5 : vector<1x24x32xf32> to vector<24x32xf32>
    %cst_8 = arith.constant dense<0.000000e+00> : vector<80x32xf32>
    %7 = tpu.matmul %4, %6, %cst_8 {dimension_numbers = #tpu.dot_dimension_numbers<[1], [0], [0], [1], [0, 0, 1, 1], [], []>} : vector<80x24xf32>, vector<24x32xf32>, vector<80x32xf32> -> vector<80x32xf32>
    %c1 = arith.constant 1 : index
    %c0_9 = arith.constant 0 : index
    %c0_10 = arith.constant 0 : index
    %8 = vector.load %arg2[%c1, %c0_9, %c0_10] : memref<7x80x64xf32, #tpu.memory_space<vmem>>, vector<1x80x64xf32>
    %9 = vector.shape_cast %8 : vector<1x80x64xf32> to vector<80x64xf32>
    %cst_11 = arith.constant dense<0.000000e+00> : vector<80x24xf32>
    %10 = tpu.matmul %9, %1, %cst_11 {dimension_numbers = #tpu.dot_dimension_numbers<[1], [0], [0], [1], [0, 0, 1, 1], [], []>} : vector<80x64xf32>, vector<64x24xf32>, vector<80x24xf32> -> vector<80x24xf32>
    %c1_12 = arith.constant 1 : index
    %c0_13 = arith.constant 0 : index
    %c0_14 = arith.constant 0 : index
    %11 = vector.load %arg3[%c1_12, %c0_13, %c0_14] : memref<7x24x32xf32, #tpu.memory_space<vmem>>, vector<1x24x32xf32>
    %12 = vector.shape_cast %11 : vector<1x24x32xf32> to vector<24x32xf32>
    %cst_15 = arith.constant dense<0.000000e+00> : vector<80x32xf32>
    %13 = tpu.matmul %10, %12, %cst_15 {dimension_numbers = #tpu.dot_dimension_numbers<[1], [0], [0], [1], [0, 0, 1, 1], [], []>} : vector<80x24xf32>, vector<24x32xf32>, vector<80x32xf32> -> vector<80x32xf32>
    %14 = arith.addf %7, %13 : vector<80x32xf32>
    %c2 = arith.constant 2 : index
    %c0_16 = arith.constant 0 : index
    %c0_17 = arith.constant 0 : index
    %15 = vector.load %arg2[%c2, %c0_16, %c0_17] : memref<7x80x64xf32, #tpu.memory_space<vmem>>, vector<1x80x64xf32>
    %16 = vector.shape_cast %15 : vector<1x80x64xf32> to vector<80x64xf32>
    %cst_18 = arith.constant dense<0.000000e+00> : vector<80x24xf32>
    %17 = tpu.matmul %16, %1, %cst_18 {dimension_numbers = #tpu.dot_dimension_numbers<[1], [0], [0], [1], [0, 0, 1, 1], [], []>} : vector<80x64xf32>, vector<64x24xf32>, vector<80x24xf32> -> vector<80x24xf32>
    %c2_19 = arith.constant 2 : index
    %c0_20 = arith.constant 0 : index
    %c0_21 = arith.constant 0 : index
    %18 = vector.load %arg3[%c2_19, %c0_20, %c0_21] : memref<7x24x32xf32, #tpu.memory_space<vmem>>, vector<1x24x32xf32>
    %19 = vector.shape_cast %18 : vector<1x24x32xf32> to vector<24x32xf32>
    %cst_22 = arith.constant dense<0.000000e+00> : vector<80x32xf32>
    %20 = tpu.matmul %17, %19, %cst_22 {dimension_numbers = #tpu.dot_dimension_numbers<[1], [0], [0], [1], [0, 0, 1, 1], [], []>} : vector<80x24xf32>, vector<24x32xf32>, vector<80x32xf32> -> vector<80x32xf32>
    %21 = arith.addf %14, %20 : vector<80x32xf32>
    %c3 = arith.constant 3 : index
    %c0_23 = arith.constant 0 : index
    %c0_24 = arith.constant 0 : index
    %22 = vector.load %arg2[%c3, %c0_23, %c0_24] : memref<7x80x64xf32, #tpu.memory_space<vmem>>, vector<1x80x64xf32>
    %23 = vector.shape_cast %22 : vector<1x80x64xf32> to vector<80x64xf32>
    %cst_25 = arith.constant dense<0.000000e+00> : vector<80x24xf32>
    %24 = tpu.matmul %23, %1, %cst_25 {dimension_numbers = #tpu.dot_dimension_numbers<[1], [0], [0], [1], [0, 0, 1, 1], [], []>} : vector<80x64xf32>, vector<64x24xf32>, vector<80x24xf32> -> vector<80x24xf32>
    %c3_26 = arith.constant 3 : index
    %c0_27 = arith.constant 0 : index
    %c0_28 = arith.constant 0 : index
    %25 = vector.load %arg3[%c3_26, %c0_27, %c0_28] : memref<7x24x32xf32, #tpu.memory_space<vmem>>, vector<1x24x32xf32>
    %26 = vector.shape_cast %25 : vector<1x24x32xf32> to vector<24x32xf32>
    %cst_29 = arith.constant dense<0.000000e+00> : vector<80x32xf32>
    %27 = tpu.matmul %24, %26, %cst_29 {dimension_numbers = #tpu.dot_dimension_numbers<[1], [0], [0], [1], [0, 0, 1, 1], [], []>} : vector<80x24xf32>, vector<24x32xf32>, vector<80x32xf32> -> vector<80x32xf32>
    %28 = arith.addf %21, %27 : vector<80x32xf32>
    %c4 = arith.constant 4 : index
    %c0_30 = arith.constant 0 : index
    %c0_31 = arith.constant 0 : index
    %29 = vector.load %arg2[%c4, %c0_30, %c0_31] : memref<7x80x64xf32, #tpu.memory_space<vmem>>, vector<1x80x64xf32>
    %30 = vector.shape_cast %29 : vector<1x80x64xf32> to vector<80x64xf32>
    %cst_32 = arith.constant dense<0.000000e+00> : vector<80x24xf32>
    %31 = tpu.matmul %30, %1, %cst_32 {dimension_numbers = #tpu.dot_dimension_numbers<[1], [0], [0], [1], [0, 0, 1, 1], [], []>} : vector<80x64xf32>, vector<64x24xf32>, vector<80x24xf32> -> vector<80x24xf32>
    %c4_33 = arith.constant 4 : index
    %c0_34 = arith.constant 0 : index
    %c0_35 = arith.constant 0 : index
    %32 = vector.load %arg3[%c4_33, %c0_34, %c0_35] : memref<7x24x32xf32, #tpu.memory_space<vmem>>, vector<1x24x32xf32>
    %33 = vector.shape_cast %32 : vector<1x24x32xf32> to vector<24x32xf32>
    %cst_36 = arith.constant dense<0.000000e+00> : vector<80x32xf32>
    %34 = tpu.matmul %31, %33, %cst_36 {dimension_numbers = #tpu.dot_dimension_numbers<[1], [0], [0], [1], [0, 0, 1, 1], [], []>} : vector<80x24xf32>, vector<24x32xf32>, vector<80x32xf32> -> vector<80x32xf32>
    %35 = arith.addf %28, %34 : vector<80x32xf32>
    %c5 = arith.constant 5 : index
    %c0_37 = arith.constant 0 : index
    %c0_38 = arith.constant 0 : index
    %36 = vector.load %arg2[%c5, %c0_37, %c0_38] : memref<7x80x64xf32, #tpu.memory_space<vmem>>, vector<1x80x64xf32>
    %37 = vector.shape_cast %36 : vector<1x80x64xf32> to vector<80x64xf32>
    %cst_39 = arith.constant dense<0.000000e+00> : vector<80x24xf32>
    %38 = tpu.matmul %37, %1, %cst_39 {dimension_numbers = #tpu.dot_dimension_numbers<[1], [0], [0], [1], [0, 0, 1, 1], [], []>} : vector<80x64xf32>, vector<64x24xf32>, vector<80x24xf32> -> vector<80x24xf32>
    %c5_40 = arith.constant 5 : index
    %c0_41 = arith.constant 0 : index
    %c0_42 = arith.constant 0 : index
    %39 = vector.load %arg3[%c5_40, %c0_41, %c0_42] : memref<7x24x32xf32, #tpu.memory_space<vmem>>, vector<1x24x32xf32>
    %40 = vector.shape_cast %39 : vector<1x24x32xf32> to vector<24x32xf32>
    %cst_43 = arith.constant dense<0.000000e+00> : vector<80x32xf32>
    %41 = tpu.matmul %38, %40, %cst_43 {dimension_numbers = #tpu.dot_dimension_numbers<[1], [0], [0], [1], [0, 0, 1, 1], [], []>} : vector<80x24xf32>, vector<24x32xf32>, vector<80x32xf32> -> vector<80x32xf32>
    %42 = arith.addf %35, %41 : vector<80x32xf32>
    %c6 = arith.constant 6 : index
    %c0_44 = arith.constant 0 : index
    %c0_45 = arith.constant 0 : index
    %43 = vector.load %arg2[%c6, %c0_44, %c0_45] : memref<7x80x64xf32, #tpu.memory_space<vmem>>, vector<1x80x64xf32>
    %44 = vector.shape_cast %43 : vector<1x80x64xf32> to vector<80x64xf32>
    %cst_46 = arith.constant dense<0.000000e+00> : vector<80x24xf32>
    %45 = tpu.matmul %44, %1, %cst_46 {dimension_numbers = #tpu.dot_dimension_numbers<[1], [0], [0], [1], [0, 0, 1, 1], [], []>} : vector<80x64xf32>, vector<64x24xf32>, vector<80x24xf32> -> vector<80x24xf32>
    %c6_47 = arith.constant 6 : index
    %c0_48 = arith.constant 0 : index
    %c0_49 = arith.constant 0 : index
    %46 = vector.load %arg3[%c6_47, %c0_48, %c0_49] : memref<7x24x32xf32, #tpu.memory_space<vmem>>, vector<1x24x32xf32>
    %47 = vector.shape_cast %46 : vector<1x24x32xf32> to vector<24x32xf32>
    %cst_50 = arith.constant dense<0.000000e+00> : vector<80x32xf32>
    %48 = tpu.matmul %45, %47, %cst_50 {dimension_numbers = #tpu.dot_dimension_numbers<[1], [0], [0], [1], [0, 0, 1, 1], [], []>} : vector<80x24xf32>, vector<24x32xf32>, vector<80x32xf32> -> vector<80x32xf32>
    %49 = arith.addf %42, %48 : vector<80x32xf32>
    %cst_51 = arith.constant 0.000000e+00 : f32
    %50 = vector.broadcast %cst_51 : f32 to vector<80x32xf32>
    %51 = arith.cmpf ogt, %49, %50 : vector<80x32xf32>
    %cst_52 = arith.constant -1.315300e+00 : f32
    %52 = vector.broadcast %cst_52 : f32 to vector<80x32xf32>
    %53 = arith.mulf %49, %52 : vector<80x32xf32>
    %54 = arith.select %51, %49, %53 : vector<80x32xi1>, vector<80x32xf32>
    %c0_53 = arith.constant 0 : index
    %c0_54 = arith.constant 0 : index
    %c0_55 = arith.constant 0 : index
    %55 = vector.load %arg4[%c0_53, %c0_54, %c0_55] : memref<7x96x80xf32, #tpu.memory_space<vmem>>, vector<1x96x80xf32>
    %56 = vector.shape_cast %55 : vector<1x96x80xf32> to vector<96x80xf32>
    %cst_56 = arith.constant dense<0.000000e+00> : vector<96x32xf32>
    %57 = tpu.matmul %56, %54, %cst_56 {dimension_numbers = #tpu.dot_dimension_numbers<[1], [0], [0], [1], [0, 0, 1, 1], [], []>} : vector<96x80xf32>, vector<80x32xf32>, vector<96x32xf32> -> vector<96x32xf32>
    %c0_57 = arith.constant 0 : index
    %c0_58 = arith.constant 0 : index
    %c0_59 = arith.constant 0 : index
    %58 = vector.load %arg5[%c0_57, %c0_58, %c0_59] : memref<7x32x40xf32, #tpu.memory_space<vmem>>, vector<1x32x40xf32>
    %59 = vector.shape_cast %58 : vector<1x32x40xf32> to vector<32x40xf32>
    %cst_60 = arith.constant dense<0.000000e+00> : vector<96x40xf32>
    %60 = tpu.matmul %57, %59, %cst_60 {dimension_numbers = #tpu.dot_dimension_numbers<[1], [0], [0], [1], [0, 0, 1, 1], [], []>} : vector<96x32xf32>, vector<32x40xf32>, vector<96x40xf32> -> vector<96x40xf32>
    %c1_61 = arith.constant 1 : index
    %c0_62 = arith.constant 0 : index
    %c0_63 = arith.constant 0 : index
    %61 = vector.load %arg4[%c1_61, %c0_62, %c0_63] : memref<7x96x80xf32, #tpu.memory_space<vmem>>, vector<1x96x80xf32>
    %62 = vector.shape_cast %61 : vector<1x96x80xf32> to vector<96x80xf32>
    %cst_64 = arith.constant dense<0.000000e+00> : vector<96x32xf32>
    %63 = tpu.matmul %62, %54, %cst_64 {dimension_numbers = #tpu.dot_dimension_numbers<[1], [0], [0], [1], [0, 0, 1, 1], [], []>} : vector<96x80xf32>, vector<80x32xf32>, vector<96x32xf32> -> vector<96x32xf32>
    %c1_65 = arith.constant 1 : index
    %c0_66 = arith.constant 0 : index
    %c0_67 = arith.constant 0 : index
    %64 = vector.load %arg5[%c1_65, %c0_66, %c0_67] : memref<7x32x40xf32, #tpu.memory_space<vmem>>, vector<1x32x40xf32>
    %65 = vector.shape_cast %64 : vector<1x32x40xf32> to vector<32x40xf32>
    %cst_68 = arith.constant dense<0.000000e+00> : vector<96x40xf32>
    %66 = tpu.matmul %63, %65, %cst_68 {dimension_numbers = #tpu.dot_dimension_numbers<[1], [0], [0], [1], [0, 0, 1, 1], [], []>} : vector<96x32xf32>, vector<32x40xf32>, vector<96x40xf32> -> vector<96x40xf32>
    %67 = arith.addf %60, %66 : vector<96x40xf32>
    %c2_69 = arith.constant 2 : index
    %c0_70 = arith.constant 0 : index
    %c0_71 = arith.constant 0 : index
    %68 = vector.load %arg4[%c2_69, %c0_70, %c0_71] : memref<7x96x80xf32, #tpu.memory_space<vmem>>, vector<1x96x80xf32>
    %69 = vector.shape_cast %68 : vector<1x96x80xf32> to vector<96x80xf32>
    %cst_72 = arith.constant dense<0.000000e+00> : vector<96x32xf32>
    %70 = tpu.matmul %69, %54, %cst_72 {dimension_numbers = #tpu.dot_dimension_numbers<[1], [0], [0], [1], [0, 0, 1, 1], [], []>} : vector<96x80xf32>, vector<80x32xf32>, vector<96x32xf32> -> vector<96x32xf32>
    %c2_73 = arith.constant 2 : index
    %c0_74 = arith.constant 0 : index
    %c0_75 = arith.constant 0 : index
    %71 = vector.load %arg5[%c2_73, %c0_74, %c0_75] : memref<7x32x40xf32, #tpu.memory_space<vmem>>, vector<1x32x40xf32>
    %72 = vector.shape_cast %71 : vector<1x32x40xf32> to vector<32x40xf32>
    %cst_76 = arith.constant dense<0.000000e+00> : vector<96x40xf32>
    %73 = tpu.matmul %70, %72, %cst_76 {dimension_numbers = #tpu.dot_dimension_numbers<[1], [0], [0], [1], [0, 0, 1, 1], [], []>} : vector<96x32xf32>, vector<32x40xf32>, vector<96x40xf32> -> vector<96x40xf32>
    %74 = arith.addf %67, %73 : vector<96x40xf32>
    %c3_77 = arith.constant 3 : index
    %c0_78 = arith.constant 0 : index
    %c0_79 = arith.constant 0 : index
    %75 = vector.load %arg4[%c3_77, %c0_78, %c0_79] : memref<7x96x80xf32, #tpu.memory_space<vmem>>, vector<1x96x80xf32>
    %76 = vector.shape_cast %75 : vector<1x96x80xf32> to vector<96x80xf32>
    %cst_80 = arith.constant dense<0.000000e+00> : vector<96x32xf32>
    %77 = tpu.matmul %76, %54, %cst_80 {dimension_numbers = #tpu.dot_dimension_numbers<[1], [0], [0], [1], [0, 0, 1, 1], [], []>} : vector<96x80xf32>, vector<80x32xf32>, vector<96x32xf32> -> vector<96x32xf32>
    %c3_81 = arith.constant 3 : index
    %c0_82 = arith.constant 0 : index
    %c0_83 = arith.constant 0 : index
    %78 = vector.load %arg5[%c3_81, %c0_82, %c0_83] : memref<7x32x40xf32, #tpu.memory_space<vmem>>, vector<1x32x40xf32>
    %79 = vector.shape_cast %78 : vector<1x32x40xf32> to vector<32x40xf32>
    %cst_84 = arith.constant dense<0.000000e+00> : vector<96x40xf32>
    %80 = tpu.matmul %77, %79, %cst_84 {dimension_numbers = #tpu.dot_dimension_numbers<[1], [0], [0], [1], [0, 0, 1, 1], [], []>} : vector<96x32xf32>, vector<32x40xf32>, vector<96x40xf32> -> vector<96x40xf32>
    %81 = arith.addf %74, %80 : vector<96x40xf32>
    %c4_85 = arith.constant 4 : index
    %c0_86 = arith.constant 0 : index
    %c0_87 = arith.constant 0 : index
    %82 = vector.load %arg4[%c4_85, %c0_86, %c0_87] : memref<7x96x80xf32, #tpu.memory_space<vmem>>, vector<1x96x80xf32>
    %83 = vector.shape_cast %82 : vector<1x96x80xf32> to vector<96x80xf32>
    %cst_88 = arith.constant dense<0.000000e+00> : vector<96x32xf32>
    %84 = tpu.matmul %83, %54, %cst_88 {dimension_numbers = #tpu.dot_dimension_numbers<[1], [0], [0], [1], [0, 0, 1, 1], [], []>} : vector<96x80xf32>, vector<80x32xf32>, vector<96x32xf32> -> vector<96x32xf32>
    %c4_89 = arith.constant 4 : index
    %c0_90 = arith.constant 0 : index
    %c0_91 = arith.constant 0 : index
    %85 = vector.load %arg5[%c4_89, %c0_90, %c0_91] : memref<7x32x40xf32, #tpu.memory_space<vmem>>, vector<1x32x40xf32>
    %86 = vector.shape_cast %85 : vector<1x32x40xf32> to vector<32x40xf32>
    %cst_92 = arith.constant dense<0.000000e+00> : vector<96x40xf32>
    %87 = tpu.matmul %84, %86, %cst_92 {dimension_numbers = #tpu.dot_dimension_numbers<[1], [0], [0], [1], [0, 0, 1, 1], [], []>} : vector<96x32xf32>, vector<32x40xf32>, vector<96x40xf32> -> vector<96x40xf32>
    %88 = arith.addf %81, %87 : vector<96x40xf32>
    %c5_93 = arith.constant 5 : index
    %c0_94 = arith.constant 0 : index
    %c0_95 = arith.constant 0 : index
    %89 = vector.load %arg4[%c5_93, %c0_94, %c0_95] : memref<7x96x80xf32, #tpu.memory_space<vmem>>, vector<1x96x80xf32>
    %90 = vector.shape_cast %89 : vector<1x96x80xf32> to vector<96x80xf32>
    %cst_96 = arith.constant dense<0.000000e+00> : vector<96x32xf32>
    %91 = tpu.matmul %90, %54, %cst_96 {dimension_numbers = #tpu.dot_dimension_numbers<[1], [0], [0], [1], [0, 0, 1, 1], [], []>} : vector<96x80xf32>, vector<80x32xf32>, vector<96x32xf32> -> vector<96x32xf32>
    %c5_97 = arith.constant 5 : index
    %c0_98 = arith.constant 0 : index
    %c0_99 = arith.constant 0 : index
    %92 = vector.load %arg5[%c5_97, %c0_98, %c0_99] : memref<7x32x40xf32, #tpu.memory_space<vmem>>, vector<1x32x40xf32>
    %93 = vector.shape_cast %92 : vector<1x32x40xf32> to vector<32x40xf32>
    %cst_100 = arith.constant dense<0.000000e+00> : vector<96x40xf32>
    %94 = tpu.matmul %91, %93, %cst_100 {dimension_numbers = #tpu.dot_dimension_numbers<[1], [0], [0], [1], [0, 0, 1, 1], [], []>} : vector<96x32xf32>, vector<32x40xf32>, vector<96x40xf32> -> vector<96x40xf32>
    %95 = arith.addf %88, %94 : vector<96x40xf32>
    %c6_101 = arith.constant 6 : index
    %c0_102 = arith.constant 0 : index
    %c0_103 = arith.constant 0 : index
    %96 = vector.load %arg4[%c6_101, %c0_102, %c0_103] : memref<7x96x80xf32, #tpu.memory_space<vmem>>, vector<1x96x80xf32>
    %97 = vector.shape_cast %96 : vector<1x96x80xf32> to vector<96x80xf32>
    %cst_104 = arith.constant dense<0.000000e+00> : vector<96x32xf32>
    %98 = tpu.matmul %97, %54, %cst_104 {dimension_numbers = #tpu.dot_dimension_numbers<[1], [0], [0], [1], [0, 0, 1, 1], [], []>} : vector<96x80xf32>, vector<80x32xf32>, vector<96x32xf32> -> vector<96x32xf32>
    %c6_105 = arith.constant 6 : index
    %c0_106 = arith.constant 0 : index
    %c0_107 = arith.constant 0 : index
    %99 = vector.load %arg5[%c6_105, %c0_106, %c0_107] : memref<7x32x40xf32, #tpu.memory_space<vmem>>, vector<1x32x40xf32>
    %100 = vector.shape_cast %99 : vector<1x32x40xf32> to vector<32x40xf32>
    %cst_108 = arith.constant dense<0.000000e+00> : vector<96x40xf32>
    %101 = tpu.matmul %98, %100, %cst_108 {dimension_numbers = #tpu.dot_dimension_numbers<[1], [0], [0], [1], [0, 0, 1, 1], [], []>} : vector<96x32xf32>, vector<32x40xf32>, vector<96x40xf32> -> vector<96x40xf32>
    %102 = arith.addf %95, %101 : vector<96x40xf32>
    %cst_109 = arith.constant 0.000000e+00 : f32
    %103 = vector.broadcast %cst_109 : f32 to vector<96x40xf32>
    %104 = arith.cmpf ogt, %102, %103 : vector<96x40xf32>
    %cst_110 = arith.constant -6.581100e+00 : f32
    %105 = vector.broadcast %cst_110 : f32 to vector<96x40xf32>
    %106 = arith.mulf %102, %105 : vector<96x40xf32>
    %107 = arith.select %104, %102, %106 : vector<96x40xi1>, vector<96x40xf32>
    %c0_111 = arith.constant 0 : index
    %c0_112 = arith.constant 0 : index
    %c0_113 = arith.constant 0 : index
    %108 = vector.load %arg6[%c0_111, %c0_112, %c0_113] : memref<7x112x96xf32, #tpu.memory_space<vmem>>, vector<1x112x96xf32>
    %109 = vector.shape_cast %108 : vector<1x112x96xf32> to vector<112x96xf32>
    %cst_114 = arith.constant dense<0.000000e+00> : vector<112x40xf32>
    %110 = tpu.matmul %109, %107, %cst_114 {dimension_numbers = #tpu.dot_dimension_numbers<[1], [0], [0], [1], [0, 0, 1, 1], [], []>} : vector<112x96xf32>, vector<96x40xf32>, vector<112x40xf32> -> vector<112x40xf32>
    %c0_115 = arith.constant 0 : index
    %c0_116 = arith.constant 0 : index
    %c0_117 = arith.constant 0 : index
    %111 = vector.load %arg7[%c0_115, %c0_116, %c0_117] : memref<7x40x48xf32, #tpu.memory_space<vmem>>, vector<1x40x48xf32>
    %112 = vector.shape_cast %111 : vector<1x40x48xf32> to vector<40x48xf32>
    %cst_118 = arith.constant dense<0.000000e+00> : vector<112x48xf32>
    %113 = tpu.matmul %110, %112, %cst_118 {dimension_numbers = #tpu.dot_dimension_numbers<[1], [0], [0], [1], [0, 0, 1, 1], [], []>} : vector<112x40xf32>, vector<40x48xf32>, vector<112x48xf32> -> vector<112x48xf32>
    %c1_119 = arith.constant 1 : index
    %c0_120 = arith.constant 0 : index
    %c0_121 = arith.constant 0 : index
    %114 = vector.load %arg6[%c1_119, %c0_120, %c0_121] : memref<7x112x96xf32, #tpu.memory_space<vmem>>, vector<1x112x96xf32>
    %115 = vector.shape_cast %114 : vector<1x112x96xf32> to vector<112x96xf32>
    %cst_122 = arith.constant dense<0.000000e+00> : vector<112x40xf32>
    %116 = tpu.matmul %115, %107, %cst_122 {dimension_numbers = #tpu.dot_dimension_numbers<[1], [0], [0], [1], [0, 0, 1, 1], [], []>} : vector<112x96xf32>, vector<96x40xf32>, vector<112x40xf32> -> vector<112x40xf32>
    %c1_123 = arith.constant 1 : index
    %c0_124 = arith.constant 0 : index
    %c0_125 = arith.constant 0 : index
    %117 = vector.load %arg7[%c1_123, %c0_124, %c0_125] : memref<7x40x48xf32, #tpu.memory_space<vmem>>, vector<1x40x48xf32>
    %118 = vector.shape_cast %117 : vector<1x40x48xf32> to vector<40x48xf32>
    %cst_126 = arith.constant dense<0.000000e+00> : vector<112x48xf32>
    %119 = tpu.matmul %116, %118, %cst_126 {dimension_numbers = #tpu.dot_dimension_numbers<[1], [0], [0], [1], [0, 0, 1, 1], [], []>} : vector<112x40xf32>, vector<40x48xf32>, vector<112x48xf32> -> vector<112x48xf32>
    %120 = arith.addf %113, %119 : vector<112x48xf32>
    %c2_127 = arith.constant 2 : index
    %c0_128 = arith.constant 0 : index
    %c0_129 = arith.constant 0 : index
    %121 = vector.load %arg6[%c2_127, %c0_128, %c0_129] : memref<7x112x96xf32, #tpu.memory_space<vmem>>, vector<1x112x96xf32>
    %122 = vector.shape_cast %121 : vector<1x112x96xf32> to vector<112x96xf32>
    %cst_130 = arith.constant dense<0.000000e+00> : vector<112x40xf32>
    %123 = tpu.matmul %122, %107, %cst_130 {dimension_numbers = #tpu.dot_dimension_numbers<[1], [0], [0], [1], [0, 0, 1, 1], [], []>} : vector<112x96xf32>, vector<96x40xf32>, vector<112x40xf32> -> vector<112x40xf32>
    %c2_131 = arith.constant 2 : index
    %c0_132 = arith.constant 0 : index
    %c0_133 = arith.constant 0 : index
    %124 = vector.load %arg7[%c2_131, %c0_132, %c0_133] : memref<7x40x48xf32, #tpu.memory_space<vmem>>, vector<1x40x48xf32>
    %125 = vector.shape_cast %124 : vector<1x40x48xf32> to vector<40x48xf32>
    %cst_134 = arith.constant dense<0.000000e+00> : vector<112x48xf32>
    %126 = tpu.matmul %123, %125, %cst_134 {dimension_numbers = #tpu.dot_dimension_numbers<[1], [0], [0], [1], [0, 0, 1, 1], [], []>} : vector<112x40xf32>, vector<40x48xf32>, vector<112x48xf32> -> vector<112x48xf32>
    %127 = arith.addf %120, %126 : vector<112x48xf32>
    %c3_135 = arith.constant 3 : index
    %c0_136 = arith.constant 0 : index
    %c0_137 = arith.constant 0 : index
    %128 = vector.load %arg6[%c3_135, %c0_136, %c0_137] : memref<7x112x96xf32, #tpu.memory_space<vmem>>, vector<1x112x96xf32>
    %129 = vector.shape_cast %128 : vector<1x112x96xf32> to vector<112x96xf32>
    %cst_138 = arith.constant dense<0.000000e+00> : vector<112x40xf32>
    %130 = tpu.matmul %129, %107, %cst_138 {dimension_numbers = #tpu.dot_dimension_numbers<[1], [0], [0], [1], [0, 0, 1, 1], [], []>} : vector<112x96xf32>, vector<96x40xf32>, vector<112x40xf32> -> vector<112x40xf32>
    %c3_139 = arith.constant 3 : index
    %c0_140 = arith.constant 0 : index
    %c0_141 = arith.constant 0 : index
    %131 = vector.load %arg7[%c3_139, %c0_140, %c0_141] : memref<7x40x48xf32, #tpu.memory_space<vmem>>, vector<1x40x48xf32>
    %132 = vector.shape_cast %131 : vector<1x40x48xf32> to vector<40x48xf32>
    %cst_142 = arith.constant dense<0.000000e+00> : vector<112x48xf32>
    %133 = tpu.matmul %130, %132, %cst_142 {dimension_numbers = #tpu.dot_dimension_numbers<[1], [0], [0], [1], [0, 0, 1, 1], [], []>} : vector<112x40xf32>, vector<40x48xf32>, vector<112x48xf32> -> vector<112x48xf32>
    %134 = arith.addf %127, %133 : vector<112x48xf32>
    %c4_143 = arith.constant 4 : index
    %c0_144 = arith.constant 0 : index
    %c0_145 = arith.constant 0 : index
    %135 = vector.load %arg6[%c4_143, %c0_144, %c0_145] : memref<7x112x96xf32, #tpu.memory_space<vmem>>, vector<1x112x96xf32>
    %136 = vector.shape_cast %135 : vector<1x112x96xf32> to vector<112x96xf32>
    %cst_146 = arith.constant dense<0.000000e+00> : vector<112x40xf32>
    %137 = tpu.matmul %136, %107, %cst_146 {dimension_numbers = #tpu.dot_dimension_numbers<[1], [0], [0], [1], [0, 0, 1, 1], [], []>} : vector<112x96xf32>, vector<96x40xf32>, vector<112x40xf32> -> vector<112x40xf32>
    %c4_147 = arith.constant 4 : index
    %c0_148 = arith.constant 0 : index
    %c0_149 = arith.constant 0 : index
    %138 = vector.load %arg7[%c4_147, %c0_148, %c0_149] : memref<7x40x48xf32, #tpu.memory_space<vmem>>, vector<1x40x48xf32>
    %139 = vector.shape_cast %138 : vector<1x40x48xf32> to vector<40x48xf32>
    %cst_150 = arith.constant dense<0.000000e+00> : vector<112x48xf32>
    %140 = tpu.matmul %137, %139, %cst_150 {dimension_numbers = #tpu.dot_dimension_numbers<[1], [0], [0], [1], [0, 0, 1, 1], [], []>} : vector<112x40xf32>, vector<40x48xf32>, vector<112x48xf32> -> vector<112x48xf32>
    %141 = arith.addf %134, %140 : vector<112x48xf32>
    %c5_151 = arith.constant 5 : index
    %c0_152 = arith.constant 0 : index
    %c0_153 = arith.constant 0 : index
    %142 = vector.load %arg6[%c5_151, %c0_152, %c0_153] : memref<7x112x96xf32, #tpu.memory_space<vmem>>, vector<1x112x96xf32>
    %143 = vector.shape_cast %142 : vector<1x112x96xf32> to vector<112x96xf32>
    %cst_154 = arith.constant dense<0.000000e+00> : vector<112x40xf32>
    %144 = tpu.matmul %143, %107, %cst_154 {dimension_numbers = #tpu.dot_dimension_numbers<[1], [0], [0], [1], [0, 0, 1, 1], [], []>} : vector<112x96xf32>, vector<96x40xf32>, vector<112x40xf32> -> vector<112x40xf32>
    %c5_155 = arith.constant 5 : index
    %c0_156 = arith.constant 0 : index
    %c0_157 = arith.constant 0 : index
    %145 = vector.load %arg7[%c5_155, %c0_156, %c0_157] : memref<7x40x48xf32, #tpu.memory_space<vmem>>, vector<1x40x48xf32>
    %146 = vector.shape_cast %145 : vector<1x40x48xf32> to vector<40x48xf32>
    %cst_158 = arith.constant dense<0.000000e+00> : vector<112x48xf32>
    %147 = tpu.matmul %144, %146, %cst_158 {dimension_numbers = #tpu.dot_dimension_numbers<[1], [0], [0], [1], [0, 0, 1, 1], [], []>} : vector<112x40xf32>, vector<40x48xf32>, vector<112x48xf32> -> vector<112x48xf32>
    %148 = arith.addf %141, %147 : vector<112x48xf32>
    %c6_159 = arith.constant 6 : index
    %c0_160 = arith.constant 0 : index
    %c0_161 = arith.constant 0 : index
    %149 = vector.load %arg6[%c6_159, %c0_160, %c0_161] : memref<7x112x96xf32, #tpu.memory_space<vmem>>, vector<1x112x96xf32>
    %150 = vector.shape_cast %149 : vector<1x112x96xf32> to vector<112x96xf32>
    %cst_162 = arith.constant dense<0.000000e+00> : vector<112x40xf32>
    %151 = tpu.matmul %150, %107, %cst_162 {dimension_numbers = #tpu.dot_dimension_numbers<[1], [0], [0], [1], [0, 0, 1, 1], [], []>} : vector<112x96xf32>, vector<96x40xf32>, vector<112x40xf32> -> vector<112x40xf32>
    %c6_163 = arith.constant 6 : index
    %c0_164 = arith.constant 0 : index
    %c0_165 = arith.constant 0 : index
    %152 = vector.load %arg7[%c6_163, %c0_164, %c0_165] : memref<7x40x48xf32, #tpu.memory_space<vmem>>, vector<1x40x48xf32>
    %153 = vector.shape_cast %152 : vector<1x40x48xf32> to vector<40x48xf32>
    %cst_166 = arith.constant dense<0.000000e+00> : vector<112x48xf32>
    %154 = tpu.matmul %151, %153, %cst_166 {dimension_numbers = #tpu.dot_dimension_numbers<[1], [0], [0], [1], [0, 0, 1, 1], [], []>} : vector<112x40xf32>, vector<40x48xf32>, vector<112x48xf32> -> vector<112x48xf32>
    %155 = arith.addf %148, %154 : vector<112x48xf32>
    %cst_167 = arith.constant 0.000000e+00 : f32
    %156 = vector.broadcast %cst_167 : f32 to vector<112x48xf32>
    %157 = arith.cmpf ogt, %155, %156 : vector<112x48xf32>
    %cst_168 = arith.constant -4.168700e+00 : f32
    %158 = vector.broadcast %cst_168 : f32 to vector<112x48xf32>
    %159 = arith.mulf %155, %158 : vector<112x48xf32>
    %160 = arith.select %157, %155, %159 : vector<112x48xi1>, vector<112x48xf32>
    %c0_169 = arith.constant 0 : index
    %c0_170 = arith.constant 0 : index
    %c0_171 = arith.constant 0 : index
    %161 = vector.load %arg8[%c0_169, %c0_170, %c0_171] : memref<7x128x112xf32, #tpu.memory_space<vmem>>, vector<1x128x112xf32>
    %162 = vector.shape_cast %161 : vector<1x128x112xf32> to vector<128x112xf32>
    %cst_172 = arith.constant dense<0.000000e+00> : vector<128x48xf32>
    %163 = tpu.matmul %162, %160, %cst_172 {dimension_numbers = #tpu.dot_dimension_numbers<[1], [0], [0], [1], [0, 0, 1, 1], [], []>} : vector<128x112xf32>, vector<112x48xf32>, vector<128x48xf32> -> vector<128x48xf32>
    %c0_173 = arith.constant 0 : index
    %c0_174 = arith.constant 0 : index
    %c0_175 = arith.constant 0 : index
    %164 = vector.load %arg9[%c0_173, %c0_174, %c0_175] : memref<7x48x56xf32, #tpu.memory_space<vmem>>, vector<1x48x56xf32>
    %165 = vector.shape_cast %164 : vector<1x48x56xf32> to vector<48x56xf32>
    %cst_176 = arith.constant dense<0.000000e+00> : vector<128x56xf32>
    %166 = tpu.matmul %163, %165, %cst_176 {dimension_numbers = #tpu.dot_dimension_numbers<[1], [0], [0], [1], [0, 0, 1, 1], [], []>} : vector<128x48xf32>, vector<48x56xf32>, vector<128x56xf32> -> vector<128x56xf32>
    %c1_177 = arith.constant 1 : index
    %c0_178 = arith.constant 0 : index
    %c0_179 = arith.constant 0 : index
    %167 = vector.load %arg8[%c1_177, %c0_178, %c0_179] : memref<7x128x112xf32, #tpu.memory_space<vmem>>, vector<1x128x112xf32>
    %168 = vector.shape_cast %167 : vector<1x128x112xf32> to vector<128x112xf32>
    %cst_180 = arith.constant dense<0.000000e+00> : vector<128x48xf32>
    %169 = tpu.matmul %168, %160, %cst_180 {dimension_numbers = #tpu.dot_dimension_numbers<[1], [0], [0], [1], [0, 0, 1, 1], [], []>} : vector<128x112xf32>, vector<112x48xf32>, vector<128x48xf32> -> vector<128x48xf32>
    %c1_181 = arith.constant 1 : index
    %c0_182 = arith.constant 0 : index
    %c0_183 = arith.constant 0 : index
    %170 = vector.load %arg9[%c1_181, %c0_182, %c0_183] : memref<7x48x56xf32, #tpu.memory_space<vmem>>, vector<1x48x56xf32>
    %171 = vector.shape_cast %170 : vector<1x48x56xf32> to vector<48x56xf32>
    %cst_184 = arith.constant dense<0.000000e+00> : vector<128x56xf32>
    %172 = tpu.matmul %169, %171, %cst_184 {dimension_numbers = #tpu.dot_dimension_numbers<[1], [0], [0], [1], [0, 0, 1, 1], [], []>} : vector<128x48xf32>, vector<48x56xf32>, vector<128x56xf32> -> vector<128x56xf32>
    %173 = arith.addf %166, %172 : vector<128x56xf32>
    %c2_185 = arith.constant 2 : index
    %c0_186 = arith.constant 0 : index
    %c0_187 = arith.constant 0 : index
    %174 = vector.load %arg8[%c2_185, %c0_186, %c0_187] : memref<7x128x112xf32, #tpu.memory_space<vmem>>, vector<1x128x112xf32>
    %175 = vector.shape_cast %174 : vector<1x128x112xf32> to vector<128x112xf32>
    %cst_188 = arith.constant dense<0.000000e+00> : vector<128x48xf32>
    %176 = tpu.matmul %175, %160, %cst_188 {dimension_numbers = #tpu.dot_dimension_numbers<[1], [0], [0], [1], [0, 0, 1, 1], [], []>} : vector<128x112xf32>, vector<112x48xf32>, vector<128x48xf32> -> vector<128x48xf32>
    %c2_189 = arith.constant 2 : index
    %c0_190 = arith.constant 0 : index
    %c0_191 = arith.constant 0 : index
    %177 = vector.load %arg9[%c2_189, %c0_190, %c0_191] : memref<7x48x56xf32, #tpu.memory_space<vmem>>, vector<1x48x56xf32>
    %178 = vector.shape_cast %177 : vector<1x48x56xf32> to vector<48x56xf32>
    %cst_192 = arith.constant dense<0.000000e+00> : vector<128x56xf32>
    %179 = tpu.matmul %176, %178, %cst_192 {dimension_numbers = #tpu.dot_dimension_numbers<[1], [0], [0], [1], [0, 0, 1, 1], [], []>} : vector<128x48xf32>, vector<48x56xf32>, vector<128x56xf32> -> vector<128x56xf32>
    %180 = arith.addf %173, %179 : vector<128x56xf32>
    %c3_193 = arith.constant 3 : index
    %c0_194 = arith.constant 0 : index
    %c0_195 = arith.constant 0 : index
    %181 = vector.load %arg8[%c3_193, %c0_194, %c0_195] : memref<7x128x112xf32, #tpu.memory_space<vmem>>, vector<1x128x112xf32>
    %182 = vector.shape_cast %181 : vector<1x128x112xf32> to vector<128x112xf32>
    %cst_196 = arith.constant dense<0.000000e+00> : vector<128x48xf32>
    %183 = tpu.matmul %182, %160, %cst_196 {dimension_numbers = #tpu.dot_dimension_numbers<[1], [0], [0], [1], [0, 0, 1, 1], [], []>} : vector<128x112xf32>, vector<112x48xf32>, vector<128x48xf32> -> vector<128x48xf32>
    %c3_197 = arith.constant 3 : index
    %c0_198 = arith.constant 0 : index
    %c0_199 = arith.constant 0 : index
    %184 = vector.load %arg9[%c3_197, %c0_198, %c0_199] : memref<7x48x56xf32, #tpu.memory_space<vmem>>, vector<1x48x56xf32>
    %185 = vector.shape_cast %184 : vector<1x48x56xf32> to vector<48x56xf32>
    %cst_200 = arith.constant dense<0.000000e+00> : vector<128x56xf32>
    %186 = tpu.matmul %183, %185, %cst_200 {dimension_numbers = #tpu.dot_dimension_numbers<[1], [0], [0], [1], [0, 0, 1, 1], [], []>} : vector<128x48xf32>, vector<48x56xf32>, vector<128x56xf32> -> vector<128x56xf32>
    %187 = arith.addf %180, %186 : vector<128x56xf32>
    %c4_201 = arith.constant 4 : index
    %c0_202 = arith.constant 0 : index
    %c0_203 = arith.constant 0 : index
    %188 = vector.load %arg8[%c4_201, %c0_202, %c0_203] : memref<7x128x112xf32, #tpu.memory_space<vmem>>, vector<1x128x112xf32>
    %189 = vector.shape_cast %188 : vector<1x128x112xf32> to vector<128x112xf32>
    %cst_204 = arith.constant dense<0.000000e+00> : vector<128x48xf32>
    %190 = tpu.matmul %189, %160, %cst_204 {dimension_numbers = #tpu.dot_dimension_numbers<[1], [0], [0], [1], [0, 0, 1, 1], [], []>} : vector<128x112xf32>, vector<112x48xf32>, vector<128x48xf32> -> vector<128x48xf32>
    %c4_205 = arith.constant 4 : index
    %c0_206 = arith.constant 0 : index
    %c0_207 = arith.constant 0 : index
    %191 = vector.load %arg9[%c4_205, %c0_206, %c0_207] : memref<7x48x56xf32, #tpu.memory_space<vmem>>, vector<1x48x56xf32>
    %192 = vector.shape_cast %191 : vector<1x48x56xf32> to vector<48x56xf32>
    %cst_208 = arith.constant dense<0.000000e+00> : vector<128x56xf32>
    %193 = tpu.matmul %190, %192, %cst_208 {dimension_numbers = #tpu.dot_dimension_numbers<[1], [0], [0], [1], [0, 0, 1, 1], [], []>} : vector<128x48xf32>, vector<48x56xf32>, vector<128x56xf32> -> vector<128x56xf32>
    %194 = arith.addf %187, %193 : vector<128x56xf32>
    %c5_209 = arith.constant 5 : index
    %c0_210 = arith.constant 0 : index
    %c0_211 = arith.constant 0 : index
    %195 = vector.load %arg8[%c5_209, %c0_210, %c0_211] : memref<7x128x112xf32, #tpu.memory_space<vmem>>, vector<1x128x112xf32>
    %196 = vector.shape_cast %195 : vector<1x128x112xf32> to vector<128x112xf32>
    %cst_212 = arith.constant dense<0.000000e+00> : vector<128x48xf32>
    %197 = tpu.matmul %196, %160, %cst_212 {dimension_numbers = #tpu.dot_dimension_numbers<[1], [0], [0], [1], [0, 0, 1, 1], [], []>} : vector<128x112xf32>, vector<112x48xf32>, vector<128x48xf32> -> vector<128x48xf32>
    %c5_213 = arith.constant 5 : index
    %c0_214 = arith.constant 0 : index
    %c0_215 = arith.constant 0 : index
    %198 = vector.load %arg9[%c5_213, %c0_214, %c0_215] : memref<7x48x56xf32, #tpu.memory_space<vmem>>, vector<1x48x56xf32>
    %199 = vector.shape_cast %198 : vector<1x48x56xf32> to vector<48x56xf32>
    %cst_216 = arith.constant dense<0.000000e+00> : vector<128x56xf32>
    %200 = tpu.matmul %197, %199, %cst_216 {dimension_numbers = #tpu.dot_dimension_numbers<[1], [0], [0], [1], [0, 0, 1, 1], [], []>} : vector<128x48xf32>, vector<48x56xf32>, vector<128x56xf32> -> vector<128x56xf32>
    %201 = arith.addf %194, %200 : vector<128x56xf32>
    %c6_217 = arith.constant 6 : index
    %c0_218 = arith.constant 0 : index
    %c0_219 = arith.constant 0 : index
    %202 = vector.load %arg8[%c6_217, %c0_218, %c0_219] : memref<7x128x112xf32, #tpu.memory_space<vmem>>, vector<1x128x112xf32>
    %203 = vector.shape_cast %202 : vector<1x128x112xf32> to vector<128x112xf32>
    %cst_220 = arith.constant dense<0.000000e+00> : vector<128x48xf32>
    %204 = tpu.matmul %203, %160, %cst_220 {dimension_numbers = #tpu.dot_dimension_numbers<[1], [0], [0], [1], [0, 0, 1, 1], [], []>} : vector<128x112xf32>, vector<112x48xf32>, vector<128x48xf32> -> vector<128x48xf32>
    %c6_221 = arith.constant 6 : index
    %c0_222 = arith.constant 0 : index
    %c0_223 = arith.constant 0 : index
    %205 = vector.load %arg9[%c6_221, %c0_222, %c0_223] : memref<7x48x56xf32, #tpu.memory_space<vmem>>, vector<1x48x56xf32>
    %206 = vector.shape_cast %205 : vector<1x48x56xf32> to vector<48x56xf32>
    %cst_224 = arith.constant dense<0.000000e+00> : vector<128x56xf32>
    %207 = tpu.matmul %204, %206, %cst_224 {dimension_numbers = #tpu.dot_dimension_numbers<[1], [0], [0], [1], [0, 0, 1, 1], [], []>} : vector<128x48xf32>, vector<48x56xf32>, vector<128x56xf32> -> vector<128x56xf32>
    %208 = arith.addf %201, %207 : vector<128x56xf32>
    %cst_225 = arith.constant 0.000000e+00 : f32
    %209 = vector.broadcast %cst_225 : f32 to vector<128x56xf32>
    %210 = arith.cmpf ogt, %208, %209 : vector<128x56xf32>
    %cst_226 = arith.constant 6.580000e-02 : f32
    %211 = vector.broadcast %cst_226 : f32 to vector<128x56xf32>
    %212 = arith.mulf %208, %211 : vector<128x56xf32>
    %213 = arith.select %210, %208, %212 : vector<128x56xi1>, vector<128x56xf32>
    %c0_227 = arith.constant 0 : index
    %c0_228 = arith.constant 0 : index
    %214 = vector.load %arg10[%c0_227, %c0_228] : memref<116x128xf32, #tpu.memory_space<vmem>>, vector<116x128xf32>
    %cst_229 = arith.constant dense<0.000000e+00> : vector<116x56xf32>
    %215 = tpu.matmul %214, %213, %cst_229 {dimension_numbers = #tpu.dot_dimension_numbers<[1], [0], [0], [1], [0, 0, 1, 1], [], []>} : vector<116x128xf32>, vector<128x56xf32>, vector<116x56xf32> -> vector<116x56xf32>
    %c0_230 = arith.constant 0 : index
    %c0_231 = arith.constant 0 : index
    %216 = vector.load %arg11[%c0_230, %c0_231] : memref<56x58xf32, #tpu.memory_space<vmem>>, vector<56x58xf32>
    %cst_232 = arith.constant dense<0.000000e+00> : vector<116x58xf32>
    %217 = tpu.matmul %215, %216, %cst_232 {dimension_numbers = #tpu.dot_dimension_numbers<[1], [0], [0], [1], [0, 0, 1, 1], [], []>} : vector<116x56xf32>, vector<56x58xf32>, vector<116x58xf32> -> vector<116x58xf32>
    %c0_233 = arith.constant 0 : index
    %c0_234 = arith.constant 0 : index
    %c0_235 = arith.constant 0 : index
    %218 = vector.load %arg12[%c0_233, %c0_234, %c0_235] : memref<1x116x58xf32, #tpu.memory_space<vmem>>, vector<1x116x58xf32>
    %219 = vector.shape_cast %218 : vector<1x116x58xf32> to vector<116x58xf32>
    %220 = vector.shape_cast %217 : vector<116x58xf32> to vector<1x116x58xf32>
    tpu.vector_store %arg12[%c0_233, %c0_234, %c0_235], %220 {strides = array<i32>} : memref<1x116x58xf32, #tpu.memory_space<vmem>>, vector<1x116x58xf32>,
    return
  }
  func.func @transform_0(%arg0: i32) -> (i32, i32, i32) {
    %c0_i32 = arith.constant 0 : i32
    %c0_i32_0 = arith.constant 0 : i32
    %c0_i32_1 = arith.constant 0 : i32
    return %arg0, %c0_i32, %c0_i32_0 : i32, i32, i32
  }
  func.func @transform_1(%arg0: i32) -> (i32, i32, i32) {
    %c0_i32 = arith.constant 0 : i32
    %c0_i32_0 = arith.constant 0 : i32
    %c0_i32_1 = arith.constant 0 : i32
    %c0_i32_2 = arith.constant 0 : i32
    return %c0_i32, %c0_i32_0, %c0_i32_1 : i32, i32, i32
  }
  func.func @transform_2(%arg0: i32) -> (i32, i32, i32) {
    %c0_i32 = arith.constant 0 : i32
    %c0_i32_0 = arith.constant 0 : i32
    %c0_i32_1 = arith.constant 0 : i32
    %c0_i32_2 = arith.constant 0 : i32
    return %c0_i32, %c0_i32_0, %c0_i32_1 : i32, i32, i32
  }
  func.func @transform_3(%arg0: i32) -> (i32, i32, i32) {
    %c0_i32 = arith.constant 0 : i32
    %c0_i32_0 = arith.constant 0 : i32
    %c0_i32_1 = arith.constant 0 : i32
    %c0_i32_2 = arith.constant 0 : i32
    return %c0_i32, %c0_i32_0, %c0_i32_1 : i32, i32, i32
  }
  func.func @transform_4(%arg0: i32) -> (i32, i32, i32) {
    %c0_i32 = arith.constant 0 : i32
    %c0_i32_0 = arith.constant 0 : i32
    %c0_i32_1 = arith.constant 0 : i32
    %c0_i32_2 = arith.constant 0 : i32
    return %c0_i32, %c0_i32_0, %c0_i32_1 : i32, i32, i32
  }
  func.func @transform_5(%arg0: i32) -> (i32, i32, i32) {
    %c0_i32 = arith.constant 0 : i32
    %c0_i32_0 = arith.constant 0 : i32
    %c0_i32_1 = arith.constant 0 : i32
    %c0_i32_2 = arith.constant 0 : i32
    return %c0_i32, %c0_i32_0, %c0_i32_1 : i32, i32, i32
  }
  func.func @transform_6(%arg0: i32) -> (i32, i32, i32) {
    %c0_i32 = arith.constant 0 : i32
    %c0_i32_0 = arith.constant 0 : i32
    %c0_i32_1 = arith.constant 0 : i32
    %c0_i32_2 = arith.constant 0 : i32
    return %c0_i32, %c0_i32_0, %c0_i32_1 : i32, i32, i32
  }
  func.func @transform_7(%arg0: i32) -> (i32, i32, i32) {
    %c0_i32 = arith.constant 0 : i32
    %c0_i32_0 = arith.constant 0 : i32
    %c0_i32_1 = arith.constant 0 : i32
    %c0_i32_2 = arith.constant 0 : i32
    return %c0_i32, %c0_i32_0, %c0_i32_1 : i32, i32, i32
  }
  func.func @transform_8(%arg0: i32) -> (i32, i32, i32) {
    %c0_i32 = arith.constant 0 : i32
    %c0_i32_0 = arith.constant 0 : i32
    %c0_i32_1 = arith.constant 0 : i32
    %c0_i32_2 = arith.constant 0 : i32
    return %c0_i32, %c0_i32_0, %c0_i32_1 : i32, i32, i32
  }
  func.func @transform_9(%arg0: i32) -> (i32, i32) {
    %c0_i32 = arith.constant 0 : i32
    %c0_i32_0 = arith.constant 0 : i32
    %c0_i32_1 = arith.constant 0 : i32
    return %c0_i32, %c0_i32_0 : i32, i32
  }
  func.func @transform_10(%arg0: i32) -> (i32, i32) {
    %c0_i32 = arith.constant 0 : i32
    %c0_i32_0 = arith.constant 0 : i32
    %c0_i32_1 = arith.constant 0 : i32
    return %c0_i32, %c0_i32_0 : i32, i32
  }
  func.func @transform_11(%arg0: i32) -> (i32, i32, i32) {
    %c0_i32 = arith.constant 0 : i32
    %c0_i32_0 = arith.constant 0 : i32
    %c0_i32_1 = arith.constant 0 : i32
    return %arg0, %c0_i32, %c0_i32_0 : i32, i32, i32
  }
}

</mosaic_0001>

<bundles_post_ra>
// kernel: fused_forward.1
= control target key start
LH: loop header
LB: loop body
LE: loop exit
PB: predicated region body
PF: predicated region fallthrough
CT: control target
= control target key end

     0   :  { %s8198_s17 = smov 0   ;;  %s11742_s0 = inlined_call_operand.vmem [shape: f32[2,64,24], index: 0, kind: input, shape index: {}]   ;;  %s11743_s1 = inlined_call_operand.vmem [shape: f32[7,80,64], index: 1, kind: input, shape index: {}]   ;;  %s11744_s2 = inlined_call_operand.vmem [shape: f32[7,24,32], index: 2, kind: input, shape index: {}]   ;;  %s11745_s3 = inlined_call_operand.vmem [shape: f32[7,96,80], index: 3, kind: input, shape index: {}]   ;;  %s11746_s4 = inlined_call_operand.vmem [shape: f32[7,32,40], index: 4, kind: input, shape index: {}]   ;;  %s11747_s5 = inlined_call_operand.vmem [shape: f32[7,112,96], index: 5, kind: input, shape index: {}]   ;;  %s11748_s6 = inlined_call_operand.vmem [shape: f32[7,40,48], index: 6, kind: input, shape index: {}]   ;;  %s11749_s7 = inlined_call_operand.vmem [shape: f32[7,128,112], index: 7, kind: input, shape index: {}]   ;;  %s11750_s8 = inlined_call_operand.vmem [shape: f32[7,48,56], index: 8, kind: input, shape index: {}]   ;;  %s11751_s9 = inlined_call_operand.vmem [shape: f32[116,128], index: 9, kind: input, shape index: {}]   ;;  %s11752_s10 = inlined_call_operand.vmem [shape: f32[56,58], index: 10, kind: input, shape index: {}]   ;;  %s11753_s11 = inlined_call_operand.vmem [shape: f32[2,116,58], index: 11, kind: output, shape index: {}]  }
   0x1 LB: > { %s6941_s18 = sadd.s32 4294967295, %s8136_s17   ;;  %p6945_p0 = scmp.ge.s32.totalorder %s8136_s17, 1  ;;  %s8136_s17 = sphi %s8198_s17, %s21_s17  }
   0x2   : > { %p337_p1 = scmp.lt.s32.totalorder %s8136_s17, 3 }
   0x4   : > { %p338_p2 = pnand %p6945_p0, %p337_p1 }
   0x6   : > { %341 = sbr.rel (%p338_p2) target bundleno = 3388 (0xd3c), region = 64 }
   0xb   : > { %p377_p3 = scmp.lt.s32.totalorder %s6941_s18, 1  ;;  %v395_v8 = vld [vmem:[%s11743_s1] sm:$0xff]  ;;  %vm405_vm0 = vcmask 523264   ;;  %v6959_v9 = vld [vmem:[%s11743_s1 + $0x50] sm:$0xff]  ;;  %v396_v10 = vld [vmem:[%s11743_s1 + $0x8] sm:$0xff]  ;;  %vm578_vm1 = vcmask 195584  }
   0xc   : > { %v6960_v11 = vld [vmem:[%s11743_s1 + $0x58] sm:$0xff]  ;;  %v397_v12 = vld [vmem:[%s11743_s1 + $0x10] sm:$0xff]  ;;  %v6961_v13 = vld [vmem:[%s11743_s1 + $0x60] sm:$0xff]  ;;  %vm1670_vm12 = vcmask 654336   ;;  %vm1871_vm13 = vcmask 261120  }
   0xd   : > { %s11877_s18 = smov (!%p377_p3, %s6941_s18), 1  ;;  %v398_v14 = vld [vmem:[%s11743_s1 + $0x18] sm:$0xff]  ;;  %v6962_v15 = vld [vmem:[%s11743_s1 + $0x68] sm:$0xff]  ;;  %v399_v16 = vld [vmem:[%s11743_s1 + $0x20] sm:$0xff] }
   0xe   : > { %s8114_s19 = sshll.u32 %s11877_s18, 6  ;;  %v6963_v17 = vld [vmem:[%s11743_s1 + $0x70] sm:$0xff]  ;;  %v400_v18 = vld [vmem:[%s11743_s1 + $0x28] sm:$0xff]  ;;  %v6964_v19 = vld [vmem:[%s11743_s1 + $0x78] sm:$0xff]  ;;  %s8121_s27 = smul.u32 120, %s11877_s18 }
   0xf   : > { %s381_s22 = scalar_lea.vmem %s11742_s0, %s8114_s19  ;;  %v6981_v20 = vld [vmem:[%s11744_s2 + $0x28] sm:$0xff]  ;;  %v485_v21 = vld [vmem:[%s11744_s2 + $0x10] sm:$0xff]  ;;  %v6980_v22 = vld [vmem:[%s11744_s2 + $0x20] sm:$0xff] }
  0x10   : > { %v8212_v0 = vld [vmem:[%s381_s22 + $0x38] sm:$0xff]  ;;  %v8214_v1 = vld [vmem:[%s381_s22 + $0x30] sm:$0xff]  ;;  %v8218_v2 = vld [vmem:[%s381_s22 + $0x28] sm:$0xff]  ;;  %8115 = vmatpush.msra.mxu2 %v6981_v20  ;;  %8118 = vmatpush.msra.mxu3 %v485_v21  ;;  %s11708_s30 = scalar_lea.vmem %s11753_s11, %s8121_s27 }
  0x11   : > { %444 = vmatpush.msra.mxu0 %v8212_v0  ;;  %535 = vmatpush.msra.mxu1 %v8212_v0  ;;  %v8222_v3 = vld [vmem:[%s381_s22 + $0x20] sm:$0xff]  ;;  %v8226_v4 = vld [vmem:[%s381_s22 + $0x18] sm:$0xff]  ;;  %v8230_v5 = vld [vmem:[%s381_s22 + $0x10] sm:$0xff] }
  0x12   : > { %v8234_v6 = vld [vmem:[%s381_s22 + $0x8] sm:$0xff]  ;;  %v8238_v7 = vld [vmem:[%s381_s22] sm:$0xff]  ;;  %8116 = vmatpush.msra.mxu2 %v6980_v22  ;;  %v401_v24 = vld [vmem:[%s11743_s1 + $0x30] sm:$0xff] }
  0x13   : > { %445 = vmatpush.msra.mxu0 %v8214_v1  ;;  %536 = vmatpush.msra.mxu1 %v8214_v1  ;;  %v484_v23 = vld [vmem:[%s11744_s2 + $0x8] sm:$0xff]  ;;  %v6965_v25 = vld [vmem:[%s11743_s1 + $0x80] sm:$0xff]  ;;  %v402_v26 = vld [vmem:[%s11743_s1 + $0x38] sm:$0xff] }
  0x14   : > { %8119 = vmatpush.msra.mxu3 %v484_v23  ;;  %v6966_v27 = vld [vmem:[%s11743_s1 + $0x88] sm:$0xff]  ;;  %v403_v28 = vld [vmem:[%s11743_s1 + $0x40] sm:$0xff]  ;;  %v6967_v29 = vld [vmem:[%s11743_s1 + $0x90] sm:$0xff] }
  0x15   : > { %446 = vmatpush.msra.mxu0 %v8218_v2  ;;  %537 = vmatpush.msra.mxu1 %v8218_v2  ;;  %v404_v30 = vld [vmem:[%s11743_s1 + $0x48] sm:$0xff]  ;;  %v6968_v31 = vld [vmem:[%s11743_s1 + $0x98] sm:$0xff]  ;;  %v483_v33 = vld [vmem:[%s11744_s2] sm:$0xff] }
  0x16   : > { %v6979_v32 = vld [vmem:[%s11744_s2 + $0x18] sm:$0xff]  ;;  %8120 = vmatpush.msra.mxu3 %v483_v33  ;;  %v7035_v50 = vld [vmem:[%s11743_s1 + $0xf0] sm:$0xff]  ;;  %v7037_v56 = vld [vmem:[%s11743_s1 + $0x100] sm:$0xff] }
  0x17   : > { %447 = vmatpush.msra.mxu0 %v8222_v3  ;;  %538 = vmatpush.msra.mxu1 %v8222_v3  ;;  %v7036_v53 = vld [vmem:[%s11743_s1 + $0xf8] sm:$0xff]  ;;  %v7002_v57 = vld [vmem:[%s11743_s1 + $0xa0] sm:$0xff]  ;;  %v7038_v58 = vld [vmem:[%s11743_s1 + $0x108] sm:$0xff] }
  0x18   : > { %8117 = vmatpush.msra.mxu2 %v6979_v32  ;;  %v7003_v59 = vld [vmem:[%s11743_s1 + $0xa8] sm:$0xff]  ;;  %v7004_v60 = vld [vmem:[%s11743_s1 + $0xb0] sm:$0xff]  ;;  %v7005_v62 = vld [vmem:[%s11743_s1 + $0xb8] sm:$0xff] }
  0x19   : > { %448 = vmatpush.msra.mxu0 %v8226_v4  ;;  %539 = vmatpush.msra.mxu1 %v8226_v4  ;;  %v7039_v61 = vld [vmem:[%s11743_s1 + $0x110] sm:$0xff]  ;;  %v7040_v63 = vld [vmem:[%s11743_s1 + $0x118] sm:$0xff] }
  0x1a   : > { %782 = vmatpush.msrb.mxu2 %v8212_v0 }
  0x1b   : > { %449 = vmatpush.msra.mxu0 %v8230_v5  ;;  %540 = vmatpush.msra.mxu1 %v8230_v5 }
  0x1c   : > { %783 = vmatpush.msrb.mxu2 %v8214_v1 }
  0x1d   : > { %450 = vmatpush.msra.mxu0 %v8234_v6  ;;  %541 = vmatpush.msra.mxu1 %v8234_v6 }
  0x1e   : > { %784 = vmatpush.msrb.mxu2 %v8218_v2 }
  0x1f   : > { %451 = vmatpush.msra.mxu0 %v8238_v7  ;;  %542 = vmatpush.msra.mxu1 %v8238_v7 }
  0x20   : > { %6949 = vmatmul.msk.f32.vlgmr.msra.gmra.mxu0 %vm405_vm0, %v395_v8  ;;  %6969 = vmatmul.msk.f32.vlgmr.msra.gmra.mxu1 %vm405_vm0, %v6959_v9  ;;  %v7101_v8 = vld [vmem:[%s11743_s1 + $0x190] sm:$0xff]  ;;  %v7010_v9 = vld [vmem:[%s11743_s1 + $0xe0] sm:$0xff] }
  0x21   : > { %622 = vmatpush.msrb.mxu0 %v6981_v20  ;;  %699 = vmatpush.msrb.mxu1 %v485_v21  ;;  %v7105_v21 = vld [vmem:[%s11743_s1 + $0x1b0] sm:$0xff] }
  0x22   : > { %785 = vmatpush.msrb.mxu2 %v8222_v3 }
  0x23   : > { %623 = vmatpush.msrb.mxu0 %v6980_v22  ;;  %700 = vmatpush.msrb.mxu1 %v484_v23  ;;  %v7024_v22 = vld [vmem:[%s11744_s2 + $0x40] sm:$0xff]  ;;  %v7070_v23 = vld [vmem:[%s11743_s1 + $0x150] sm:$0xff] }
  0x24   : > { %786 = vmatpush.msrb.mxu2 %v8226_v4  ;;  %868 = vmatpush.msrb.mxu3 %v7024_v22 }
  0x25   : > { %624 = vmatpush.msrb.mxu0 %v6979_v32  ;;  %701 = vmatpush.msrb.mxu1 %v483_v33  ;;  %v7055_v32 = vld [vmem:[%s11744_s2 + $0x48] sm:$0xff] }
  0x26   : > { %787 = vmatpush.msrb.mxu2 %v8230_v5 }
  0x27   : > { %961 = vmatpush.msra.mxu0 %v8212_v0 }
  0x28   : > { %6950 = vmatmul.msk.f32.gmra.mxu0 %vm405_vm0, %v396_v10  ;;  %6970 = vmatmul.msk.f32.gmra.mxu1 %vm405_vm0, %v6960_v11  ;;  %v7102_v10 = vld [vmem:[%s11743_s1 + $0x198] sm:$0xff]  ;;  %v7011_v11 = vld [vmem:[%s11743_s1 + $0xe8] sm:$0xff] }
  0x29   : > { %962 = vmatpush.msra.mxu0 %v8214_v1  ;;  %788 = vmatpush.msrb.mxu2 %v8234_v6 }
  0x2b   : > { %963 = vmatpush.msra.mxu0 %v8218_v2  ;;  %789 = vmatpush.msrb.mxu2 %v8238_v7 }
  0x2d   : > { %964 = vmatpush.msra.mxu0 %v8222_v3 }
  0x2f   : > { %965 = vmatpush.msra.mxu0 %v8226_v4 }
  0x30   : > { %6951 = vmatmul.msk.f32.gmra.mxu0 %vm405_vm0, %v397_v12  ;;  %6971 = vmatmul.msk.f32.gmra.mxu1 %vm405_vm0, %v6961_v13  ;;  %v7103_v13 = vld [vmem:[%s11743_s1 + $0x1a0] sm:$0xff] }
  0x31   : > { %966 = vmatpush.msra.mxu0 %v8230_v5 }
  0x33   : > { %967 = vmatpush.msra.mxu0 %v8234_v6 }
  0x35   : > { %968 = vmatpush.msra.mxu0 %v8238_v7 }
  0x38   : > { %6952 = vmatmul.msk.f32.gmra.mxu0 %vm405_vm0, %v398_v14  ;;  %6972 = vmatmul.msk.f32.gmra.mxu1 %vm405_vm0, %v6962_v15  ;;  %v7068_v14 = vld [vmem:[%s11743_s1 + $0x140] sm:$0xff] }
  0x40   : > { %6953 = vmatmul.msk.f32.gmra.mxu0 %vm405_vm0, %v399_v16  ;;  %6973 = vmatmul.msk.f32.gmra.mxu1 %vm405_vm0, %v6963_v17  ;;  %v7104_v17 = vld [vmem:[%s11743_s1 + $0x1a8] sm:$0xff] }
  0x48   : > { %6954 = vmatmul.msk.f32.gmra.mxu0 %vm405_vm0, %v400_v18  ;;  %6974 = vmatmul.msk.f32.gmra.mxu1 %vm405_vm0, %v6964_v19  ;;  %v7069_v18 = vld [vmem:[%s11743_s1 + $0x148] sm:$0xff] }
  0x50   : > { %6955 = vmatmul.msk.f32.gmra.mxu0 %vm405_vm0, %v401_v24  ;;  %6975 = vmatmul.msk.f32.gmra.mxu1 %vm405_vm0, %v6965_v25  ;;  %v7023_v24 = vld [vmem:[%s11744_s2 + $0x38] sm:$0xff]  ;;  %v7022_v25 = vld [vmem:[%s11744_s2 + $0x30] sm:$0xff] }
  0x51   : > { %869 = vmatpush.msrb.mxu3 %v7023_v24 }
  0x53   : > { %870 = vmatpush.msrb.mxu3 %v7022_v25 }
  0x58   : > { %6956 = vmatmul.msk.f32.gmra.mxu0 %vm405_vm0, %v402_v26  ;;  %6976 = vmatmul.msk.f32.gmra.mxu1 %vm405_vm0, %v6966_v27 }
  0x60   : > { %6957 = vmatmul.msk.f32.gmra.mxu0 %vm405_vm0, %v403_v28  ;;  %6977 = vmatmul.msk.f32.gmra.mxu1 %vm405_vm0, %v6967_v29  ;;  %v7106_v28 = vld [vmem:[%s11743_s1 + $0x1b8] sm:$0xff] }
  0x61   : > { %v7057_v29 = vld [vmem:[%s11744_s2 + $0x58] sm:$0xff] }
  0x62   : > { %1047 = vmatpush.msra.mxu1 %v7057_v29 }
  0x68   : > { %6958 = vmatmul.msk.f32.gmra.mxu0 %vm405_vm0, %v404_v30  ;;  %6978 = vmatmul.msk.f32.gmra.mxu1 %vm405_vm0, %v6968_v31  ;;  %v7071_v30 = vld [vmem:[%s11743_s1 + $0x158] sm:$0xff]  ;;  %v7056_v31 = vld [vmem:[%s11744_s2 + $0x50] sm:$0xff] }
  0x69   : > { %1048 = vmatpush.msra.mxu1 %v7056_v31 }
  0x6b   : > { %1049 = vmatpush.msra.mxu1 %v7055_v32  ;;  %v7142_v32 = vld [vmem:[%s11743_s1 + $0x220] sm:$0xff] }
  0x9d   : > { %v453_v34 = vpop.f32.mrf.mxu0  ;;  %v544_v35 = vpop.f32.mrf.mxu1 }
  0x9e   : > { %6982 = vmatmul.msk.f32.vlgmr.msrb.gmra.mxu0 %vm578_vm1, %v544_v35  ;;  %6992 = vmatmul.msk.f32.vlgmr.msrb.gmra.mxu1 %vm578_vm1, %v453_v34  ;;  %v7107_v35 = vld [vmem:[%s11743_s1 + $0x1c0] sm:$0xff] }
  0x9f   : > { %1319 = vmatpush.msrb.mxu0 %v8212_v0 }
  0xa1   : > { %1320 = vmatpush.msrb.mxu0 %v8214_v1 }
  0xa3   : > { %1321 = vmatpush.msrb.mxu0 %v8218_v2 }
  0xa5   : > { %v456_v36 = vpop.f32.mrf.mxu0  ;;  %v547_v37 = vpop.f32.mrf.mxu1  ;;  %1322 = vmatpush.msrb.mxu0 %v8222_v3 }
  0xa6   : > { %6983 = vmatmul.msk.f32.gmra.mxu0 %vm578_vm1, %v547_v37  ;;  %6993 = vmatmul.msk.f32.gmra.mxu1 %vm578_vm1, %v456_v36  ;;  %v7072_v36 = vld [vmem:[%s11743_s1 + $0x160] sm:$0xff] }
  0xa7   : > { %1323 = vmatpush.msrb.mxu0 %v8226_v4 }
  0xa9   : > { %1324 = vmatpush.msrb.mxu0 %v8230_v5 }
  0xab   : > { %1325 = vmatpush.msrb.mxu0 %v8234_v6 }
  0xad   : > { %v459_v38 = vpop.f32.mrf.mxu0  ;;  %v550_v39 = vpop.f32.mrf.mxu1  ;;  %1326 = vmatpush.msrb.mxu0 %v8238_v7 }
  0xae   : > { %6984 = vmatmul.msk.f32.gmra.mxu0 %vm578_vm1, %v550_v39  ;;  %6994 = vmatmul.msk.f32.gmra.mxu1 %vm578_vm1, %v459_v38  ;;  %v7108_v39 = vld [vmem:[%s11743_s1 + $0x1c8] sm:$0xff] }
  0xb5   : > { %v462_v40 = vpop.f32.mrf.mxu0  ;;  %v553_v41 = vpop.f32.mrf.mxu1 }
  0xb6   : > { %6985 = vmatmul.msk.f32.gmra.mxu0 %vm578_vm1, %v553_v41  ;;  %6995 = vmatmul.msk.f32.gmra.mxu1 %vm578_vm1, %v462_v40  ;;  %v7073_v40 = vld [vmem:[%s11743_s1 + $0x168] sm:$0xff] }
  0xbd   : > { %v465_v42 = vpop.f32.mrf.mxu0  ;;  %v556_v43 = vpop.f32.mrf.mxu1 }
  0xbe   : > { %6986 = vmatmul.msk.f32.vlgmr.msra.gmra.mxu2 %vm578_vm1, %v556_v43  ;;  %6996 = vmatmul.msk.f32.vlgmr.msra.gmra.mxu3 %vm578_vm1, %v465_v42  ;;  %v7109_v43 = vld [vmem:[%s11743_s1 + $0x1d0] sm:$0xff] }
  0xbf   : > { %1140 = vmatpush.msra.mxu2 %v8212_v0  ;;  %7045 = vmatmul.msk.f32.vlgmr.msra.gmra.mxu0 %vm405_vm0, %v7035_v50 }
  0xc1   : > { %1141 = vmatpush.msra.mxu2 %v8214_v1 }
  0xc3   : > { %1142 = vmatpush.msra.mxu2 %v8218_v2 }
  0xc5   : > { %v468_v44 = vpop.f32.mrf.mxu0  ;;  %v559_v45 = vpop.f32.mrf.mxu1  ;;  %1143 = vmatpush.msra.mxu2 %v8222_v3 }
  0xc6   : > { %6987 = vmatmul.msk.f32.gmra.mxu2 %vm578_vm1, %v559_v45  ;;  %6997 = vmatmul.msk.f32.gmra.mxu3 %vm578_vm1, %v468_v44  ;;  %v7074_v44 = vld [vmem:[%s11743_s1 + $0x170] sm:$0xff] }
  0xc7   : > { %1144 = vmatpush.msra.mxu2 %v8226_v4  ;;  %7046 = vmatmul.msk.f32.gmra.mxu0 %vm405_vm0, %v7036_v53 }
  0xc9   : > { %1145 = vmatpush.msra.mxu2 %v8230_v5 }
  0xcb   : > { %1146 = vmatpush.msra.mxu2 %v8234_v6 }
  0xcd   : > { %v471_v46 = vpop.f32.mrf.mxu0  ;;  %v562_v47 = vpop.f32.mrf.mxu1  ;;  %1147 = vmatpush.msra.mxu2 %v8238_v7 }
  0xce   : > { %6988 = vmatmul.msk.f32.gmra.mxu2 %vm578_vm1, %v562_v47  ;;  %6998 = vmatmul.msk.f32.gmra.mxu3 %vm578_vm1, %v471_v46  ;;  %v7110_v47 = vld [vmem:[%s11743_s1 + $0x1d8] sm:$0xff] }
  0xcf   : > { %7047 = vmatmul.msk.f32.gmra.mxu0 %vm405_vm0, %v7037_v56 }
  0xd5   : > { %v474_v48 = vpop.f32.mrf.mxu0  ;;  %v565_v49 = vpop.f32.mrf.mxu1 }
  0xd6   : > { %6989 = vmatmul.msk.f32.gmra.mxu2 %vm578_vm1, %v565_v49  ;;  %6999 = vmatmul.msk.f32.gmra.mxu3 %vm578_vm1, %v474_v48  ;;  %v7075_v48 = vld [vmem:[%s11743_s1 + $0x178] sm:$0xff] }
  0xd7   : > { %7048 = vmatmul.msk.f32.gmra.mxu0 %vm405_vm0, %v7038_v58 }
  0xdd   : > { %v477_v51 = vpop.f32.mrf.mxu0  ;;  %v568_v52 = vpop.f32.mrf.mxu1 }
  0xde   : > { %6990 = vmatmul.msk.f32.gmra.mxu2 %vm578_vm1, %v568_v52  ;;  %7000 = vmatmul.msk.f32.gmra.mxu3 %vm578_vm1, %v477_v51  ;;  %v7076_v51 = vld [vmem:[%s11743_s1 + $0x180] sm:$0xff] }
  0xdf   : > { %7049 = vmatmul.msk.f32.gmra.mxu0 %vm405_vm0, %v7039_v61 }
  0xe5   : > { %v480_v54 = vpop.f32.mrf.mxu0  ;;  %v571_v55 = vpop.f32.mrf.mxu1 }
  0xe6   : > { %6991 = vmatmul.msk.f32.gmra.mxu2 %vm578_vm1, %v571_v55  ;;  %7001 = vmatmul.msk.f32.gmra.mxu3 %vm578_vm1, %v480_v54  ;;  %v7077_v54 = vld [vmem:[%s11743_s1 + $0x188] sm:$0xff] }
  0xe7   : > { %7050 = vmatmul.msk.f32.gmra.mxu0 %vm405_vm0, %v7040_v63  ;;  %v7090_v63 = vld [vmem:[%s11744_s2 + $0x70] sm:$0xff] }
  0xe8   : > { %1226 = vmatpush.msra.mxu3 %v7090_v63 }
  0xee   : > { %7012 = vmatmul.msk.f32.vlgmr.msrb.gmra.mxu2 %vm405_vm0, %v7002_v57  ;;  %v7134_v57 = vld [vmem:[%s11743_s1 + $0x1e0] sm:$0xff] }
  0xef   : > { %1498 = vmatpush.msrb.mxu2 %v8212_v0  ;;  %v7006_v0 = vld [vmem:[%s11743_s1 + $0xc0] sm:$0xff] }
  0xf1   : > { %1499 = vmatpush.msrb.mxu2 %v8214_v1  ;;  %v7041_v1 = vld [vmem:[%s11743_s1 + $0x120] sm:$0xff] }
  0xf2   : > { %7051 = vmatmul.msk.f32.gmra.mxu0 %vm405_vm0, %v7041_v1  ;;  %v7089_v1 = vld [vmem:[%s11744_s2 + $0x68] sm:$0xff] }
  0xf3   : > { %1500 = vmatpush.msrb.mxu2 %v8218_v2  ;;  %v7007_v2 = vld [vmem:[%s11743_s1 + $0xc8] sm:$0xff]  ;;  %1227 = vmatpush.msra.mxu3 %v7089_v1 }
  0xf5   : > { %1501 = vmatpush.msrb.mxu2 %v8222_v3  ;;  %v7042_v3 = vld [vmem:[%s11743_s1 + $0x128] sm:$0xff] }
  0xf6   : > { %7013 = vmatmul.msk.f32.gmra.mxu2 %vm405_vm0, %v7003_v59 }
  0xf7   : > { %1502 = vmatpush.msrb.mxu2 %v8226_v4  ;;  %v7043_v4 = vld [vmem:[%s11743_s1 + $0x130] sm:$0xff] }
  0xf9   : > { %1503 = vmatpush.msrb.mxu2 %v8230_v5  ;;  %v7008_v5 = vld [vmem:[%s11743_s1 + $0xd0] sm:$0xff] }
  0xfa   : > { %7052 = vmatmul.msk.f32.gmra.mxu0 %vm405_vm0, %v7042_v3 }
  0xfb   : > { %1504 = vmatpush.msrb.mxu2 %v8234_v6  ;;  %v7044_v6 = vld [vmem:[%s11743_s1 + $0x138] sm:$0xff] }
  0xfd   : > { %1505 = vmatpush.msrb.mxu2 %v8238_v7  ;;  %v7009_v7 = vld [vmem:[%s11743_s1 + $0xd8] sm:$0xff] }
  0xfe   : > { %7014 = vmatmul.msk.f32.gmra.mxu2 %vm405_vm0, %v7004_v60  ;;  %v7135_v60 = vld [vmem:[%s11743_s1 + $0x1e8] sm:$0xff] }
 0x102   : > { %7053 = vmatmul.msk.f32.gmra.mxu0 %vm405_vm0, %v7043_v4 }
 0x106   : > { %7015 = vmatmul.msk.f32.gmra.mxu2 %vm405_vm0, %v7005_v62 }
 0x10a   : > { %7054 = vmatmul.msk.f32.gmra.mxu0 %vm405_vm0, %v7044_v6  ;;  %v7137_v6 = vld [vmem:[%s11743_s1 + $0x1f8] sm:$0xff] }
 0x10e   : > { %7016 = vmatmul.msk.f32.gmra.mxu2 %vm405_vm0, %v7006_v0  ;;  %v7136_v0 = vld [vmem:[%s11743_s1 + $0x1f0] sm:$0xff] }
 0x112   : > { %7111 = vmatmul.msk.f32.vlgmr.msrb.gmra.mxu0 %vm405_vm0, %v7101_v8  ;;  %v7121_v8 = vld [vmem:[%s11744_s2 + $0x78] sm:$0xff] }
 0x116   : > { %7017 = vmatmul.msk.f32.gmra.mxu2 %vm405_vm0, %v7007_v2  ;;  %v7088_v2 = vld [vmem:[%s11744_s2 + $0x60] sm:$0xff] }
 0x117   : > { %1228 = vmatpush.msra.mxu3 %v7088_v2 }
 0x11a   : > { %7112 = vmatmul.msk.f32.gmra.mxu0 %vm405_vm0, %v7102_v10 }
 0x11b   : > { %v8488_v12 = vpop.f32.mrf.mxu0 }
 0x11e   : > { %7018 = vmatmul.msk.f32.gmra.mxu2 %vm405_vm0, %v7008_v5  ;;  %v7123_v5 = vld [vmem:[%s11744_s2 + $0x88] sm:$0xff] }
 0x11f   : > { %1405 = vmatpush.msrb.mxu1 %v7123_v5 }
 0x122   : > { %7113 = vmatmul.msk.f32.gmra.mxu0 %vm405_vm0, %v7103_v13 }
 0x123   : > { %v8499_v15 = vpop.f32.mrf.mxu0 }
 0x126   : > { %7019 = vmatmul.msk.f32.gmra.mxu2 %vm405_vm0, %v7009_v7  ;;  %v7122_v7 = vld [vmem:[%s11744_s2 + $0x80] sm:$0xff] }
 0x127   : > { %1406 = vmatpush.msrb.mxu1 %v7122_v7 }
 0x129   : > { %1407 = vmatpush.msrb.mxu1 %v7121_v8 }
 0x12a   : > { %7114 = vmatmul.msk.f32.gmra.mxu0 %vm405_vm0, %v7104_v17  ;;  %v7139_v17 = vld [vmem:[%s11743_s1 + $0x208] sm:$0xff] }
 0x12b   : > { %v8512_v19 = vpop.f32.mrf.mxu0 }
 0x12e   : > { %7020 = vmatmul.msk.f32.gmra.mxu2 %vm405_vm0, %v7010_v9 }
 0x132   : > { %7115 = vmatmul.msk.f32.gmra.mxu0 %vm405_vm0, %v7105_v21 }
 0x133   : > { %v8535_v27 = vpop.f32.mrf.mxu0 }
 0x136   : > { %7021 = vmatmul.msk.f32.gmra.mxu2 %vm405_vm0, %v7011_v11  ;;  %v7138_v11 = vld [vmem:[%s11743_s1 + $0x200] sm:$0xff] }
 0x13a   : > { %7116 = vmatmul.msk.f32.gmra.mxu0 %vm405_vm0, %v7106_v28  ;;  %v7141_v28 = vld [vmem:[%s11743_s1 + $0x218] sm:$0xff] }
 0x13c   : > { %v970_v34 = vpop.f32.mrf.mxu0 }
 0x13d   : > { %7058 = vmatmul.msk.f32.vlgmr.msra.gmra.mxu1 %vm578_vm1, %v970_v34 }
 0x13e   : > { %7078 = vmatmul.msk.f32.vlgmr.msra.gmra.mxu2 %vm405_vm0, %v7068_v14 }
 0x141   : > { %v8502_v16 = vpop.f32.mrf.mxu2  ;;  %v8664_v22 = vpop.f32.mrf.mxu3 }
 0x142   : > { %7117 = vmatmul.msk.f32.gmra.mxu0 %vm405_vm0, %v7107_v35  ;;  %v716_v2 = vadd.f32 %v8664_v22, %v8502_v16 }
 0x144   : > { %v973_v38 = vpop.f32.mrf.mxu0 }
 0x145   : > { %7059 = vmatmul.msk.f32.gmra.mxu1 %vm578_vm1, %v973_v38  ;;  %v7143_v38 = vld [vmem:[%s11743_s1 + $0x228] sm:$0xff] }
 0x146   : > { %7079 = vmatmul.msk.f32.gmra.mxu2 %vm405_vm0, %v7069_v18 }
 0x149   : > { %v8514_v20 = vpop.f32.mrf.mxu2  ;;  %v718_v29 = vpop.f32.mrf.mxu3 }
 0x14a   : > { %7118 = vmatmul.msk.f32.gmra.mxu0 %vm405_vm0, %v7108_v39  ;;  %v719_v7 = vadd.f32 %v718_v29, %v8514_v20 }
 0x14c   : > { %v976_v42 = vpop.f32.mrf.mxu0 }
 0x14d   : > { %7060 = vmatmul.msk.f32.gmra.mxu1 %vm578_vm1, %v976_v42 }
 0x14e   : > { %7080 = vmatmul.msk.f32.gmra.mxu2 %vm405_vm0, %v7070_v23  ;;  %v7140_v23 = vld [vmem:[%s11743_s1 + $0x210] sm:$0xff] }
 0x151   : > { %v8533_v26 = vpop.f32.mrf.mxu2  ;;  %v8683_v34 = vpop.f32.mrf.mxu3 }
 0x152   : > { %7119 = vmatmul.msk.f32.gmra.mxu0 %vm405_vm0, %v7109_v43 }
 0x154   : > { %v979_v46 = vpop.f32.mrf.mxu0 }
 0x155   : > { %7061 = vmatmul.msk.f32.gmra.mxu1 %vm578_vm1, %v979_v46 }
 0x156   : > { %7081 = vmatmul.msk.f32.gmra.mxu2 %vm405_vm0, %v7071_v30 }
 0x159   : > { %v8554_v33 = vpop.f32.mrf.mxu2  ;;  %v8691_v39 = vpop.f32.mrf.mxu3 }
 0x15a   : > { %7120 = vmatmul.msk.f32.gmra.mxu0 %vm405_vm0, %v7110_v47 }
 0x15c   : > { %v982_v50 = vpop.f32.mrf.mxu0 }
 0x15d   : > { %7062 = vmatmul.msk.f32.gmra.mxu1 %vm578_vm1, %v982_v50  ;;  %v7155_v50 = vld [vmem:[%s11744_s2 + $0x98] sm:$0xff] }
 0x15e   : > { %7082 = vmatmul.msk.f32.gmra.mxu2 %vm405_vm0, %v7072_v36 }
 0x161   : > { %v8565_v37 = vpop.f32.mrf.mxu2 }
 0x164   : > { %v985_v53 = vpop.f32.mrf.mxu0 }
 0x165   : > { %7063 = vmatmul.msk.f32.gmra.mxu1 %vm578_vm1, %v985_v53 }
 0x166   : > { %7083 = vmatmul.msk.f32.gmra.mxu2 %vm405_vm0, %v7073_v40 }
 0x169   : > { %v8576_v41 = vpop.f32.mrf.mxu2 }
 0x16e   : > { %7084 = vmatmul.msk.f32.gmra.mxu2 %vm405_vm0, %v7074_v44 }
 0x16f   : > { %v988_v56 = vpop.f32.mrf.mxu0 }
 0x170   : > { %7064 = vmatmul.msk.f32.gmra.mxu1 %vm578_vm1, %v988_v56 }
 0x171   : > { %v791_v45 = vpop.f32.mrf.mxu2 }
 0x172   : > { %7025 = vmatmul.msk.f32.vlgmr.msrb.gmra.mxu3 %vm578_vm1, %v791_v45  ;;  %v8696_v45 = vpop.f32.mrf.mxu3 }
 0x176   : > { %7085 = vmatmul.msk.f32.gmra.mxu2 %vm405_vm0, %v7075_v48  ;;  %v7156_v48 = vld [vmem:[%s11744_s2 + $0xa0] sm:$0xff] }
 0x177   : > { %v991_v59 = vpop.f32.mrf.mxu0  ;;  %1584 = vmatpush.msrb.mxu3 %v7156_v48 }
 0x178   : > { %7065 = vmatmul.msk.f32.gmra.mxu1 %vm578_vm1, %v991_v59 }
 0x179   : > { %v794_v49 = vpop.f32.mrf.mxu2  ;;  %1585 = vmatpush.msrb.mxu3 %v7155_v50 }
 0x17a   : > { %7026 = vmatmul.msk.f32.gmra.mxu3 %vm578_vm1, %v794_v49  ;;  %v8704_v49 = vpop.f32.mrf.mxu3 }
 0x17e   : > { %7086 = vmatmul.msk.f32.gmra.mxu2 %vm405_vm0, %v7076_v51  ;;  %v7154_v51 = vld [vmem:[%s11744_s2 + $0x90] sm:$0xff] }
 0x17f   : > { %v994_v62 = vpop.f32.mrf.mxu0  ;;  %1586 = vmatpush.msrb.mxu3 %v7154_v51 }
 0x180   : > { %7066 = vmatmul.msk.f32.gmra.mxu1 %vm578_vm1, %v994_v62 }
 0x181   : > { %v797_v52 = vpop.f32.mrf.mxu2 }
 0x182   : > { %7027 = vmatmul.msk.f32.gmra.mxu3 %vm578_vm1, %v797_v52 }
 0x186   : > { %7087 = vmatmul.msk.f32.gmra.mxu2 %vm405_vm0, %v7077_v54  ;;  %v8714_v54 = vpop.f32.mrf.mxu1 }
 0x187   : > { %v997_v4 = vpop.f32.mrf.mxu0 }
 0x188   : > { %7067 = vmatmul.msk.f32.gmra.mxu1 %vm578_vm1, %v997_v4 }
 0x189   : > { %v800_v55 = vpop.f32.mrf.mxu2 }
 0x18a   : > { %7028 = vmatmul.msk.f32.gmra.mxu3 %vm578_vm1, %v800_v55 }
 0x18e   : > { %7144 = vmatmul.msk.f32.vlgmr.msrb.gmra.mxu2 %vm405_vm0, %v7134_v57 }
 0x18f   : > { %v1328_v10 = vpop.f32.mrf.mxu0 }
 0x190   : > { %7124 = vmatmul.msk.f32.vlgmr.msrb.gmra.mxu1 %vm578_vm1, %v1328_v10 }
 0x191   : > { %v803_v58 = vpop.f32.mrf.mxu2 }
 0x192   : > { %7029 = vmatmul.msk.f32.gmra.mxu3 %vm578_vm1, %v803_v58  ;;  %v8721_v58 = vpop.f32.mrf.mxu1 }
 0x196   : > { %7145 = vmatmul.msk.f32.gmra.mxu2 %vm405_vm0, %v7135_v60 }
 0x197   : > { %v1331_v14 = vpop.f32.mrf.mxu0 }
 0x198   : > { %7125 = vmatmul.msk.f32.gmra.mxu1 %vm578_vm1, %v1331_v14 }
 0x199   : > { %v806_v61 = vpop.f32.mrf.mxu2 }
 0x19a   : > { %7030 = vmatmul.msk.f32.gmra.mxu3 %vm578_vm1, %v806_v61  ;;  %v8726_v61 = vpop.f32.mrf.mxu1 }
 0x19e   : > { %7146 = vmatmul.msk.f32.gmra.mxu2 %vm405_vm0, %v7136_v0 }
 0x19f   : > { %v1334_v21 = vpop.f32.mrf.mxu0 }
 0x1a0   : > { %7126 = vmatmul.msk.f32.gmra.mxu1 %vm578_vm1, %v1334_v21 }
 0x1a1   : > { %v809_v3 = vpop.f32.mrf.mxu2 }
 0x1a2   : > { %7031 = vmatmul.msk.f32.gmra.mxu3 %vm578_vm1, %v809_v3  ;;  %v8732_v1 = vpop.f32.mrf.mxu1 }
 0x1a6   : > { %7147 = vmatmul.msk.f32.gmra.mxu2 %vm405_vm0, %v7137_v6 }
 0x1a7   : > { %v1337_v25 = vpop.f32.mrf.mxu0 }
 0x1a8   : > { %7127 = vmatmul.msk.f32.gmra.mxu1 %vm578_vm1, %v1337_v25 }
 0x1a9   : > { %v812_v9 = vpop.f32.mrf.mxu2 }
 0x1aa   : > { %7032 = vmatmul.msk.f32.gmra.mxu3 %vm578_vm1, %v812_v9 }
 0x1ae   : > { %7148 = vmatmul.msk.f32.gmra.mxu2 %vm405_vm0, %v7138_v11 }
 0x1af   : > { %v1340_v31 = vpop.f32.mrf.mxu0 }
 0x1b0   : > { %7128 = vmatmul.msk.f32.gmra.mxu1 %vm578_vm1, %v1340_v31 }
 0x1b1   : > { %v815_v13 = vpop.f32.mrf.mxu2 }
 0x1b2   : > { %7033 = vmatmul.msk.f32.gmra.mxu3 %vm578_vm1, %v815_v13 }
 0x1b6   : > { %7149 = vmatmul.msk.f32.gmra.mxu2 %vm405_vm0, %v7139_v17 }
 0x1b7   : > { %v1343_v36 = vpop.f32.mrf.mxu0 }
 0x1b8   : > { %7129 = vmatmul.msk.f32.gmra.mxu1 %vm578_vm1, %v1343_v36 }
 0x1b9   : > { %v818_v18 = vpop.f32.mrf.mxu2 }
 0x1ba   : > { %7034 = vmatmul.msk.f32.gmra.mxu3 %vm578_vm1, %v818_v18  ;;  %v8739_v6 = vpop.f32.mrf.mxu1 }
 0x1be   : > { %7150 = vmatmul.msk.f32.gmra.mxu2 %vm405_vm0, %v7140_v23 }
 0x1bf   : > { %v1346_v42 = vpop.f32.mrf.mxu0 }
 0x1c0   : > { %7130 = vmatmul.msk.f32.gmra.mxu1 %vm578_vm1, %v1346_v42 }
 0x1c1   : > { %v1149_v24 = vpop.f32.mrf.mxu2 }
 0x1c2   : > { %7091 = vmatmul.msk.f32.vlgmr.msra.gmra.mxu3 %vm578_vm1, %v1149_v24  ;;  %v8745_v11 = vpop.f32.mrf.mxu1 }
 0x1c6   : > { %7151 = vmatmul.msk.f32.gmra.mxu2 %vm405_vm0, %v7141_v28 }
 0x1c7   : > { %v1349_v44 = vpop.f32.mrf.mxu0 }
 0x1c8   : > { %7131 = vmatmul.msk.f32.gmra.mxu1 %vm578_vm1, %v1349_v44 }
 0x1c9   : > { %v1152_v30 = vpop.f32.mrf.mxu2 }
 0x1ca   : > { %7092 = vmatmul.msk.f32.gmra.mxu3 %vm578_vm1, %v1152_v30  ;;  %v8752_v17 = vpop.f32.mrf.mxu1 }
 0x1ce   : > { %7152 = vmatmul.msk.f32.gmra.mxu2 %vm405_vm0, %v7142_v32 }
 0x1cf   : > { %v1352_v47 = vpop.f32.mrf.mxu0 }
 0x1d0   : > { %7132 = vmatmul.msk.f32.gmra.mxu1 %vm578_vm1, %v1352_v47 }
 0x1d1   : > { %v1155_v35 = vpop.f32.mrf.mxu2 }
 0x1d2   : > { %7093 = vmatmul.msk.f32.gmra.mxu3 %vm578_vm1, %v1155_v35  ;;  %v8755_v21 = vpop.f32.mrf.mxu1 }
 0x1d6   : > { %7153 = vmatmul.msk.f32.gmra.mxu2 %vm405_vm0, %v7143_v38 }
 0x1d7   : > { %v1355_v53 = vpop.f32.mrf.mxu0 }
 0x1d8   : > { %7133 = vmatmul.msk.f32.gmra.mxu1 %vm578_vm1, %v1355_v53 }
 0x1d9   : > { %v1158_v40 = vpop.f32.mrf.mxu2 }
 0x1da   : > { %7094 = vmatmul.msk.f32.gmra.mxu3 %vm578_vm1, %v1158_v40  ;;  %v8759_v25 = vpop.f32.mrf.mxu1 }
 0x1e1   : > { %v1161_v43 = vpop.f32.mrf.mxu2 }
 0x1e2   : > { %7095 = vmatmul.msk.f32.gmra.mxu3 %vm578_vm1, %v1161_v43  ;;  %v1066_v30 = vpop.f32.mrf.mxu1 }
 0x1e9   : > { %v1164_v46 = vpop.f32.mrf.mxu2 }
 0x1ea   : > { %7096 = vmatmul.msk.f32.gmra.mxu3 %vm578_vm1, %v1164_v46 }
 0x1ed   : > { %v1069_v36 = vpop.f32.mrf.mxu1 }
 0x1f1   : > { %v1167_v52 = vpop.f32.mrf.mxu2 }
 0x1f2   : > { %7097 = vmatmul.msk.f32.gmra.mxu3 %vm578_vm1, %v1167_v52 }
 0x1f5   : > { %v8716_v55 = vpop.f32.mrf.mxu3  ;;  %v1072_v42 = vpop.f32.mrf.mxu1 }
 0x1f9   : > { %v1170_v56 = vpop.f32.mrf.mxu2 }
 0x1fa   : > { %7098 = vmatmul.msk.f32.gmra.mxu3 %vm578_vm1, %v1170_v56 }
 0x1fd   : > { %v8719_v57 = vpop.f32.mrf.mxu3  ;;  %v1075_v44 = vpop.f32.mrf.mxu1 }
 0x201   : > { %v1173_v59 = vpop.f32.mrf.mxu2 }
 0x202   : > { %7099 = vmatmul.msk.f32.gmra.mxu3 %vm578_vm1, %v1173_v59 }
 0x205   : > { %v8724_v60 = vpop.f32.mrf.mxu3  ;;  %v1078_v47 = vpop.f32.mrf.mxu1 }
 0x209   : > { %v1176_v62 = vpop.f32.mrf.mxu2 }
 0x20a   : > { %7100 = vmatmul.msk.f32.gmra.mxu3 %vm578_vm1, %v1176_v62 }
 0x20d   : > { %v8729_v63 = vpop.f32.mrf.mxu3  ;;  %v8774_v51 = vpop.f32.mrf.mxu1 }
 0x20e   : > { %11756 = vst [vmem:[#allocation4_spill] sm:$0xff] %v8774_v51 }
 0x211   : > { %v1507_v0 = vpop.f32.mrf.mxu2 }
 0x212   : > { %7157 = vmatmul.msk.f32.vlgmr.msrb.gmra.mxu3 %vm578_vm1, %v1507_v0 }
 0x215   : > { %v884_v3 = vpop.f32.mrf.mxu3  ;;  %v8776_v53 = vpop.f32.mrf.mxu1 }
 0x216   : > { %v8736_v4 = vadd.f32 %v884_v3, %v716_v2  ;;  %11757 = vst [vmem:[#allocation5_spill] sm:$0xff] %v8776_v53 }
 0x219   : > { %v1510_v5 = vpop.f32.mrf.mxu2 }
 0x21a   : > { %7158 = vmatmul.msk.f32.gmra.mxu3 %vm578_vm1, %v1510_v5 }
 0x21d   : > { %v887_v8 = vpop.f32.mrf.mxu3  ;;  %v8778_v59 = vpop.f32.mrf.mxu1 }
 0x21e   : > { %v8742_v9 = vadd.f32 %v887_v8, %v719_v7  ;;  %11758 = vst [vmem:[#allocation6_spill] sm:$0xff] %v8778_v59 }
 0x221   : > { %v1513_v10 = vpop.f32.mrf.mxu2 }
 0x222   : > { %7159 = vmatmul.msk.f32.gmra.mxu3 %vm578_vm1, %v1513_v10 }
 0x225   : > { %v8747_v13 = vpop.f32.mrf.mxu3  ;;  %v8782_v0 = vpop.f32.mrf.mxu1 }
 0x226   : > { %11760 = vst [vmem:[#allocation8_spill] sm:$0xff] %v8782_v0 }
 0x229   : > { %v1516_v16 = vpop.f32.mrf.mxu2 }
 0x22a   : > { %7160 = vmatmul.msk.f32.gmra.mxu3 %vm578_vm1, %v1516_v16  ;;  %v7206_v16 = vld [vmem:[%s11746_s4 + $0x38] sm:$0xff] }
 0x22b   : > { %1920 = vmatpush.msra.mxu2 %v7206_v16  ;;  %v728_v16 = vadd.f32 %v8696_v45, %v8565_v37 }
 0x22d   : > { %v8750_v14 = vpop.f32.mrf.mxu3  ;;  %v8788_v5 = vpop.f32.mrf.mxu1 }
 0x231   : > { %v1519_v18 = vpop.f32.mrf.mxu2 }
 0x232   : > { %7161 = vmatmul.msk.f32.gmra.mxu3 %vm578_vm1, %v1519_v18 }
 0x235   : > { %v896_v20 = vpop.f32.mrf.mxu3  ;;  %v1424_v8 = vpop.f32.mrf.mxu1 }
 0x236   : > { %v910_v53 = vadd.f32 %v896_v20, %v728_v16 }
 0x239   : > { %v1522_v22 = vpop.f32.mrf.mxu2 }
 0x23a   : > { %7162 = vmatmul.msk.f32.gmra.mxu3 %vm578_vm1, %v1522_v22 }
 0x23d   : > { %v899_v23 = vpop.f32.mrf.mxu3  ;;  %v1427_v18 = vpop.f32.mrf.mxu1 }
 0x241   : > { %v1525_v24 = vpop.f32.mrf.mxu2 }
 0x242   : > { %7163 = vmatmul.msk.f32.gmra.mxu3 %vm578_vm1, %v1525_v24  ;;  %v7205_v24 = vld [vmem:[%s11746_s4 + $0x30] sm:$0xff] }
 0x243   : > { %1921 = vmatpush.msra.mxu2 %v7205_v24  ;;  %v725_v24 = vadd.f32 %v8691_v39, %v8554_v33  ;;  %v713_v33 = vadd.f32 %v8732_v1, %v8535_v27  ;;  %v1085_v27 = vadd.f32 %v8759_v25, %v8736_v4 }
 0x245   : > { %v8761_v28 = vpop.f32.mrf.mxu3 }
 0x246   : > { %11754 = vst [vmem:[#allocation2_spill] sm:$0xff] %v8761_v28  ;;  %v1089_v28 = vadd.f32 %v1075_v44, %v910_v53 }
 0x249   : > { %v1528_v29 = vpop.f32.mrf.mxu2 }
 0x24a   : > { %7164 = vmatmul.msk.f32.gmra.mxu3 %vm578_vm1, %v1528_v29  ;;  %v7204_v29 = vld [vmem:[%s11746_s4 + $0x28] sm:$0xff] }
 0x24b   : > { %1922 = vmatpush.msra.mxu2 %v7204_v29  ;;  %v722_v29 = vadd.f32 %v8683_v34, %v8533_v26  ;;  %v905_v26 = vadd.f32 %v8729_v63, %v713_v33  ;;  %v1086_v34 = vadd.f32 %v1066_v30, %v8742_v9 }
 0x24d   : > { %v8764_v31 = vpop.f32.mrf.mxu3  ;;  %v908_v59 = vadd.f32 %v8747_v13, %v722_v29  ;;  %v1084_v63 = vadd.f32 %v8755_v21, %v905_v26  ;;  %v11773_v29 = vld [vmem:[#allocation4_spill] sm:$0xff] }
 0x24e   : > { %11755 = vst [vmem:[#allocation3_spill] sm:$0xff] %v8764_v31 }
 0x24f   : > { %v1087_v39 = vadd.f32 %v1069_v36, %v908_v59 }
 0x251   : > { %v1531_v32 = vpop.f32.mrf.mxu2 }
 0x252   : > { %7165 = vmatmul.msk.f32.gmra.mxu3 %vm578_vm1, %v1531_v32  ;;  %v7203_v32 = vld [vmem:[%s11746_s4 + $0x20] sm:$0xff] }
 0x253   : > { %1923 = vmatpush.msra.mxu2 %v7203_v32 }
 0x255   : > { %v8767_v35 = vpop.f32.mrf.mxu3 }
 0x259   : > { %v1534_v38 = vpop.f32.mrf.mxu2 }
 0x25a   : > { %7166 = vmatmul.msk.f32.gmra.mxu3 %vm578_vm1, %v1534_v38  ;;  %v1430_v38 = vpop.f32.mrf.mxu1 }
 0x25d   : > { %v8770_v40 = vpop.f32.mrf.mxu3 }
 0x25e   : > { %v1263_v25 = vadd.f32 %v8770_v40, %v1084_v63  ;;  %v1661_v63 = vld [vmem:[%s11745_s3 + $0x18] sm:$0xff] }
 0x262   : > { %v1433_v51 = vpop.f32.mrf.mxu1 }
 0x265   : > { %v8772_v43 = vpop.f32.mrf.mxu3 }
 0x266   : > { %v1264_v30 = vadd.f32 %v8772_v43, %v1085_v27 }
 0x268   : > { %v1443_v21 = vadd.f32 %v8788_v5, %v1264_v30  ;;  %v1662_v30 = vld [vmem:[%s11745_s3 + $0x20] sm:$0xff] }
 0x26d   : > { %v1245_v46 = vpop.f32.mrf.mxu3 }
 0x275   : > { %v1248_v48 = vpop.f32.mrf.mxu3 }
 0x276   : > { %v1266_v13 = vadd.f32 %v1248_v48, %v1087_v39 }
 0x27d   : > { %v1251_v50 = vpop.f32.mrf.mxu3 }
 0x285   : > { %v1254_v52 = vpop.f32.mrf.mxu3 }
 0x286   : > { %v1268_v45 = vadd.f32 %v1254_v52, %v1089_v28  ;;  %v11766_v52 = vld [vmem:[#allocation8_spill] sm:$0xff] }
 0x288   : > { %v1447_v20 = vadd.f32 %v1433_v51, %v1268_v45 }
 0x28d   : > { %v1257_v56 = vpop.f32.mrf.mxu3 }
 0x295   : > { %v8780_v62 = vpop.f32.mrf.mxu3 }
 0x296   : > { %11759 = vst [vmem:[#allocation7_spill] sm:$0xff] %v8780_v62 }
 0x29d   : > { %v8784_v2 = vpop.f32.mrf.mxu3 }
 0x29e   : > { %11761 = vst [vmem:[#allocation9_spill] sm:$0xff] %v8784_v2 }
 0x2a5   : > { %v8786_v3 = vpop.f32.mrf.mxu3 }
 0x2a6   : > { %11762 = vst [vmem:[#allocation10_spill] sm:$0xff] %v8786_v3  ;;  %v731_v3 = vadd.f32 %v8704_v49, %v8576_v41  ;;  %v710_v49 = vadd.f32 %v8726_v61, %v8512_v19  ;;  %v704_v19 = vadd.f32 %v8714_v54, %v8488_v12 }
 0x2a8   : > { %v911_v32 = vadd.f32 %v899_v23, %v731_v3  ;;  %v707_v23 = vadd.f32 %v8721_v58, %v8499_v15  ;;  %v904_v28 = vadd.f32 %v8724_v60, %v710_v49  ;;  %v1445_v15 = vadd.f32 %v1427_v18, %v1266_v13 }
 0x2aa   : > { %v1090_v37 = vadd.f32 %v1078_v47, %v911_v32  ;;  %v903_v61 = vadd.f32 %v8719_v57, %v707_v23  ;;  %v1083_v4 = vadd.f32 %v8752_v17, %v904_v28  ;;  %v11765_v17 = vld [vmem:[#allocation3_spill] sm:$0xff] }
 0x2ac   : > { %v1269_v41 = vadd.f32 %v1257_v56, %v1090_v37  ;;  %v1082_v54 = vadd.f32 %v8745_v11, %v903_v61  ;;  %v1262_v57 = vadd.f32 %v8767_v35, %v1083_v4  ;;  %v1442_v11 = vadd.f32 %v11766_v52, %v1263_v25  ;;  %v11774_v37 = vld [vmem:[#allocation9_spill] sm:$0xff]  ;;  %v7181_v61 = vld [vmem:[%s11745_s3 + $0x70] sm:$0xff]  ;;  %v7231_v52 = vld [vmem:[%s11745_s3 + $0xc0] sm:$0xff] }
 0x2ad   : > { %v8790_v7 = vpop.f32.mrf.mxu3  ;;  %v7185_v4 = vld [vmem:[%s11745_s3 + $0x90] sm:$0xff]  ;;  %v1665_v25 = vld [vmem:[%s11745_s3 + $0x38] sm:$0xff] }
 0x2ae   : > { %11763 = vst [vmem:[#allocation11_spill] sm:$0xff] %v8790_v7  ;;  %v909_v7 = vadd.f32 %v8750_v14, %v725_v24  ;;  %v1436_v14 = vpop.f32.mrf.mxu1  ;;  %v1261_v40 = vadd.f32 %v11765_v17, %v1082_v54  ;;  %v7188_v54 = vld [vmem:[%s11745_s3 + $0xa8] sm:$0xff]  ;;  %v1762_v17 = vld [vmem:[%s11746_s4 + $0x10] sm:$0xff] }
 0x2af   : > { %v1448_v36 = vadd.f32 %v1436_v14, %v1269_v41  ;;  %v11775_v41 = vld [vmem:[#allocation7_spill] sm:$0xff] }
 0x2b0   : > { %v1088_v0 = vadd.f32 %v1072_v42, %v909_v7  ;;  %v1265_v42 = vadd.f32 %v1245_v46, %v1086_v34  ;;  %v902_v46 = vadd.f32 %v8716_v55, %v704_v19  ;;  %v1660_v19 = vld [vmem:[%s11745_s3 + $0x10] sm:$0xff] }
 0x2b2   : > { %v1267_v31 = vadd.f32 %v1251_v50, %v1088_v0  ;;  %v1081_v55 = vadd.f32 %v8739_v6, %v902_v46  ;;  %v11769_v6 = vld [vmem:[#allocation6_spill] sm:$0xff]  ;;  %v1664_v46 = vld [vmem:[%s11745_s3 + $0x30] sm:$0xff] }
 0x2b4   : > { %v1446_v1 = vadd.f32 %v1430_v38, %v1267_v31  ;;  %v1444_v31 = vadd.f32 %v1424_v8, %v1265_v42  ;;  %v1658_v42 = vld [vmem:[%s11745_s3] sm:$0xff] }
 0x2b5   : > { %v8792_v10 = vpop.f32.mrf.mxu3  ;;  %v11770_v3 = vld [vmem:[#allocation11_spill] sm:$0xff] }
 0x2b6   : > { %11764 = vst [vmem:[#allocation12_spill] sm:$0xff] %v8792_v10  ;;  %v1621_v5 = vadd.f32 %v11770_v3, %v1442_v11  ;;  %v1760_v11 = vld [vmem:[%s11746_s4] sm:$0xff] }
 0x2b8   : > { %v1641_v33 = vmul.f32 -1.3153, %v1621_v5  ;;  %vm1631_vm8 = vcmp.gt.f32.partialorder %v1621_v5, 0.0 }
 0x2ba   : > { %v8879_v13 = vsel %vm1631_vm8, %v1621_v5, %v1641_v33  ;;  %v7236_v5 = vld [vmem:[%s11745_s3 + $0xe8] sm:$0xff]  ;;  %v7241_v33 = vld [vmem:[%s11745_s3 + $0x110] sm:$0xff] }
 0x2bd   : > { %v1603_v22 = vpop.f32.mrf.mxu3  ;;  %v11767_v53 = vld [vmem:[#allocation12_spill] sm:$0xff] }
 0x2be   : > { %v1623_v43 = vadd.f32 %v1603_v22, %v1444_v31  ;;  %v1622_v35 = vadd.f32 %v11767_v53, %v1443_v21  ;;  %v11772_v22 = vld [vmem:[#allocation10_spill] sm:$0xff]  ;;  %v7186_v31 = vld [vmem:[%s11745_s3 + $0x98] sm:$0xff]  ;;  %v7189_v21 = vld [vmem:[%s11745_s3 + $0xb0] sm:$0xff] }
 0x2bf   : > { %v7232_v53 = vld [vmem:[%s11745_s3 + $0xc8] sm:$0xff] }
 0x2c0   : > { %v1643_v7 = vmul.f32 -1.3153, %v1623_v43  ;;  %vm1633_vm6 = vcmp.gt.f32.partialorder %v1623_v43, 0.0  ;;  %v1642_v16 = vmul.f32 -1.3153, %v1622_v35  ;;  %vm1632_vm7 = vcmp.gt.f32.partialorder %v1622_v35, 0.0 }
 0x2c2   : > { %v8868_v39 = vsel %vm1633_vm6, %v1623_v43, %v1643_v7  ;;  %v8874_v34 = vsel %vm1632_vm7, %v1622_v35, %v1642_v16  ;;  %v1763_v43 = vld [vmem:[%s11746_s4 + $0x18] sm:$0xff]  ;;  %v7233_v35 = vld [vmem:[%s11745_s3 + $0xd0] sm:$0xff]  ;;  %v7239_v16 = vld [vmem:[%s11745_s3 + $0x100] sm:$0xff] }
 0x2c3   : > { %2009 = vmatpush.msra.mxu3 %v1763_v43  ;;  %v7237_v7 = vld [vmem:[%s11745_s3 + $0xf0] sm:$0xff]  ;;  %v7318_v43 = vld [vmem:[%s11745_s3 + $0x1b8] sm:$0xff] }
 0x2c5   : > { %v1606_v62 = vpop.f32.mrf.mxu3  ;;  %2010 = vmatpush.msra.mxu3 %v1762_v17 }
 0x2c6   : > { %v1624_v47 = vadd.f32 %v1606_v62, %v1445_v15  ;;  %v11768_v62 = vld [vmem:[#allocation2_spill] sm:$0xff] }
 0x2c7   : > { %v1260_v0 = vadd.f32 %v11768_v62, %v1081_v55  ;;  %v7183_v15 = vld [vmem:[%s11745_s3 + $0x80] sm:$0xff]  ;;  %v7190_v55 = vld [vmem:[%s11745_s3 + $0xb8] sm:$0xff] }
 0x2c8   : > { %v1644_v56 = vmul.f32 -1.3153, %v1624_v47  ;;  %vm1634_vm5 = vcmp.gt.f32.partialorder %v1624_v47, 0.0 }
 0x2c9   : > { %v1439_v32 = vadd.f32 %v11773_v29, %v1260_v0 }
 0x2ca   : > { %v8861_v24 = vsel %vm1634_vm5, %v1624_v47, %v1644_v56  ;;  %v1666_v47 = vld [vmem:[%s11745_s3 + $0x40] sm:$0xff]  ;;  %v7234_v56 = vld [vmem:[%s11745_s3 + $0xd8] sm:$0xff] }
 0x2cb   : > { %v1618_v49 = vadd.f32 %v11775_v41, %v1439_v32  ;;  %v7240_v32 = vld [vmem:[%s11745_s3 + $0x108] sm:$0xff] }
 0x2cd   : > { %v1609_v2 = vpop.f32.mrf.mxu3  ;;  %vm1628_vm11 = vcmp.gt.f32.partialorder %v1618_v49, 0.0 }
 0x2ce   : > { %v1625_v58 = vadd.f32 %v1609_v2, %v1446_v1  ;;  %v1441_v2 = vadd.f32 %v11769_v6, %v1262_v57  ;;  %v7179_v1 = vld [vmem:[%s11745_s3 + $0x60] sm:$0xff]  ;;  %v1668_v57 = vld [vmem:[%s11745_s3 + $0x50] sm:$0xff] }
 0x2cf   : > { %v7235_v6 = vld [vmem:[%s11745_s3 + $0xe0] sm:$0xff] }
 0x2d0   : > { %v1645_v50 = vmul.f32 -1.3153, %v1625_v58  ;;  %vm1635_vm4 = vcmp.gt.f32.partialorder %v1625_v58, 0.0  ;;  %v1620_v38 = vadd.f32 %v11772_v22, %v1441_v2 }
 0x2d2   : > { %v8854_v8 = vsel %vm1635_vm4, %v1625_v58, %v1645_v50  ;;  %v1640_v26 = vmul.f32 -1.3153, %v1620_v38  ;;  %vm1630_vm9 = vcmp.gt.f32.partialorder %v1620_v38, 0.0  ;;  %v1663_v58 = vld [vmem:[%s11745_s3 + $0x28] sm:$0xff]  ;;  %v1669_v50 = vld [vmem:[%s11745_s3 + $0x58] sm:$0xff] }
 0x2d4   : > { %v8884_v23 = vsel %vm1630_vm9, %v1620_v38, %v1640_v26  ;;  %v7258_v26 = vld [vmem:[%s11746_s4 + $0x58] sm:$0xff] }
 0x2d5   : > { %v1612_v10 = vpop.f32.mrf.mxu3 }
 0x2d6   : > { %v1626_v44 = vadd.f32 %v1612_v10, %v1447_v20  ;;  %v11771_v10 = vld [vmem:[#allocation5_spill] sm:$0xff]  ;;  %v1638_v20 = vmul.f32 -1.3153, %v1618_v49 }
 0x2d7   : > { %v1440_v18 = vadd.f32 %v11771_v10, %v1261_v40  ;;  %v1761_v40 = vld [vmem:[%s11746_s4 + $0x8] sm:$0xff] }
 0x2d8   : > { %v1646_v48 = vmul.f32 -1.3153, %v1626_v44  ;;  %vm1636_vm3 = vcmp.gt.f32.partialorder %v1626_v44, 0.0  ;;  %v8897_v27 = vsel %vm1628_vm11, %v1618_v49, %v1638_v20  ;;  %2011 = vmatpush.msra.mxu3 %v1761_v40  ;;  %v7242_v49 = vld [vmem:[%s11745_s3 + $0x118] sm:$0xff]  ;;  %v7319_v40 = vld [vmem:[%s11745_s3 + $0x1c0] sm:$0xff]  ;;  %vm3369_vm11 = vcmask 326656  }
 0x2d9   : > { %v1619_v45 = vadd.f32 %v11774_v37, %v1440_v18  ;;  %v7238_v18 = vld [vmem:[%s11745_s3 + $0xf8] sm:$0xff] }
 0x2da   : > { %v8846_v59 = vsel %vm1636_vm3, %v1626_v44, %v1646_v48  ;;  %v7180_v44 = vld [vmem:[%s11745_s3 + $0x68] sm:$0xff]  ;;  %v7187_v48 = vld [vmem:[%s11745_s3 + $0xa0] sm:$0xff]  ;;  %2012 = vmatpush.msra.mxu3 %v1760_v11 }
 0x2db   : > { %v1639_v14 = vmul.f32 -1.3153, %v1619_v45  ;;  %vm1629_vm10 = vcmp.gt.f32.partialorder %v1619_v45, 0.0 }
 0x2dd   : > { %v1615_v9 = vpop.f32.mrf.mxu3  ;;  %v8889_v28 = vsel %vm1629_vm10, %v1619_v45, %v1639_v14  ;;  %v7256_v14 = vld [vmem:[%s11746_s4 + $0x48] sm:$0xff]  ;;  %vm3140_vm10 = vcmask 785408  }
 0x2de   : > { %v1627_v60 = vadd.f32 %v1615_v9, %v1448_v36  ;;  %v1659_v36 = vld [vmem:[%s11745_s3 + $0x8] sm:$0xff]  ;;  %v7182_v9 = vld [vmem:[%s11745_s3 + $0x78] sm:$0xff] }
 0x2e0   : > { %vm1637_vm2 = vcmp.gt.f32.partialorder %v1627_v60, 0.0  ;;  %v1647_v12 = vmul.f32 -1.3153, %v1627_v60 }
 0x2e2   : > { %v8838_v51 = vsel %vm1637_vm2, %v1627_v60, %v1647_v12  ;;  %v7184_v60 = vld [vmem:[%s11745_s3 + $0x88] sm:$0xff] }
 0x2e3   : > { %1713 = vmatpush.msra.mxu0 %v8838_v51  ;;  %1819 = vmatpush.msra.mxu1 %v8838_v51  ;;  %v1667_v12 = vld [vmem:[%s11745_s3 + $0x48] sm:$0xff] }
 0x2e4   : > { %2313 = vmatpush.msrb.mxu2 %v8838_v51 }
 0x2e5   : > { %1714 = vmatpush.msra.mxu0 %v8846_v59  ;;  %1820 = vmatpush.msra.mxu1 %v8846_v59 }
 0x2e6   : > { %2314 = vmatpush.msrb.mxu2 %v8846_v59 }
 0x2e7   : > { %1715 = vmatpush.msra.mxu0 %v8854_v8  ;;  %1821 = vmatpush.msra.mxu1 %v8854_v8 }
 0x2e8   : > { %2315 = vmatpush.msrb.mxu2 %v8854_v8 }
 0x2e9   : > { %1716 = vmatpush.msra.mxu0 %v8861_v24  ;;  %1822 = vmatpush.msra.mxu1 %v8861_v24 }
 0x2ea   : > { %2316 = vmatpush.msrb.mxu2 %v8861_v24 }
 0x2eb   : > { %1717 = vmatpush.msra.mxu0 %v8868_v39  ;;  %1823 = vmatpush.msra.mxu1 %v8868_v39 }
 0x2ec   : > { %2317 = vmatpush.msrb.mxu2 %v8868_v39 }
 0x2ed   : > { %1718 = vmatpush.msra.mxu0 %v8874_v34  ;;  %1824 = vmatpush.msra.mxu1 %v8874_v34 }
 0x2ee   : > { %2318 = vmatpush.msrb.mxu2 %v8874_v34 }
 0x2ef   : > { %1719 = vmatpush.msra.mxu0 %v8879_v13  ;;  %1825 = vmatpush.msra.mxu1 %v8879_v13 }
 0x2f0   : > { %2319 = vmatpush.msrb.mxu2 %v8879_v13 }
 0x2f1   : > { %1720 = vmatpush.msra.mxu0 %v8884_v23  ;;  %1826 = vmatpush.msra.mxu1 %v8884_v23 }
 0x2f2   : > { %2320 = vmatpush.msrb.mxu2 %v8884_v23 }
 0x2f3   : > { %1721 = vmatpush.msra.mxu0 %v8889_v28  ;;  %1827 = vmatpush.msra.mxu1 %v8889_v28 }
 0x2f4   : > { %2321 = vmatpush.msrb.mxu2 %v8889_v28 }
 0x2f5   : > { %1722 = vmatpush.msra.mxu0 %v8897_v27  ;;  %1828 = vmatpush.msra.mxu1 %v8897_v27 }
 0x2f6   : > { %2322 = vmatpush.msrb.mxu2 %v8897_v27  ;;  %7167 = vmatmul.msk.f32.vlgmr.msra.gmra.mxu0 %vm1670_vm12, %v1658_v42 }
 0x2f7   : > { %7191 = vmatmul.msk.f32.vlgmr.msra.gmra.mxu1 %vm1670_vm12, %v7179_v1  ;;  %2105 = vmatpush.msrb.mxu0 %v8838_v51 }
 0x2f8   : > { %2205 = vmatpush.msrb.mxu1 %v7258_v26  ;;  %v7295_v26 = vld [vmem:[%s11746_s4 + $0x60] sm:$0xff] }
 0x2f9   : > { %2106 = vmatpush.msrb.mxu0 %v8846_v59 }
 0x2fb   : > { %2107 = vmatpush.msrb.mxu0 %v8854_v8 }
 0x2fd   : > { %2108 = vmatpush.msrb.mxu0 %v8861_v24 }
 0x2fe   : > { %7168 = vmatmul.msk.f32.gmra.mxu0 %vm1670_vm12, %v1659_v36 }
 0x2ff   : > { %7192 = vmatmul.msk.f32.gmra.mxu1 %vm1670_vm12, %v7180_v44  ;;  %2109 = vmatpush.msrb.mxu0 %v8868_v39  ;;  %v7312_v44 = vld [vmem:[%s11745_s3 + $0x188] sm:$0xff] }
 0x301   : > { %2110 = vmatpush.msrb.mxu0 %v8874_v34 }
 0x303   : > { %2111 = vmatpush.msrb.mxu0 %v8879_v13 }
 0x305   : > { %2112 = vmatpush.msrb.mxu0 %v8884_v23 }
 0x306   : > { %7169 = vmatmul.msk.f32.gmra.mxu0 %vm1670_vm12, %v1660_v19 }
 0x307   : > { %7193 = vmatmul.msk.f32.gmra.mxu1 %vm1670_vm12, %v7181_v61  ;;  %2113 = vmatpush.msrb.mxu0 %v8889_v28 }
 0x309   : > { %2114 = vmatpush.msrb.mxu0 %v8897_v27 }
 0x30b   : > { %2521 = vmatpush.msra.mxu0 %v8838_v51 }
 0x30d   : > { %2522 = vmatpush.msra.mxu0 %v8846_v59 }
 0x30e   : > { %7170 = vmatmul.msk.f32.gmra.mxu0 %vm1670_vm12, %v1661_v63  ;;  %v7313_v63 = vld [vmem:[%s11745_s3 + $0x190] sm:$0xff] }
 0x30f   : > { %2523 = vmatpush.msra.mxu0 %v8854_v8  ;;  %7194 = vmatmul.msk.f32.gmra.mxu1 %vm1670_vm12, %v7182_v9  ;;  %v7271_v9 = vld [vmem:[%s11745_s3 + $0x120] sm:$0xff] }
 0x311   : > { %2524 = vmatpush.msra.mxu0 %v8861_v24 }
 0x313   : > { %2525 = vmatpush.msra.mxu0 %v8868_v39 }
 0x315   : > { %2526 = vmatpush.msra.mxu0 %v8874_v34 }
 0x316   : > { %7171 = vmatmul.msk.f32.gmra.mxu0 %vm1670_vm12, %v1662_v30 }
 0x317   : > { %2527 = vmatpush.msra.mxu0 %v8879_v13  ;;  %7195 = vmatmul.msk.f32.gmra.mxu1 %vm1670_vm12, %v7183_v15  ;;  %v7314_v15 = vld [vmem:[%s11745_s3 + $0x198] sm:$0xff] }
 0x319   : > { %2528 = vmatpush.msra.mxu0 %v8884_v23 }
 0x31b   : > { %2529 = vmatpush.msra.mxu0 %v8889_v28 }
 0x31d   : > { %2530 = vmatpush.msra.mxu0 %v8897_v27 }
 0x31e   : > { %7172 = vmatmul.msk.f32.gmra.mxu0 %vm1670_vm12, %v1663_v58  ;;  %v7272_v58 = vld [vmem:[%s11745_s3 + $0x128] sm:$0xff] }
 0x31f   : > { %7196 = vmatmul.msk.f32.gmra.mxu1 %vm1670_vm12, %v7184_v60 }
 0x326   : > { %7173 = vmatmul.msk.f32.gmra.mxu0 %vm1670_vm12, %v1664_v46  ;;  %v7315_v46 = vld [vmem:[%s11745_s3 + $0x1a0] sm:$0xff] }
 0x327   : > { %7197 = vmatmul.msk.f32.gmra.mxu1 %vm1670_vm12, %v7185_v4  ;;  %v7273_v4 = vld [vmem:[%s11745_s3 + $0x130] sm:$0xff] }
 0x32e   : > { %7174 = vmatmul.msk.f32.gmra.mxu0 %vm1670_vm12, %v1665_v25 }
 0x32f   : > { %7198 = vmatmul.msk.f32.gmra.mxu1 %vm1670_vm12, %v7186_v31  ;;  %v7316_v31 = vld [vmem:[%s11745_s3 + $0x1a8] sm:$0xff] }
 0x336   : > { %7175 = vmatmul.msk.f32.gmra.mxu0 %vm1670_vm12, %v1666_v47  ;;  %v7274_v47 = vld [vmem:[%s11745_s3 + $0x138] sm:$0xff] }
 0x337   : > { %7199 = vmatmul.msk.f32.gmra.mxu1 %vm1670_vm12, %v7187_v48 }
 0x33e   : > { %7176 = vmatmul.msk.f32.gmra.mxu0 %vm1670_vm12, %v1667_v12  ;;  %v7317_v12 = vld [vmem:[%s11745_s3 + $0x1b0] sm:$0xff] }
 0x33f   : > { %7200 = vmatmul.msk.f32.gmra.mxu1 %vm1670_vm12, %v7188_v54  ;;  %v7275_v54 = vld [vmem:[%s11745_s3 + $0x140] sm:$0xff] }
 0x346   : > { %7177 = vmatmul.msk.f32.gmra.mxu0 %vm1670_vm12, %v1668_v57 }
 0x347   : > { %7201 = vmatmul.msk.f32.gmra.mxu1 %vm1670_vm12, %v7189_v21 }
 0x34e   : > { %7178 = vmatmul.msk.f32.gmra.mxu0 %vm1670_vm12, %v1669_v50  ;;  %v7276_v50 = vld [vmem:[%s11745_s3 + $0x148] sm:$0xff] }
 0x34f   : > { %7202 = vmatmul.msk.f32.gmra.mxu1 %vm1670_vm12, %v7190_v55 }
 0x356   : > { %7243 = vmatmul.msk.f32.vlgmr.msrb.gmra.mxu0 %vm1670_vm12, %v7231_v52  ;;  %v7277_v52 = vld [vmem:[%s11745_s3 + $0x150] sm:$0xff] }
 0x357   : > { %2937 = vmatpush.msrb.mxu0 %v8838_v51 }
 0x359   : > { %2938 = vmatpush.msrb.mxu0 %v8846_v59 }
 0x35b   : > { %2939 = vmatpush.msrb.mxu0 %v8854_v8 }
 0x35d   : > { %2940 = vmatpush.msrb.mxu0 %v8861_v24 }
 0x35e   : > { %7244 = vmatmul.msk.f32.gmra.mxu0 %vm1670_vm12, %v7232_v53 }
 0x35f   : > { %2941 = vmatpush.msrb.mxu0 %v8868_v39 }
 0x361   : > { %2942 = vmatpush.msrb.mxu0 %v8874_v34 }
 0x363   : > { %2943 = vmatpush.msrb.mxu0 %v8879_v13 }
 0x365   : > { %2944 = vmatpush.msrb.mxu0 %v8884_v23 }
 0x366   : > { %7245 = vmatmul.msk.f32.gmra.mxu0 %vm1670_vm12, %v7233_v35  ;;  %v7320_v35 = vld [vmem:[%s11745_s3 + $0x1c8] sm:$0xff] }
 0x367   : > { %2945 = vmatpush.msrb.mxu0 %v8889_v28 }
 0x369   : > { %2946 = vmatpush.msrb.mxu0 %v8897_v27 }
 0x36e   : > { %7246 = vmatmul.msk.f32.gmra.mxu0 %vm1670_vm12, %v7234_v56  ;;  %v7278_v56 = vld [vmem:[%s11745_s3 + $0x158] sm:$0xff] }
 0x373   : > { %v1724_v62 = vpop.f32.mrf.mxu0 }
 0x374   : > { %v1830_v0 = vpop.f32.mrf.mxu1  ;;  %7219 = vmatmul.msk.f32.vlgmr.msra.gmra.mxu3 %vm1871_vm13, %v1724_v62 }
 0x375   : > { %7207 = vmatmul.msk.f32.vlgmr.msra.gmra.mxu2 %vm1871_vm13, %v1830_v0 }
 0x376   : > { %2729 = vmatpush.msra.mxu2 %v8838_v51  ;;  %7247 = vmatmul.msk.f32.gmra.mxu0 %vm1670_vm12, %v7235_v6  ;;  %v7321_v6 = vld [vmem:[%s11745_s3 + $0x1d0] sm:$0xff] }
 0x378   : > { %2730 = vmatpush.msra.mxu2 %v8846_v59 }
 0x37a   : > { %2731 = vmatpush.msra.mxu2 %v8854_v8 }
 0x37b   : > { %v1727_v2 = vpop.f32.mrf.mxu0 }
 0x37c   : > { %2732 = vmatpush.msra.mxu2 %v8861_v24  ;;  %v1833_v3 = vpop.f32.mrf.mxu1  ;;  %7220 = vmatmul.msk.f32.gmra.mxu3 %vm1871_vm13, %v1727_v2  ;;  %v7279_v2 = vld [vmem:[%s11745_s3 + $0x160] sm:$0xff] }
 0x37d   : > { %7208 = vmatmul.msk.f32.gmra.mxu2 %vm1871_vm13, %v1833_v3 }
 0x37e   : > { %2733 = vmatpush.msra.mxu2 %v8868_v39  ;;  %7248 = vmatmul.msk.f32.gmra.mxu0 %vm1670_vm12, %v7236_v5 }
 0x380   : > { %2734 = vmatpush.msra.mxu2 %v8874_v34  ;;  %v7257_v34 = vld [vmem:[%s11746_s4 + $0x50] sm:$0xff] }
 0x381   : > { %2206 = vmatpush.msrb.mxu1 %v7257_v34  ;;  %v7352_v34 = vld [vmem:[%s11745_s3 + $0x1e8] sm:$0xff] }
 0x382   : > { %2735 = vmatpush.msra.mxu2 %v8879_v13 }
 0x383   : > { %v1730_v51 = vpop.f32.mrf.mxu0  ;;  %2207 = vmatpush.msrb.mxu1 %v7256_v14  ;;  %v7338_v14 = vld [vmem:[%s11746_s4 + $0x98] sm:$0xff] }
 0x384   : > { %2736 = vmatpush.msra.mxu2 %v8884_v23  ;;  %v1836_v59 = vpop.f32.mrf.mxu1  ;;  %7221 = vmatmul.msk.f32.gmra.mxu3 %vm1871_vm13, %v1730_v51  ;;  %v7255_v23 = vld [vmem:[%s11746_s4 + $0x40] sm:$0xff]  ;;  %v7322_v51 = vld [vmem:[%s11745_s3 + $0x1d8] sm:$0xff] }
 0x385   : > { %7209 = vmatmul.msk.f32.gmra.mxu2 %vm1871_vm13, %v1836_v59  ;;  %2208 = vmatpush.msrb.mxu1 %v7255_v23  ;;  %v7280_v59 = vld [vmem:[%s11745_s3 + $0x168] sm:$0xff] }
 0x386   : > { %2737 = vmatpush.msra.mxu2 %v8889_v28  ;;  %7249 = vmatmul.msk.f32.gmra.mxu0 %vm1670_vm12, %v7237_v7  ;;  %v7336_v23 = vld [vmem:[%s11746_s4 + $0x88] sm:$0xff] }
 0x387   : > { %2621 = vmatpush.msra.mxu1 %v7338_v14 }
 0x388   : > { %2738 = vmatpush.msra.mxu2 %v8897_v27  ;;  %v7311_v27 = vld [vmem:[%s11745_s3 + $0x180] sm:$0xff] }
 0x38b   : > { %v1733_v8 = vpop.f32.mrf.mxu0 }
 0x38c   : > { %v1839_v10 = vpop.f32.mrf.mxu1  ;;  %7222 = vmatmul.msk.f32.gmra.mxu3 %vm1871_vm13, %v1733_v8 }
 0x38d   : > { %7210 = vmatmul.msk.f32.gmra.mxu2 %vm1871_vm13, %v1839_v10  ;;  %v7391_v10 = vld [vmem:[%s11745_s3 + $0x240] sm:$0xff] }
 0x38e   : > { %7250 = vmatmul.msk.f32.gmra.mxu0 %vm1670_vm12, %v7238_v18  ;;  %v7281_v18 = vld [vmem:[%s11745_s3 + $0x170] sm:$0xff] }
 0x393   : > { %v1736_v22 = vpop.f32.mrf.mxu0 }
 0x394   : > { %v1842_v38 = vpop.f32.mrf.mxu1  ;;  %7223 = vmatmul.msk.f32.gmra.mxu3 %vm1871_vm13, %v1736_v22 }
 0x395   : > { %7211 = vmatmul.msk.f32.gmra.mxu2 %vm1871_vm13, %v1842_v38 }
 0x396   : > { %7251 = vmatmul.msk.f32.gmra.mxu0 %vm1670_vm12, %v7239_v16  ;;  %v7392_v16 = vld [vmem:[%s11745_s3 + $0x248] sm:$0xff] }
 0x39b   : > { %v1739_v24 = vpop.f32.mrf.mxu0 }
 0x39c   : > { %v1845_v29 = vpop.f32.mrf.mxu1  ;;  %7224 = vmatmul.msk.f32.gmra.mxu3 %vm1871_vm13, %v1739_v24  ;;  %v7282_v24 = vld [vmem:[%s11745_s3 + $0x178] sm:$0xff] }
 0x39d   : > { %7212 = vmatmul.msk.f32.gmra.mxu2 %vm1871_vm13, %v1845_v29 }
 0x39e   : > { %7252 = vmatmul.msk.f32.gmra.mxu0 %vm1670_vm12, %v7240_v32 }
 0x3a3   : > { %v1742_v37 = vpop.f32.mrf.mxu0 }
 0x3a4   : > { %v1848_v45 = vpop.f32.mrf.mxu1  ;;  %7225 = vmatmul.msk.f32.gmra.mxu3 %vm1871_vm13, %v1742_v37  ;;  %v7351_v37 = vld [vmem:[%s11745_s3 + $0x1e0] sm:$0xff] }
 0x3a5   : > { %7213 = vmatmul.msk.f32.gmra.mxu2 %vm1871_vm13, %v1848_v45  ;;  %v7298_v45 = vld [vmem:[%s11746_s4 + $0x78] sm:$0xff] }
 0x3a6   : > { %7253 = vmatmul.msk.f32.gmra.mxu0 %vm1670_vm12, %v7241_v33  ;;  %2413 = vmatpush.msrb.mxu3 %v7298_v45  ;;  %v7393_v33 = vld [vmem:[%s11745_s3 + $0x250] sm:$0xff] }
 0x3ab   : > { %v1745_v39 = vpop.f32.mrf.mxu0 }
 0x3ac   : > { %v1851_v41 = vpop.f32.mrf.mxu1  ;;  %7226 = vmatmul.msk.f32.gmra.mxu3 %vm1871_vm13, %v1745_v39  ;;  %v7297_v39 = vld [vmem:[%s11746_s4 + $0x70] sm:$0xff] }
 0x3ad   : > { %7214 = vmatmul.msk.f32.gmra.mxu2 %vm1871_vm13, %v1851_v41  ;;  %2414 = vmatpush.msrb.mxu3 %v7297_v39  ;;  %v7296_v41 = vld [vmem:[%s11746_s4 + $0x68] sm:$0xff] }
 0x3ae   : > { %7254 = vmatmul.msk.f32.gmra.mxu0 %vm1670_vm12, %v7242_v49 }
 0x3af   : > { %2415 = vmatpush.msrb.mxu3 %v7296_v41 }
 0x3b1   : > { %2416 = vmatpush.msrb.mxu3 %v7295_v26  ;;  %v7362_v26 = vld [vmem:[%s11745_s3 + $0x238] sm:$0xff] }
 0x3b3   : > { %v1748_v13 = vpop.f32.mrf.mxu0 }
 0x3b4   : > { %v1854_v20 = vpop.f32.mrf.mxu1  ;;  %7227 = vmatmul.msk.f32.gmra.mxu3 %vm1871_vm13, %v1748_v13  ;;  %v7394_v13 = vld [vmem:[%s11745_s3 + $0x258] sm:$0xff] }
 0x3b5   : > { %7215 = vmatmul.msk.f32.gmra.mxu2 %vm1871_vm13, %v1854_v20  ;;  %v7337_v20 = vld [vmem:[%s11746_s4 + $0x90] sm:$0xff] }
 0x3b6   : > { %7323 = vmatmul.msk.f32.vlgmr.msra.gmra.mxu0 %vm1670_vm12, %v7311_v27  ;;  %2622 = vmatpush.msra.mxu1 %v7337_v20 }
 0x3b8   : > { %2623 = vmatpush.msra.mxu1 %v7336_v23  ;;  %v7378_v23 = vld [vmem:[%s11746_s4 + $0xb8] sm:$0xff] }
 0x3b9   : > { %2829 = vmatpush.msra.mxu3 %v7378_v23 }
 0x3bb   : > { %v1751_v28 = vpop.f32.mrf.mxu0 }
 0x3bc   : > { %v1857_v42 = vpop.f32.mrf.mxu1  ;;  %7228 = vmatmul.msk.f32.gmra.mxu3 %vm1871_vm13, %v1751_v28 }
 0x3bd   : > { %7216 = vmatmul.msk.f32.gmra.mxu2 %vm1871_vm13, %v1857_v42  ;;  %v7335_v42 = vld [vmem:[%s11746_s4 + $0x80] sm:$0xff] }
 0x3be   : > { %7324 = vmatmul.msk.f32.gmra.mxu0 %vm1670_vm12, %v7312_v44  ;;  %2624 = vmatpush.msra.mxu1 %v7335_v42  ;;  %v7377_v42 = vld [vmem:[%s11746_s4 + $0xb0] sm:$0xff] }
 0x3bf   : > { %2830 = vmatpush.msra.mxu3 %v7377_v42 }
 0x3c3   : > { %v1754_v1 = vpop.f32.mrf.mxu0 }
 0x3c4   : > { %v1860_v36 = vpop.f32.mrf.mxu1  ;;  %7229 = vmatmul.msk.f32.gmra.mxu3 %vm1871_vm13, %v1754_v1  ;;  %v7353_v1 = vld [vmem:[%s11745_s3 + $0x1f0] sm:$0xff] }
 0x3c5   : > { %7217 = vmatmul.msk.f32.gmra.mxu2 %vm1871_vm13, %v1860_v36  ;;  %v7395_v36 = vld [vmem:[%s11745_s3 + $0x260] sm:$0xff] }
 0x3c6   : > { %7325 = vmatmul.msk.f32.gmra.mxu0 %vm1670_vm12, %v7313_v63  ;;  %v7396_v63 = vld [vmem:[%s11745_s3 + $0x268] sm:$0xff] }
 0x3cb   : > { %v1757_v19 = vpop.f32.mrf.mxu0 }
 0x3cc   : > { %v1863_v61 = vpop.f32.mrf.mxu1  ;;  %7230 = vmatmul.msk.f32.gmra.mxu3 %vm1871_vm13, %v1757_v19 }
 0x3cd   : > { %7218 = vmatmul.msk.f32.gmra.mxu2 %vm1871_vm13, %v1863_v61  ;;  %v7354_v61 = vld [vmem:[%s11745_s3 + $0x1f8] sm:$0xff] }
 0x3ce   : > { %7326 = vmatmul.msk.f32.gmra.mxu0 %vm1670_vm12, %v7314_v15 }
 0x3d3   : > { %v2116_v30 = vpop.f32.mrf.mxu0 }
 0x3d4   : > { %7259 = vmatmul.msk.f32.vlgmr.msrb.gmra.mxu1 %vm1871_vm13, %v2116_v30 }
 0x3d5   : > { %7283 = vmatmul.msk.f32.vlgmr.msrb.gmra.mxu2 %vm1670_vm12, %v7271_v9 }
 0x3d6   : > { %7327 = vmatmul.msk.f32.gmra.mxu0 %vm1670_vm12, %v7315_v46 }
 0x3db   : > { %v2119_v60 = vpop.f32.mrf.mxu0 }
 0x3dc   : > { %7260 = vmatmul.msk.f32.gmra.mxu1 %vm1871_vm13, %v2119_v60  ;;  %v7397_v60 = vld [vmem:[%s11745_s3 + $0x270] sm:$0xff] }
 0x3dd   : > { %7284 = vmatmul.msk.f32.gmra.mxu2 %vm1670_vm12, %v7272_v58  ;;  %v7355_v58 = vld [vmem:[%s11745_s3 + $0x200] sm:$0xff] }
 0x3de   : > { %7328 = vmatmul.msk.f32.gmra.mxu0 %vm1670_vm12, %v7316_v31  ;;  %v7356_v31 = vld [vmem:[%s11745_s3 + $0x208] sm:$0xff] }
 0x3e3   : > { %v2122_v25 = vpop.f32.mrf.mxu0 }
 0x3e4   : > { %7261 = vmatmul.msk.f32.gmra.mxu1 %vm1871_vm13, %v2122_v25 }
 0x3e5   : > { %7285 = vmatmul.msk.f32.gmra.mxu2 %vm1670_vm12, %v7273_v4 }
 0x3e6   : > { %7329 = vmatmul.msk.f32.gmra.mxu0 %vm1670_vm12, %v7317_v12 }
 0x3eb   : > { %v2125_v48 = vpop.f32.mrf.mxu0 }
 0x3ec   : > { %7262 = vmatmul.msk.f32.gmra.mxu1 %vm1871_vm13, %v2125_v48 }
 0x3ed   : > { %7286 = vmatmul.msk.f32.gmra.mxu2 %vm1670_vm12, %v7274_v47  ;;  %v7398_v47 = vld [vmem:[%s11745_s3 + $0x278] sm:$0xff] }
 0x3ee   : > { %7330 = vmatmul.msk.f32.gmra.mxu0 %vm1670_vm12, %v7318_v43  ;;  %v7399_v43 = vld [vmem:[%s11745_s3 + $0x280] sm:$0xff] }
 0x3f3   : > { %v2128_v57 = vpop.f32.mrf.mxu0 }
 0x3f4   : > { %7263 = vmatmul.msk.f32.gmra.mxu1 %vm1871_vm13, %v2128_v57  ;;  %v7357_v57 = vld [vmem:[%s11745_s3 + $0x210] sm:$0xff] }
 0x3f5   : > { %7287 = vmatmul.msk.f32.gmra.mxu2 %vm1670_vm12, %v7275_v54 }
 0x3f6   : > { %7331 = vmatmul.msk.f32.gmra.mxu0 %vm1670_vm12, %v7319_v40 }
 0x3f8   : > { %v9185_v21 = vpop.f32.mrf.mxu2 }
 0x3fb   : > { %v2131_v55 = vpop.f32.mrf.mxu0 }
 0x3fc   : > { %7264 = vmatmul.msk.f32.gmra.mxu1 %vm1871_vm13, %v2131_v55 }
 0x3fd   : > { %7288 = vmatmul.msk.f32.gmra.mxu2 %vm1670_vm12, %v7276_v50  ;;  %v9365_v50 = vpop.f32.mrf.mxu3 }
 0x3fe   : > { %7332 = vmatmul.msk.f32.gmra.mxu0 %vm1670_vm12, %v7320_v35  ;;  %v7400_v35 = vld [vmem:[%s11745_s3 + $0x288] sm:$0xff] }
 0x400   : > { %v9196_v17 = vpop.f32.mrf.mxu2 }
 0x403   : > { %v2134_v11 = vpop.f32.mrf.mxu0 }
 0x404   : > { %7265 = vmatmul.msk.f32.gmra.mxu1 %vm1871_vm13, %v2134_v11  ;;  %v7358_v11 = vld [vmem:[%s11745_s3 + $0x218] sm:$0xff] }
 0x405   : > { %7289 = vmatmul.msk.f32.gmra.mxu2 %vm1670_vm12, %v7277_v52 }
 0x406   : > { %7333 = vmatmul.msk.f32.gmra.mxu0 %vm1670_vm12, %v7321_v6 }
 0x408   : > { %v9207_v53 = vpop.f32.mrf.mxu2 }
 0x40b   : > { %v2137_v62 = vpop.f32.mrf.mxu0 }
 0x40c   : > { %7266 = vmatmul.msk.f32.gmra.mxu1 %vm1871_vm13, %v2137_v62 }
 0x40d   : > { %7290 = vmatmul.msk.f32.gmra.mxu2 %vm1670_vm12, %v7278_v56  ;;  %v9379_v56 = vpop.f32.mrf.mxu3 }
 0x40e   : > { %7334 = vmatmul.msk.f32.gmra.mxu0 %vm1670_vm12, %v7322_v51  ;;  %v7401_v51 = vld [vmem:[%s11745_s3 + $0x290] sm:$0xff] }
 0x410   : > { %v9218_v0 = vpop.f32.mrf.mxu2 }
 0x413   : > { %v2140_v3 = vpop.f32.mrf.mxu0 }
 0x414   : > { %7267 = vmatmul.msk.f32.gmra.mxu1 %vm1871_vm13, %v2140_v3  ;;  %v7359_v3 = vld [vmem:[%s11745_s3 + $0x220] sm:$0xff] }
 0x415   : > { %7291 = vmatmul.msk.f32.gmra.mxu2 %vm1670_vm12, %v7279_v2 }
 0x416   : > { %7403 = vmatmul.msk.f32.vlgmr.msrb.gmra.mxu0 %vm1670_vm12, %v7391_v10  ;;  %v9394_v10 = vpop.f32.mrf.mxu3 }
 0x418   : > { %v9229_v5 = vpop.f32.mrf.mxu2 }
 0x41b   : > { %v2143_v7 = vpop.f32.mrf.mxu0 }
 0x41c   : > { %7268 = vmatmul.msk.f32.gmra.mxu1 %vm1871_vm13, %v2143_v7 }
 0x41d   : > { %7292 = vmatmul.msk.f32.gmra.mxu2 %vm1670_vm12, %v7280_v59 }
 0x41e   : > { %7404 = vmatmul.msk.f32.gmra.mxu0 %vm1670_vm12, %v7392_v16  ;;  %v7402_v16 = vld [vmem:[%s11745_s3 + $0x298] sm:$0xff]  ;;  %v9412_v45 = vpop.f32.mrf.mxu3 }
 0x420   : > { %v9240_v8 = vpop.f32.mrf.mxu2 }
 0x423   : > { %v2146_v22 = vpop.f32.mrf.mxu0 }
 0x424   : > { %7269 = vmatmul.msk.f32.gmra.mxu1 %vm1871_vm13, %v2146_v22 }
 0x425   : > { %7293 = vmatmul.msk.f32.gmra.mxu2 %vm1670_vm12, %v7281_v18  ;;  %v7360_v18 = vld [vmem:[%s11745_s3 + $0x228] sm:$0xff] }
 0x426   : > { %7405 = vmatmul.msk.f32.gmra.mxu0 %vm1670_vm12, %v7393_v33 }
 0x428   : > { %v9251_v38 = vpop.f32.mrf.mxu2 }
 0x42b   : > { %v2149_v29 = vpop.f32.mrf.mxu0 }
 0x42c   : > { %7270 = vmatmul.msk.f32.gmra.mxu1 %vm1871_vm13, %v2149_v29 }
 0x42d   : > { %7294 = vmatmul.msk.f32.gmra.mxu2 %vm1670_vm12, %v7282_v24 }
 0x42e   : > { %7406 = vmatmul.msk.f32.gmra.mxu0 %vm1670_vm12, %v7394_v13 }
 0x430   : > { %v9262_v32 = vpop.f32.mrf.mxu2 }
 0x433   : > { %v2532_v27 = vpop.f32.mrf.mxu0 }
 0x434   : > { %7339 = vmatmul.msk.f32.vlgmr.msra.gmra.mxu1 %vm1871_vm13, %v2532_v27  ;;  %v7376_v27 = vld [vmem:[%s11746_s4 + $0xa8] sm:$0xff] }
 0x435   : > { %7363 = vmatmul.msk.f32.vlgmr.msra.gmra.mxu2 %vm1670_vm12, %v7351_v37  ;;  %v7361_v37 = vld [vmem:[%s11745_s3 + $0x230] sm:$0xff]  ;;  %2831 = vmatpush.msra.mxu3 %v7376_v27 }
 0x436   : > { %7407 = vmatmul.msk.f32.gmra.mxu0 %vm1670_vm12, %v7395_v36 }
 0x438   : > { %v9281_v49 = vpop.f32.mrf.mxu2 }
 0x43b   : > { %v2535_v19 = vpop.f32.mrf.mxu0 }
 0x43c   : > { %7340 = vmatmul.msk.f32.gmra.mxu1 %vm1871_vm13, %v2535_v19  ;;  %v7375_v19 = vld [vmem:[%s11746_s4 + $0xa0] sm:$0xff] }
 0x43d   : > { %7364 = vmatmul.msk.f32.gmra.mxu2 %vm1670_vm12, %v7352_v34  ;;  %v9423_v34 = vpop.f32.mrf.mxu3  ;;  %2832 = vmatpush.msra.mxu3 %v7375_v19 }
 0x43e   : > { %7408 = vmatmul.msk.f32.gmra.mxu0 %vm1670_vm12, %v7396_v63 }
 0x440   : > { %v9303_v28 = vpop.f32.mrf.mxu2 }
 0x443   : > { %v2538_v30 = vpop.f32.mrf.mxu0 }
 0x444   : > { %7341 = vmatmul.msk.f32.gmra.mxu1 %vm1871_vm13, %v2538_v30  ;;  %v7418_v30 = vld [vmem:[%s11746_s4 + $0xd8] sm:$0xff] }
 0x445   : > { %7365 = vmatmul.msk.f32.gmra.mxu2 %vm1670_vm12, %v7353_v1  ;;  %v9438_v1 = vpop.f32.mrf.mxu3  ;;  %3037 = vmatpush.msrb.mxu1 %v7418_v30 }
 0x446   : > { %7409 = vmatmul.msk.f32.gmra.mxu0 %vm1670_vm12, %v7397_v60  ;;  %v7416_v60 = vld [vmem:[%s11746_s4 + $0xc8] sm:$0xff] }
 0x448   : > { %v9317_v44 = vpop.f32.mrf.mxu2 }
 0x44b   : > { %v2541_v4 = vpop.f32.mrf.mxu0 }
 0x44c   : > { %7342 = vmatmul.msk.f32.gmra.mxu1 %vm1871_vm13, %v2541_v4  ;;  %v7415_v4 = vld [vmem:[%s11746_s4 + $0xc0] sm:$0xff] }
 0x44d   : > { %7366 = vmatmul.msk.f32.gmra.mxu2 %vm1670_vm12, %v7354_v61 }
 0x44e   : > { %7410 = vmatmul.msk.f32.gmra.mxu0 %vm1670_vm12, %v7398_v47  ;;  %v9460_v47 = vpop.f32.mrf.mxu3 }
 0x450   : > { %v9328_v9 = vpop.f32.mrf.mxu2 }
 0x451   : > { %v9330_v15 = vpop.f32.mrf.mxu1 }
 0x452   : > { %11776 = vst [vmem:[#allocation3_spill] sm:$0xff] %v9330_v15 }
 0x453   : > { %v2544_v12 = vpop.f32.mrf.mxu0 }
 0x454   : > { %7343 = vmatmul.msk.f32.gmra.mxu1 %vm1871_vm13, %v2544_v12 }
 0x455   : > { %7367 = vmatmul.msk.f32.gmra.mxu2 %vm1670_vm12, %v7355_v58  ;;  %v7417_v58 = vld [vmem:[%s11746_s4 + $0xd0] sm:$0xff] }
 0x456   : > { %7411 = vmatmul.msk.f32.gmra.mxu0 %vm1670_vm12, %v7399_v43  ;;  %3038 = vmatpush.msrb.mxu1 %v7417_v58  ;;  %v9467_v43 = vpop.f32.mrf.mxu3 }
 0x458   : > { %v2324_v46 = vpop.f32.mrf.mxu2  ;;  %3039 = vmatpush.msrb.mxu1 %v7416_v60 }
 0x459   : > { %7299 = vmatmul.msk.f32.vlgmr.msrb.gmra.mxu3 %vm1871_vm13, %v2324_v46  ;;  %v9342_v25 = vpop.f32.mrf.mxu1 }
 0x45a   : > { %11777 = vst [vmem:[#allocation8_spill] sm:$0xff] %v9342_v25  ;;  %3040 = vmatpush.msrb.mxu1 %v7415_v4 }
 0x45b   : > { %v2547_v40 = vpop.f32.mrf.mxu0 }
 0x45c   : > { %7344 = vmatmul.msk.f32.gmra.mxu1 %vm1871_vm13, %v2547_v40 }
 0x45d   : > { %7368 = vmatmul.msk.f32.gmra.mxu2 %vm1670_vm12, %v7356_v31 }
 0x45e   : > { %7412 = vmatmul.msk.f32.gmra.mxu0 %vm1670_vm12, %v7400_v35  ;;  %v9473_v35 = vpop.f32.mrf.mxu3 }
 0x460   : > { %v2327_v48 = vpop.f32.mrf.mxu2 }
 0x461   : > { %7300 = vmatmul.msk.f32.gmra.mxu3 %vm1871_vm13, %v2327_v48  ;;  %v9354_v54 = vpop.f32.mrf.mxu1 }
 0x463   : > { %v2550_v6 = vpop.f32.mrf.mxu0 }
 0x464   : > { %7345 = vmatmul.msk.f32.gmra.mxu1 %vm1871_vm13, %v2550_v6 }
 0x465   : > { %7369 = vmatmul.msk.f32.gmra.mxu2 %vm1670_vm12, %v7357_v57 }
 0x466   : > { %7413 = vmatmul.msk.f32.gmra.mxu0 %vm1670_vm12, %v7401_v51 }
 0x468   : > { %v2330_v55 = vpop.f32.mrf.mxu2 }
 0x469   : > { %7301 = vmatmul.msk.f32.gmra.mxu3 %vm1871_vm13, %v2330_v55  ;;  %v9368_v52 = vpop.f32.mrf.mxu1 }
 0x46b   : > { %v2553_v7 = vpop.f32.mrf.mxu0 }
 0x46c   : > { %7346 = vmatmul.msk.f32.gmra.mxu1 %vm1871_vm13, %v2553_v7 }
 0x46d   : > { %7370 = vmatmul.msk.f32.gmra.mxu2 %vm1670_vm12, %v7358_v11 }
 0x46e   : > { %7414 = vmatmul.msk.f32.gmra.mxu0 %vm1670_vm12, %v7402_v16 }
 0x470   : > { %v2333_v62 = vpop.f32.mrf.mxu2 }
 0x471   : > { %7302 = vmatmul.msk.f32.gmra.mxu3 %vm1871_vm13, %v2333_v62  ;;  %v9382_v2 = vpop.f32.mrf.mxu1 }
 0x473   : > { %v2556_v29 = vpop.f32.mrf.mxu0 }
 0x474   : > { %7347 = vmatmul.msk.f32.gmra.mxu1 %vm1871_vm13, %v2556_v29 }
 0x475   : > { %7371 = vmatmul.msk.f32.gmra.mxu2 %vm1670_vm12, %v7359_v3 }
 0x478   : > { %v2336_v59 = vpop.f32.mrf.mxu2 }
 0x479   : > { %7303 = vmatmul.msk.f32.gmra.mxu3 %vm1871_vm13, %v2336_v59  ;;  %v9400_v22 = vpop.f32.mrf.mxu1  ;;  %v9481_v59 = vpop.f32.mrf.mxu3 }
 0x47b   : > { %v2559_v41 = vpop.f32.mrf.mxu0 }
 0x47c   : > { %7348 = vmatmul.msk.f32.gmra.mxu1 %vm1871_vm13, %v2559_v41 }
 0x47d   : > { %7372 = vmatmul.msk.f32.gmra.mxu2 %vm1670_vm12, %v7360_v18 }
 0x480   : > { %v2339_v24 = vpop.f32.mrf.mxu2 }
 0x481   : > { %7304 = vmatmul.msk.f32.gmra.mxu3 %vm1871_vm13, %v2339_v24  ;;  %v9414_v33 = vpop.f32.mrf.mxu1 }
 0x483   : > { %v2562_v20 = vpop.f32.mrf.mxu0 }
 0x484   : > { %7349 = vmatmul.msk.f32.gmra.mxu1 %vm1871_vm13, %v2562_v20 }
 0x485   : > { %7373 = vmatmul.msk.f32.gmra.mxu2 %vm1670_vm12, %v7361_v37  ;;  %v9488_v37 = vpop.f32.mrf.mxu3 }
 0x488   : > { %v2342_v39 = vpop.f32.mrf.mxu2 }
 0x489   : > { %7305 = vmatmul.msk.f32.gmra.mxu3 %vm1871_vm13, %v2342_v39  ;;  %v9425_v14 = vpop.f32.mrf.mxu1 }
 0x48b   : > { %v2565_v63 = vpop.f32.mrf.mxu0 }
 0x48c   : > { %7350 = vmatmul.msk.f32.gmra.mxu1 %vm1871_vm13, %v2565_v63 }
 0x48d   : > { %7374 = vmatmul.msk.f32.gmra.mxu2 %vm1670_vm12, %v7362_v26 }
 0x490   : > { %v2345_v13 = vpop.f32.mrf.mxu2 }
 0x491   : > { %7306 = vmatmul.msk.f32.gmra.mxu3 %vm1871_vm13, %v2345_v13  ;;  %v9443_v61 = vpop.f32.mrf.mxu1  ;;  %v9495_v13 = vpop.f32.mrf.mxu3 }
 0x493   : > { %v2948_v31 = vpop.f32.mrf.mxu0 }
 0x494   : > { %7419 = vmatmul.msk.f32.vlgmr.msrb.gmra.mxu1 %vm1871_vm13, %v2948_v31 }
 0x498   : > { %v2348_v36 = vpop.f32.mrf.mxu2 }
 0x499   : > { %7307 = vmatmul.msk.f32.gmra.mxu3 %vm1871_vm13, %v2348_v36  ;;  %v9463_v48 = vpop.f32.mrf.mxu1 }
 0x49b   : > { %v2951_v57 = vpop.f32.mrf.mxu0 }
 0x49c   : > { %7420 = vmatmul.msk.f32.gmra.mxu1 %vm1871_vm13, %v2951_v57 }
 0x4a0   : > { %v2351_v46 = vpop.f32.mrf.mxu2 }
 0x4a1   : > { %7308 = vmatmul.msk.f32.gmra.mxu3 %vm1871_vm13, %v2351_v46  ;;  %v9469_v55 = vpop.f32.mrf.mxu1 }
 0x4a3   : > { %v2954_v11 = vpop.f32.mrf.mxu0 }
 0x4a4   : > { %7421 = vmatmul.msk.f32.gmra.mxu1 %vm1871_vm13, %v2954_v11 }
 0x4a8   : > { %v2354_v12 = vpop.f32.mrf.mxu2 }
 0x4a9   : > { %7309 = vmatmul.msk.f32.gmra.mxu3 %vm1871_vm13, %v2354_v12  ;;  %v9475_v62 = vpop.f32.mrf.mxu1 }
 0x4ab   : > { %v2957_v3 = vpop.f32.mrf.mxu0 }
 0x4ac   : > { %7422 = vmatmul.msk.f32.gmra.mxu1 %vm1871_vm13, %v2957_v3 }
 0x4b0   : > { %v2357_v40 = vpop.f32.mrf.mxu2 }
 0x4b1   : > { %7310 = vmatmul.msk.f32.gmra.mxu3 %vm1871_vm13, %v2357_v40  ;;  %v9479_v51 = vpop.f32.mrf.mxu1 }
 0x4b2   : > { %11778 = vst [vmem:[#allocation12_spill] sm:$0xff] %v9479_v51 }
 0x4b3   : > { %v2960_v18 = vpop.f32.mrf.mxu0 }
 0x4b4   : > { %7423 = vmatmul.msk.f32.gmra.mxu1 %vm1871_vm13, %v2960_v18 }
 0x4b8   : > { %v2740_v6 = vpop.f32.mrf.mxu2 }
 0x4b9   : > { %7379 = vmatmul.msk.f32.vlgmr.msra.gmra.mxu3 %vm1871_vm13, %v2740_v6  ;;  %v9485_v16 = vpop.f32.mrf.mxu1 }
 0x4ba   : > { %11779 = vst [vmem:[#allocation2_spill] sm:$0xff] %v9485_v16 }
 0x4bb   : > { %v2963_v29 = vpop.f32.mrf.mxu0 }
 0x4bc   : > { %7424 = vmatmul.msk.f32.gmra.mxu1 %vm1871_vm13, %v2963_v29 }
 0x4c0   : > { %v2743_v7 = vpop.f32.mrf.mxu2 }
 0x4c1   : > { %7380 = vmatmul.msk.f32.gmra.mxu3 %vm1871_vm13, %v2743_v7  ;;  %v9491_v39 = vpop.f32.mrf.mxu1 }
 0x4c2   : > { %11780 = vst [vmem:[#allocation6_spill] sm:$0xff] %v9491_v39 }
 0x4c3   : > { %v2966_v26 = vpop.f32.mrf.mxu0 }
 0x4c4   : > { %7425 = vmatmul.msk.f32.gmra.mxu1 %vm1871_vm13, %v2966_v26 }
 0x4c8   : > { %v2746_v24 = vpop.f32.mrf.mxu2 }
 0x4c9   : > { %7381 = vmatmul.msk.f32.gmra.mxu3 %vm1871_vm13, %v2746_v24  ;;  %v9497_v20 = vpop.f32.mrf.mxu1 }
 0x4ca   : > { %11781 = vst [vmem:[#allocation11_spill] sm:$0xff] %v9497_v20 }
 0x4cb   : > { %v2969_v42 = vpop.f32.mrf.mxu0 }
 0x4cc   : > { %7426 = vmatmul.msk.f32.gmra.mxu1 %vm1871_vm13, %v2969_v42 }
 0x4d0   : > { %v2749_v41 = vpop.f32.mrf.mxu2 }
 0x4d1   : > { %7382 = vmatmul.msk.f32.gmra.mxu3 %vm1871_vm13, %v2749_v41  ;;  %v9503_v36 = vpop.f32.mrf.mxu1 }
 0x4d2   : > { %11783 = vst [vmem:[#allocation10_spill] sm:$0xff] %v9503_v36 }
 0x4d3   : > { %v2972_v63 = vpop.f32.mrf.mxu0 }
 0x4d4   : > { %7427 = vmatmul.msk.f32.gmra.mxu1 %vm1871_vm13, %v2972_v63 }
 0x4d8   : > { %v2752_v23 = vpop.f32.mrf.mxu2 }
 0x4d9   : > { %7383 = vmatmul.msk.f32.gmra.mxu3 %vm1871_vm13, %v2752_v23  ;;  %v9509_v58 = vpop.f32.mrf.mxu1 }
 0x4da   : > { %11785 = vst [vmem:[#allocation9_spill] sm:$0xff] %v9509_v58  ;;  %v2036_v58 = vadd.f32 %v9467_v43, %v9262_v32 }
 0x4db   : > { %v2975_v46 = vpop.f32.mrf.mxu0 }
 0x4dc   : > { %v9501_v27 = vpop.f32.mrf.mxu3  ;;  %7428 = vmatmul.msk.f32.gmra.mxu1 %vm1871_vm13, %v2975_v46 }
 0x4dd   : > { %11782 = vst [vmem:[#allocation5_spill] sm:$0xff] %v9501_v27 }
 0x4e0   : > { %v2755_v19 = vpop.f32.mrf.mxu2 }
 0x4e1   : > { %7384 = vmatmul.msk.f32.gmra.mxu3 %vm1871_vm13, %v2755_v19  ;;  %v9515_v31 = vpop.f32.mrf.mxu1 }
 0x4e3   : > { %v2978_v57 = vpop.f32.mrf.mxu0 }
 0x4e4   : > { %v9507_v30 = vpop.f32.mrf.mxu3  ;;  %7429 = vmatmul.msk.f32.gmra.mxu1 %vm1871_vm13, %v2978_v57 }
 0x4e5   : > { %11784 = vst [vmem:[#allocation4_spill] sm:$0xff] %v9507_v30 }
 0x4e8   : > { %v2758_v60 = vpop.f32.mrf.mxu2 }
 0x4e9   : > { %7385 = vmatmul.msk.f32.gmra.mxu3 %vm1871_vm13, %v2758_v60  ;;  %v9521_v11 = vpop.f32.mrf.mxu1 }
 0x4eb   : > { %v2981_v3 = vpop.f32.mrf.mxu0 }
 0x4ec   : > { %v9513_v4 = vpop.f32.mrf.mxu3  ;;  %7430 = vmatmul.msk.f32.gmra.mxu1 %vm1871_vm13, %v2981_v3 }
 0x4ed   : > { %11786 = vst [vmem:[#allocation7_spill] sm:$0xff] %v9513_v4  ;;  %v2048_v4 = vadd.f32 %v9495_v13, %v9328_v9 }
 0x4f0   : > { %v2761_v12 = vpop.f32.mrf.mxu2 }
 0x4f1   : > { %7386 = vmatmul.msk.f32.gmra.mxu3 %vm1871_vm13, %v2761_v12  ;;  %v9527_v18 = vpop.f32.mrf.mxu1 }
 0x4f4   : > { %v9519_v40 = vpop.f32.mrf.mxu3 }
 0x4f8   : > { %v2764_v6 = vpop.f32.mrf.mxu2 }
 0x4f9   : > { %7387 = vmatmul.msk.f32.gmra.mxu3 %vm1871_vm13, %v2764_v6  ;;  %v9532_v26 = vpop.f32.mrf.mxu1 }
 0x4fc   : > { %v9525_v7 = vpop.f32.mrf.mxu3 }
 0x500   : > { %v2767_v24 = vpop.f32.mrf.mxu2 }
 0x501   : > { %7388 = vmatmul.msk.f32.gmra.mxu3 %vm1871_vm13, %v2767_v24  ;;  %v2656_v19 = vpop.f32.mrf.mxu1 }
 0x504   : > { %v9530_v29 = vpop.f32.mrf.mxu3 }
 0x508   : > { %v2770_v41 = vpop.f32.mrf.mxu2 }
 0x509   : > { %7389 = vmatmul.msk.f32.gmra.mxu3 %vm1871_vm13, %v2770_v41  ;;  %v2659_v46 = vpop.f32.mrf.mxu1 }
 0x50c   : > { %v9535_v23 = vpop.f32.mrf.mxu3 }
 0x510   : > { %v2773_v42 = vpop.f32.mrf.mxu2 }
 0x511   : > { %7390 = vmatmul.msk.f32.gmra.mxu3 %vm1871_vm13, %v2773_v42  ;;  %v9538_v57 = vpop.f32.mrf.mxu1 }
 0x512   : > { %11787 = vst [vmem:[#allocation13_spill] sm:$0xff] %v9538_v57 }
 0x514   : > { %v2439_v63 = vpop.f32.mrf.mxu3 }
 0x519   : > { %v9540_v3 = vpop.f32.mrf.mxu1 }
 0x51a   : > { %11788 = vst [vmem:[#allocation14_spill] sm:$0xff] %v9540_v3 }
 0x51c   : > { %v2442_v60 = vpop.f32.mrf.mxu3 }
 0x521   : > { %v9542_v51 = vpop.f32.mrf.mxu1 }
 0x522   : > { %11789 = vst [vmem:[#allocation15_spill] sm:$0xff] %v9542_v51 }
 0x524   : > { %v2445_v12 = vpop.f32.mrf.mxu3 }
 0x529   : > { %v9548_v39 = vpop.f32.mrf.mxu1 }
 0x52a   : > { %11792 = vst [vmem:[#allocation18_spill] sm:$0xff] %v9548_v39  ;;  %v7477_v39 = vld [vmem:[%s11748_s6 + $0x48] sm:$0xff] }
 0x52b   : > { %3423 = vmatpush.msra.mxu0 %v7477_v39  ;;  %v7473_v39 = vld [vmem:[%s11748_s6 + $0x28] sm:$0xff] }
 0x52c   : > { %v2448_v6 = vpop.f32.mrf.mxu3 }
 0x531   : > { %v9552_v27 = vpop.f32.mrf.mxu1 }
 0x532   : > { %11794 = vst [vmem:[#allocation20_spill] sm:$0xff] %v9552_v27  ;;  %v7476_v27 = vld [vmem:[%s11748_s6 + $0x40] sm:$0xff] }
 0x533   : > { %3424 = vmatpush.msra.mxu0 %v7476_v27  ;;  %v2045_v27 = vadd.f32 %v9488_v37, %v9317_v44 }
 0x534   : > { %v2451_v24 = vpop.f32.mrf.mxu3 }
 0x539   : > { %v9556_v30 = vpop.f32.mrf.mxu1 }
 0x53a   : > { %11796 = vst [vmem:[#allocation22_spill] sm:$0xff] %v9556_v30  ;;  %v7475_v30 = vld [vmem:[%s11748_s6 + $0x38] sm:$0xff] }
 0x53b   : > { %3425 = vmatpush.msra.mxu0 %v7475_v30  ;;  %v2256_v30 = vadd.f32 %v9469_v55, %v2045_v27  ;;  %v2033_v55 = vadd.f32 %v9460_v47, %v9251_v38 }
 0x53c   : > { %v9544_v16 = vpop.f32.mrf.mxu3 }
 0x53d   : > { %11790 = vst [vmem:[#allocation16_spill] sm:$0xff] %v9544_v16 }
 0x541   : > { %v9560_v3 = vpop.f32.mrf.mxu1 }
 0x542   : > { %11798 = vst [vmem:[#allocation24_spill] sm:$0xff] %v9560_v3 }
 0x544   : > { %v9546_v41 = vpop.f32.mrf.mxu3 }
 0x545   : > { %11791 = vst [vmem:[#allocation17_spill] sm:$0xff] %v9546_v41 }
 0x549   : > { %v9566_v16 = vpop.f32.mrf.mxu1 }
 0x54a   : > { %11801 = vst [vmem:[#allocation27_spill] sm:$0xff] %v9566_v16 }
 0x54c   : > { %v9550_v42 = vpop.f32.mrf.mxu3 }
 0x54d   : > { %11793 = vst [vmem:[#allocation19_spill] sm:$0xff] %v9550_v42 }
 0x551   : > { %v3066_v42 = vpop.f32.mrf.mxu1 }
 0x554   : > { %v9554_v20 = vpop.f32.mrf.mxu3 }
 0x555   : > { %11795 = vst [vmem:[#allocation21_spill] sm:$0xff] %v9554_v20  ;;  %v7474_v20 = vld [vmem:[%s11748_s6 + $0x30] sm:$0xff] }
 0x556   : > { %3426 = vmatpush.msra.mxu0 %v7474_v20  ;;  %v2039_v20 = vadd.f32 %v9473_v35, %v9281_v49  ;;  %v2253_v49 = vadd.f32 %v9425_v14, %v2036_v58 }
 0x558   : > { %3427 = vmatpush.msra.mxu0 %v7473_v39  ;;  %v2464_v39 = vadd.f32 %v2448_v6, %v2256_v30  ;;  %v2254_v44 = vadd.f32 %v9443_v61, %v2039_v20  ;;  %v2461_v13 = vadd.f32 %v2439_v63, %v2253_v49  ;;  %v11811_v20 = vld [vmem:[#allocation11_spill] sm:$0xff] }
 0x55a   : > { %v2462_v35 = vadd.f32 %v2442_v60, %v2254_v44  ;;  %v2672_v37 = vadd.f32 %v2656_v19, %v2464_v39  ;;  %v11804_v60 = vld [vmem:[#allocation8_spill] sm:$0xff] }
 0x55c   : > { %v9558_v57 = vpop.f32.mrf.mxu3  ;;  %v2670_v14 = vadd.f32 %v9527_v18, %v2462_v35 }
 0x55d   : > { %11797 = vst [vmem:[#allocation23_spill] sm:$0xff] %v9558_v57  ;;  %v3069_v57 = vpop.f32.mrf.mxu1 }
 0x564   : > { %v9562_v15 = vpop.f32.mrf.mxu3  ;;  %v11812_v44 = vld [vmem:[#allocation23_spill] sm:$0xff] }
 0x565   : > { %11799 = vst [vmem:[#allocation25_spill] sm:$0xff] %v9562_v15  ;;  %v2042_v15 = vadd.f32 %v9481_v59, %v9303_v28  ;;  %v3072_v36 = vpop.f32.mrf.mxu1  ;;  %v2257_v28 = vadd.f32 %v9475_v62, %v2048_v4 }
 0x567   : > { %v2255_v25 = vadd.f32 %v9463_v48, %v2042_v15  ;;  %v2465_v9 = vadd.f32 %v2451_v24, %v2257_v28  ;;  %v2030_v15 = vadd.f32 %v9438_v1, %v9240_v8  ;;  %v2252_v48 = vadd.f32 %v9414_v33, %v2033_v55 }
 0x568   : > { %v2015_v8 = vadd.f32 %v9365_v50, %v9185_v21  ;;  %v2024_v33 = vadd.f32 %v9412_v45, %v9218_v0  ;;  %v2018_v50 = vadd.f32 %v9379_v56, %v9196_v17  ;;  %v11806_v17 = vld [vmem:[#allocation10_spill] sm:$0xff] }
 0x569   : > { %v2463_v59 = vadd.f32 %v2445_v12, %v2255_v25  ;;  %v2027_v25 = vadd.f32 %v9423_v34, %v9229_v5  ;;  %v2251_v43 = vadd.f32 %v9400_v22, %v2030_v15  ;;  %v2460_v38 = vadd.f32 %v9535_v23, %v2252_v48  ;;  %v11802_v23 = vld [vmem:[#allocation9_spill] sm:$0xff]  ;;  %v11815_v15 = vld [vmem:[#allocation6_spill] sm:$0xff] }
 0x56a   : > { %v2673_v47 = vadd.f32 %v2659_v46, %v2465_v9  ;;  %v2669_v22 = vadd.f32 %v9521_v11, %v2461_v13  ;;  %v2249_v18 = vadd.f32 %v9368_v52, %v2024_v33  ;;  %v11805_v46 = vld [vmem:[#allocation7_spill] sm:$0xff]  ;;  %v11816_v13 = vld [vmem:[#allocation21_spill] sm:$0xff]  ;;  %v11820_v33 = vld [vmem:[#allocation20_spill] sm:$0xff] }
 0x56b   : > { %v2671_v32 = vadd.f32 %v9532_v26, %v2463_v59  ;;  %v2250_v1 = vadd.f32 %v9382_v2, %v2027_v25  ;;  %v2668_v0 = vadd.f32 %v9515_v31, %v2460_v38  ;;  %v2247_v31 = vadd.f32 %v11804_v60, %v2018_v50  ;;  %v11813_v59 = vld [vmem:[#allocation24_spill] sm:$0xff] }
 0x56c   : > { %v9564_v51 = vpop.f32.mrf.mxu3 }
 0x56d   : > { %11800 = vst [vmem:[#allocation26_spill] sm:$0xff] %v9564_v51  ;;  %v3075_v5 = vpop.f32.mrf.mxu1  ;;  %v2458_v21 = vadd.f32 %v9525_v7, %v2250_v1 }
 0x56f   : > { %v2666_v56 = vadd.f32 %v11806_v17, %v2458_v21 }
 0x571   : > { %v2874_v28 = vadd.f32 %v11812_v44, %v2666_v56  ;;  %v3126_v56 = vld [vmem:[%s11747_s5] sm:$0xff]  ;;  %v7450_v44 = vld [vmem:[%s11747_s5 + $0x98] sm:$0xff] }
 0x573   : > { %v3082_v1 = vadd.f32 %v11820_v33, %v2874_v28  ;;  %v3132_v28 = vld [vmem:[%s11747_s5 + $0x30] sm:$0xff]  ;;  %v3243_v33 = vld [vmem:[%s11748_s6 + $0x8] sm:$0xff] }
 0x574   : > { %v2855_v41 = vpop.f32.mrf.mxu3  ;;  %v11803_v63 = vld [vmem:[#allocation26_spill] sm:$0xff] }
 0x575   : > { %v2877_v2 = vadd.f32 %v2855_v41, %v2669_v22  ;;  %v11809_v41 = vld [vmem:[#allocation3_spill] sm:$0xff]  ;;  %vm3094_vm5 = vcmp.gt.f32.partialorder %v3082_v1, 0.0 }
 0x576   : > { %v2246_v27 = vadd.f32 %v11809_v41, %v2015_v8  ;;  %v7447_v41 = vld [vmem:[%s11747_s5 + $0x80] sm:$0xff] }
 0x57c   : > { %v2858_v3 = vpop.f32.mrf.mxu3 }
 0x57d   : > { %v2878_v34 = vadd.f32 %v2858_v3, %v2670_v14  ;;  %v11818_v14 = vld [vmem:[#allocation2_spill] sm:$0xff] }
 0x584   : > { %v2861_v16 = vpop.f32.mrf.mxu3 }
 0x585   : > { %v2879_v62 = vadd.f32 %v2861_v16, %v2671_v32  ;;  %v2021_v16 = vadd.f32 %v9394_v10, %v9207_v53  ;;  %v2876_v53 = vadd.f32 %v11803_v63, %v2668_v0  ;;  %v3086_v10 = vadd.f32 %v3066_v42, %v2878_v34  ;;  %v11810_v42 = vld [vmem:[#allocation4_spill] sm:$0xff]  ;;  %v11822_v34 = vld [vmem:[#allocation17_spill] sm:$0xff] }
 0x586   : > { %v2455_v30 = vadd.f32 %v11810_v42, %v2247_v31  ;;  %v11824_v0 = vld [vmem:[#allocation16_spill] sm:$0xff]  ;;  %v7448_v42 = vld [vmem:[%s11747_s5 + $0x88] sm:$0xff] }
 0x587   : > { %v3087_v45 = vadd.f32 %v3069_v57, %v2879_v62  ;;  %v2248_v11 = vadd.f32 %v9354_v54, %v2021_v16  ;;  %v11807_v57 = vld [vmem:[#allocation25_spill] sm:$0xff]  ;;  %v11808_v54 = vld [vmem:[#allocation27_spill] sm:$0xff]  ;;  %v3084_v55 = vadd.f32 %v11813_v59, %v2876_v53  ;;  %v3110_v49 = vmul.f32 -6.5811, %v3086_v10  ;;  %v7451_v59 = vld [vmem:[%s11747_s5 + $0xa0] sm:$0xff] }
 0x588   : > { %v3085_v3 = vadd.f32 %v11808_v54, %v2877_v2  ;;  %vm3098_vm1 = vcmp.gt.f32.partialorder %v3086_v10, 0.0  ;;  %v11819_v62 = vld [vmem:[#allocation19_spill] sm:$0xff]  ;;  %v11827_v53 = vld [vmem:[#allocation13_spill] sm:$0xff] }
 0x589   : > { %v2456_v12 = vadd.f32 %v11805_v46, %v2248_v11  ;;  %vm3099_vm0 = vcmp.gt.f32.partialorder %v3087_v45, 0.0  ;;  %vm3096_vm3 = vcmp.gt.f32.partialorder %v3084_v55, 0.0  ;;  %v11825_v2 = vld [vmem:[#allocation15_spill] sm:$0xff] }
 0x58a   : > { %vm3097_vm2 = vcmp.gt.f32.partialorder %v3085_v3, 0.0  ;;  %v3127_v54 = vld [vmem:[%s11747_s5 + $0x8] sm:$0xff] }
 0x58b   : > { %v2664_v48 = vadd.f32 %v11815_v15, %v2456_v12  ;;  %v3135_v15 = vld [vmem:[%s11747_s5 + $0x48] sm:$0xff] }
 0x58c   : > { %v2864_v51 = vpop.f32.mrf.mxu3 }
 0x58d   : > { %v2880_v61 = vadd.f32 %v2864_v51, %v2672_v37  ;;  %v2459_v51 = vadd.f32 %v9530_v29, %v2251_v43  ;;  %v11814_v37 = vld [vmem:[#allocation5_spill] sm:$0xff]  ;;  %v3109_v43 = vmul.f32 -6.5811, %v3085_v3  ;;  %v2872_v8 = vadd.f32 %v11819_v62, %v2664_v48 }
 0x58e   : > { %v2454_v9 = vadd.f32 %v11814_v37, %v2246_v27  ;;  %v3129_v27 = vld [vmem:[%s11747_s5 + $0x18] sm:$0xff]  ;;  %v3134_v37 = vld [vmem:[%s11747_s5 + $0x40] sm:$0xff] }
 0x58f   : > { %v3088_v4 = vadd.f32 %v3072_v36, %v2880_v61  ;;  %v2457_v36 = vadd.f32 %v9519_v40, %v2249_v18  ;;  %v2667_v19 = vadd.f32 %v11802_v23, %v2459_v51  ;;  %v3111_v40 = vmul.f32 -6.5811, %v3087_v45  ;;  %v11817_v61 = vld [vmem:[#allocation22_spill] sm:$0xff]  ;;  %v7454_v48 = vld [vmem:[%s11747_s5 + $0xb8] sm:$0xff] }
 0x590   : > { %v3108_v51 = vmul.f32 -6.5811, %v3084_v55  ;;  %v9667_v21 = vsel %vm3097_vm2, %v3085_v3, %v3109_v43  ;;  %v7446_v3 = vld [vmem:[%s11747_s5 + $0x78] sm:$0xff]  ;;  %v3246_v43 = vld [vmem:[%s11748_s6 + $0x20] sm:$0xff] }
 0x591   : > { %v3112_v52 = vmul.f32 -6.5811, %v3088_v4  ;;  %vm3100_vm15 = vcmp.gt.f32.partialorder %v3088_v4, 0.0  ;;  %v2875_v6 = vadd.f32 %v11807_v57, %v2667_v19  ;;  %v2665_v39 = vadd.f32 %v11811_v20, %v2457_v36  ;;  %v11826_v36 = vld [vmem:[#allocation14_spill] sm:$0xff]  ;;  %v7449_v20 = vld [vmem:[%s11747_s5 + $0x90] sm:$0xff]  ;;  %3524 = vmatpush.msra.mxu1 %v3246_v43  ;;  %v3245_v62 = vld [vmem:[%s11748_s6 + $0x18] sm:$0xff] }
 0x592   : > { %v9651_v38 = vsel %vm3099_vm0, %v3087_v45, %v3111_v40  ;;  %v3080_v45 = vadd.f32 %v11825_v2, %v2872_v8  ;;  %v9674_v11 = vsel %vm3096_vm3, %v3084_v55, %v3108_v51  ;;  %v3128_v40 = vld [vmem:[%s11747_s5 + $0x10] sm:$0xff]  ;;  %v3133_v55 = vld [vmem:[%s11747_s5 + $0x38] sm:$0xff]  ;;  %v3139_v51 = vld [vmem:[%s11747_s5 + $0x68] sm:$0xff] }
 0x593   : > { %v9641_v35 = vsel %vm3100_vm15, %v3088_v4, %v3112_v52  ;;  %v2873_v32 = vadd.f32 %v11816_v13, %v2665_v39  ;;  %v3083_v25 = vadd.f32 %v11817_v61, %v2875_v6  ;;  %v7445_v6 = vld [vmem:[%s11747_s5 + $0x70] sm:$0xff]  ;;  %v3131_v39 = vld [vmem:[%s11747_s5 + $0x28] sm:$0xff]  ;;  %v3137_v61 = vld [vmem:[%s11747_s5 + $0x58] sm:$0xff]  ;;  %3525 = vmatpush.msra.mxu1 %v3245_v62 }
 0x594   : > { %v2867_v58 = vpop.f32.mrf.mxu3  ;;  %v3104_v52 = vmul.f32 -6.5811, %v3080_v45  ;;  %vm3092_vm7 = vcmp.gt.f32.partialorder %v3080_v45, 0.0  ;;  %v3136_v13 = vld [vmem:[%s11747_s5 + $0x50] sm:$0xff]  ;;  %v7604_v43 = vld [vmem:[%s11747_s5 + $0x1e0] sm:$0xff] }
 0x595   : > { %v2881_v26 = vadd.f32 %v2867_v58, %v2673_v47  ;;  %v2663_v47 = vadd.f32 %v11818_v14, %v2455_v30  ;;  %v9659_v58 = vsel %vm3098_vm1, %v3086_v10, %v3110_v49  ;;  %v3107_v18 = vmul.f32 -6.5811, %v3083_v25  ;;  %v3130_v30 = vld [vmem:[%s11747_s5 + $0x20] sm:$0xff]  ;;  %v7452_v49 = vld [vmem:[%s11747_s5 + $0xa8] sm:$0xff]  ;;  %v3244_v8 = vld [vmem:[%s11748_s6 + $0x10] sm:$0xff] }
 0x596   : > { %vm3095_vm4 = vcmp.gt.f32.partialorder %v3083_v25, 0.0  ;;  %v9696_v12 = vsel %vm3092_vm7, %v3080_v45, %v3104_v52  ;;  %v3138_v14 = vld [vmem:[%s11747_s5 + $0x60] sm:$0xff]  ;;  %3526 = vmatpush.msra.mxu1 %v3244_v8  ;;  %v7512_v45 = vld [vmem:[%s11747_s5 + $0x110] sm:$0xff]  ;;  %v7515_v52 = vld [vmem:[%s11747_s5 + $0x128] sm:$0xff] }
 0x597   : > { %v3089_v29 = vadd.f32 %v3075_v5, %v2881_v26  ;;  %v11821_v5 = vld [vmem:[#allocation12_spill] sm:$0xff]  ;;  %v2871_v4 = vadd.f32 %v11822_v34, %v2663_v47  ;;  %v11823_v26 = vld [vmem:[#allocation18_spill] sm:$0xff]  ;;  %v9680_v63 = vsel %vm3095_vm4, %v3083_v25, %v3107_v18  ;;  %v7456_v25 = vld [vmem:[%s11747_s5 + $0xc8] sm:$0xff] }
 0x598   : > { %v2662_v22 = vadd.f32 %v11821_v5, %v2454_v9  ;;  %v3081_v16 = vadd.f32 %v11823_v26, %v2873_v32  ;;  %v7453_v9 = vld [vmem:[%s11747_s5 + $0xb0] sm:$0xff]  ;;  %v7455_v32 = vld [vmem:[%s11747_s5 + $0xc0] sm:$0xff]  ;;  %3527 = vmatpush.msra.mxu1 %v3243_v33  ;;  %v7458_v5 = vld [vmem:[%s11747_s5 + $0xd8] sm:$0xff] }
 0x599   : > { %vm3101_vm14 = vcmp.gt.f32.partialorder %v3089_v29, 0.0  ;;  %v3113_v7 = vmul.f32 -6.5811, %v3089_v29  ;;  %v3079_v23 = vadd.f32 %v11826_v36, %v2871_v4  ;;  %v7457_v47 = vld [vmem:[%s11747_s5 + $0xd0] sm:$0xff]  ;;  %v7507_v34 = vld [vmem:[%s11747_s5 + $0xe8] sm:$0xff]  ;;  %v7509_v18 = vld [vmem:[%s11747_s5 + $0xf8] sm:$0xff] }
 0x59a   : > { %v2870_v50 = vadd.f32 %v11824_v0, %v2662_v22  ;;  %v3105_v19 = vmul.f32 -6.5811, %v3081_v16  ;;  %vm3093_vm6 = vcmp.gt.f32.partialorder %v3081_v16, 0.0  ;;  %v7506_v22 = vld [vmem:[%s11747_s5 + $0xe0] sm:$0xff]  ;;  %v7508_v4 = vld [vmem:[%s11747_s5 + $0xf0] sm:$0xff]  ;;  %v7513_v36 = vld [vmem:[%s11747_s5 + $0x118] sm:$0xff] }
 0x59b   : > { %v9632_v24 = vsel %vm3101_vm14, %v3089_v29, %v3113_v7  ;;  %v3106_v29 = vmul.f32 -6.5811, %v3082_v1  ;;  %v3103_v60 = vmul.f32 -6.5811, %v3079_v23  ;;  %vm3091_vm8 = vcmp.gt.f32.partialorder %v3079_v23, 0.0  ;;  %v7605_v8 = vld [vmem:[%s11747_s5 + $0x1e8] sm:$0xff] }
 0x59c   : > { %3187 = vmatpush.msrb.mxu2 %v9632_v24  ;;  %3308 = vmatpush.msrb.mxu3 %v9632_v24  ;;  %v3078_v10 = vadd.f32 %v11827_v53, %v2870_v50  ;;  %v9691_v31 = vsel %vm3093_vm6, %v3081_v16, %v3105_v19 }
 0x59d   : > { %3870 = vmatpush.msrb.mxu0 %v9632_v24  ;;  %v9686_v7 = vsel %vm3094_vm5, %v3082_v1, %v3106_v29  ;;  %v9701_v17 = vsel %vm3091_vm8, %v3079_v23, %v3103_v60  ;;  %v3242_v1 = vld [vmem:[%s11748_s6] sm:$0xff] }
 0x59e   : > { %3188 = vmatpush.msrb.mxu2 %v9641_v35  ;;  %3309 = vmatpush.msrb.mxu3 %v9641_v35  ;;  %v3102_v46 = vmul.f32 -6.5811, %v3078_v10  ;;  %vm3090_vm9 = vcmp.gt.f32.partialorder %v3078_v10, 0.0 }
 0x59f   : > { %3871 = vmatpush.msrb.mxu0 %v9641_v35  ;;  %3528 = vmatpush.msra.mxu1 %v3242_v1  ;;  %v7556_v1 = vld [vmem:[%s11747_s5 + $0x168] sm:$0xff] }
 0x5a0   : > { %3189 = vmatpush.msrb.mxu2 %v9651_v38  ;;  %3310 = vmatpush.msrb.mxu3 %v9651_v38  ;;  %v9709_v57 = vsel %vm3090_vm9, %v3078_v10, %v3102_v46 }
 0x5a1   : > { %3872 = vmatpush.msrb.mxu0 %v9651_v38 }
 0x5a2   : > { %3190 = vmatpush.msrb.mxu2 %v9659_v58  ;;  %3311 = vmatpush.msrb.mxu3 %v9659_v58 }
 0x5a3   : > { %3873 = vmatpush.msrb.mxu0 %v9659_v58 }
 0x5a4   : > { %3191 = vmatpush.msrb.mxu2 %v9667_v21  ;;  %3312 = vmatpush.msrb.mxu3 %v9667_v21 }
 0x5a5   : > { %3874 = vmatpush.msrb.mxu0 %v9667_v21 }
 0x5a6   : > { %3192 = vmatpush.msrb.mxu2 %v9674_v11  ;;  %3313 = vmatpush.msrb.mxu3 %v9674_v11 }
 0x5a7   : > { %3875 = vmatpush.msrb.mxu0 %v9674_v11 }
 0x5a8   : > { %3193 = vmatpush.msrb.mxu2 %v9680_v63  ;;  %3314 = vmatpush.msrb.mxu3 %v9680_v63 }
 0x5a9   : > { %3876 = vmatpush.msrb.mxu0 %v9680_v63 }
 0x5aa   : > { %3194 = vmatpush.msrb.mxu2 %v9686_v7  ;;  %3315 = vmatpush.msrb.mxu3 %v9686_v7 }
 0x5ab   : > { %3877 = vmatpush.msrb.mxu0 %v9686_v7 }
 0x5ac   : > { %3195 = vmatpush.msrb.mxu2 %v9691_v31  ;;  %3316 = vmatpush.msrb.mxu3 %v9691_v31 }
 0x5ad   : > { %3878 = vmatpush.msrb.mxu0 %v9691_v31 }
 0x5ae   : > { %3196 = vmatpush.msrb.mxu2 %v9696_v12  ;;  %3317 = vmatpush.msrb.mxu3 %v9696_v12 }
 0x5af   : > { %3879 = vmatpush.msrb.mxu0 %v9696_v12 }
 0x5b0   : > { %3197 = vmatpush.msrb.mxu2 %v9701_v17  ;;  %3318 = vmatpush.msrb.mxu3 %v9701_v17 }
 0x5b1   : > { %3880 = vmatpush.msrb.mxu0 %v9701_v17 }
 0x5b2   : > { %3198 = vmatpush.msrb.mxu2 %v9709_v57  ;;  %3319 = vmatpush.msrb.mxu3 %v9709_v57 }
 0x5b3   : > { %3881 = vmatpush.msrb.mxu0 %v9709_v57  ;;  %7431 = vmatmul.msk.f32.vlgmr.msrb.gmra.mxu2 %vm3140_vm10, %v3126_v56 }
 0x5b4   : > { %7459 = vmatmul.msk.f32.vlgmr.msrb.gmra.mxu3 %vm3140_vm10, %v7445_v6  ;;  %3633 = vmatpush.msra.mxu2 %v9632_v24  ;;  %v7538_v6 = vld [vmem:[%s11748_s6 + $0x70] sm:$0xff] }
 0x5b5   : > { %3747 = vmatpush.msra.mxu3 %v7538_v6  ;;  %v7564_v6 = vld [vmem:[%s11747_s5 + $0x1a8] sm:$0xff] }
 0x5b6   : > { %3634 = vmatpush.msra.mxu2 %v9641_v35 }
 0x5b8   : > { %3635 = vmatpush.msra.mxu2 %v9651_v38 }
 0x5ba   : > { %3636 = vmatpush.msra.mxu2 %v9659_v58 }
 0x5bb   : > { %7432 = vmatmul.msk.f32.gmra.mxu2 %vm3140_vm10, %v3127_v54  ;;  %v7537_v54 = vld [vmem:[%s11748_s6 + $0x68] sm:$0xff] }
 0x5bc   : > { %7460 = vmatmul.msk.f32.gmra.mxu3 %vm3140_vm10, %v7446_v3  ;;  %3637 = vmatpush.msra.mxu2 %v9667_v21  ;;  %v7518_v3 = vld [vmem:[%s11747_s5 + $0x140] sm:$0xff] }
 0x5bd   : > { %3748 = vmatpush.msra.mxu3 %v7537_v54  ;;  %v7630_v54 = vld [vmem:[%s11748_s6 + $0xb0] sm:$0xff] }
 0x5be   : > { %3638 = vmatpush.msra.mxu2 %v9674_v11 }
 0x5c0   : > { %3639 = vmatpush.msra.mxu2 %v9680_v63 }
 0x5c2   : > { %3640 = vmatpush.msra.mxu2 %v9686_v7 }
 0x5c3   : > { %7433 = vmatmul.msk.f32.gmra.mxu2 %vm3140_vm10, %v3128_v40  ;;  %v7536_v40 = vld [vmem:[%s11748_s6 + $0x60] sm:$0xff] }
 0x5c4   : > { %7461 = vmatmul.msk.f32.gmra.mxu3 %vm3140_vm10, %v7447_v41  ;;  %3641 = vmatpush.msra.mxu2 %v9691_v31  ;;  %v7535_v41 = vld [vmem:[%s11748_s6 + $0x58] sm:$0xff] }
 0x5c5   : > { %3749 = vmatpush.msra.mxu3 %v7536_v40  ;;  %v7629_v40 = vld [vmem:[%s11748_s6 + $0xa8] sm:$0xff] }
 0x5c6   : > { %3642 = vmatpush.msra.mxu2 %v9696_v12 }
 0x5c7   : > { %3750 = vmatpush.msra.mxu3 %v7535_v41 }
 0x5c8   : > { %3643 = vmatpush.msra.mxu2 %v9701_v17 }
 0x5ca   : > { %3644 = vmatpush.msra.mxu2 %v9709_v57 }
 0x5cb   : > { %7434 = vmatmul.msk.f32.gmra.mxu2 %vm3140_vm10, %v3129_v27 }
 0x5cc   : > { %4107 = vmatpush.msrb.mxu2 %v9632_v24  ;;  %7462 = vmatmul.msk.f32.gmra.mxu3 %vm3140_vm10, %v7448_v42 }
 0x5ce   : > { %4108 = vmatpush.msrb.mxu2 %v9641_v35 }
 0x5d0   : > { %4109 = vmatpush.msrb.mxu2 %v9651_v38 }
 0x5d2   : > { %4110 = vmatpush.msrb.mxu2 %v9659_v58 }
 0x5d3   : > { %7435 = vmatmul.msk.f32.gmra.mxu2 %vm3140_vm10, %v3130_v30  ;;  %v7534_v30 = vld [vmem:[%s11748_s6 + $0x50] sm:$0xff] }
 0x5d4   : > { %4111 = vmatpush.msrb.mxu2 %v9667_v21  ;;  %7463 = vmatmul.msk.f32.gmra.mxu3 %vm3140_vm10, %v7449_v20  ;;  %v7519_v20 = vld [vmem:[%s11747_s5 + $0x148] sm:$0xff] }
 0x5d5   : > { %3751 = vmatpush.msra.mxu3 %v7534_v30  ;;  %v7582_v30 = vld [vmem:[%s11748_s6 + $0x80] sm:$0xff] }
 0x5d6   : > { %4112 = vmatpush.msrb.mxu2 %v9674_v11 }
 0x5d8   : > { %4113 = vmatpush.msrb.mxu2 %v9680_v63 }
 0x5da   : > { %4114 = vmatpush.msrb.mxu2 %v9686_v7 }
 0x5db   : > { %7436 = vmatmul.msk.f32.gmra.mxu2 %vm3140_vm10, %v3131_v39 }
 0x5dc   : > { %4115 = vmatpush.msrb.mxu2 %v9691_v31  ;;  %7464 = vmatmul.msk.f32.gmra.mxu3 %vm3140_vm10, %v7450_v44 }
 0x5de   : > { %4116 = vmatpush.msrb.mxu2 %v9696_v12 }
 0x5e0   : > { %4117 = vmatpush.msrb.mxu2 %v9701_v17 }
 0x5e2   : > { %4118 = vmatpush.msrb.mxu2 %v9709_v57 }
 0x5e3   : > { %7437 = vmatmul.msk.f32.gmra.mxu2 %vm3140_vm10, %v3132_v28  ;;  %v7600_v28 = vld [vmem:[%s11747_s5 + $0x1c0] sm:$0xff] }
 0x5e4   : > { %7465 = vmatmul.msk.f32.gmra.mxu3 %vm3140_vm10, %v7451_v59 }
 0x5eb   : > { %7438 = vmatmul.msk.f32.gmra.mxu2 %vm3140_vm10, %v3133_v55 }
 0x5ec   : > { %7466 = vmatmul.msk.f32.gmra.mxu3 %vm3140_vm10, %v7452_v49  ;;  %v7601_v49 = vld [vmem:[%s11747_s5 + $0x1c8] sm:$0xff] }
 0x5f3   : > { %7439 = vmatmul.msk.f32.gmra.mxu2 %vm3140_vm10, %v3134_v37 }
 0x5f4   : > { %7467 = vmatmul.msk.f32.gmra.mxu3 %vm3140_vm10, %v7453_v9 }
 0x5fb   : > { %7440 = vmatmul.msk.f32.gmra.mxu2 %vm3140_vm10, %v3135_v15  ;;  %v7602_v15 = vld [vmem:[%s11747_s5 + $0x1d0] sm:$0xff] }
 0x5fc   : > { %7468 = vmatmul.msk.f32.gmra.mxu3 %vm3140_vm10, %v7454_v48  ;;  %v7553_v48 = vld [vmem:[%s11747_s5 + $0x150] sm:$0xff] }
 0x603   : > { %7441 = vmatmul.msk.f32.gmra.mxu2 %vm3140_vm10, %v3136_v13 }
 0x604   : > { %7469 = vmatmul.msk.f32.gmra.mxu3 %vm3140_vm10, %v7455_v32  ;;  %v7603_v32 = vld [vmem:[%s11747_s5 + $0x1d8] sm:$0xff] }
 0x60b   : > { %7442 = vmatmul.msk.f32.gmra.mxu2 %vm3140_vm10, %v3137_v61  ;;  %v7554_v61 = vld [vmem:[%s11747_s5 + $0x158] sm:$0xff] }
 0x60c   : > { %7470 = vmatmul.msk.f32.gmra.mxu3 %vm3140_vm10, %v7456_v25 }
 0x613   : > { %7443 = vmatmul.msk.f32.gmra.mxu2 %vm3140_vm10, %v3138_v14 }
 0x614   : > { %7471 = vmatmul.msk.f32.gmra.mxu3 %vm3140_vm10, %v7457_v47  ;;  %v7555_v47 = vld [vmem:[%s11747_s5 + $0x160] sm:$0xff] }
 0x61b   : > { %7444 = vmatmul.msk.f32.gmra.mxu2 %vm3140_vm10, %v3139_v51 }
 0x61c   : > { %7472 = vmatmul.msk.f32.gmra.mxu3 %vm3140_vm10, %v7458_v5  ;;  %v7606_v5 = vld [vmem:[%s11747_s5 + $0x1f0] sm:$0xff] }
 0x623   : > { %7520 = vmatmul.msk.f32.vlgmr.msra.gmra.mxu2 %vm3140_vm10, %v7506_v22 }
 0x624   : > { %4581 = vmatpush.msra.mxu2 %v9632_v24 }
 0x626   : > { %4582 = vmatpush.msra.mxu2 %v9641_v35 }
 0x628   : > { %4583 = vmatpush.msra.mxu2 %v9651_v38 }
 0x62a   : > { %4584 = vmatpush.msra.mxu2 %v9659_v58 }
 0x62b   : > { %7521 = vmatmul.msk.f32.gmra.mxu2 %vm3140_vm10, %v7507_v34  ;;  %v7557_v34 = vld [vmem:[%s11747_s5 + $0x170] sm:$0xff] }
 0x62c   : > { %4585 = vmatpush.msra.mxu2 %v9667_v21 }
 0x62e   : > { %4586 = vmatpush.msra.mxu2 %v9674_v11 }
 0x630   : > { %4587 = vmatpush.msra.mxu2 %v9680_v63 }
 0x632   : > { %4588 = vmatpush.msra.mxu2 %v9686_v7 }
 0x633   : > { %7522 = vmatmul.msk.f32.gmra.mxu2 %vm3140_vm10, %v7508_v4 }
 0x634   : > { %4589 = vmatpush.msra.mxu2 %v9691_v31 }
 0x636   : > { %v3200_v26 = vpop.f32.mrf.mxu2  ;;  %4590 = vmatpush.msra.mxu2 %v9696_v12 }
 0x637   : > { %v3321_v16 = vpop.f32.mrf.mxu3  ;;  %7492 = vmatmul.msk.f32.vlgmr.msra.gmra.mxu1 %vm3369_vm11, %v3200_v26  ;;  %v7607_v26 = vld [vmem:[%s11747_s5 + $0x1f8] sm:$0xff] }
 0x638   : > { %7478 = vmatmul.msk.f32.vlgmr.msra.gmra.mxu0 %vm3369_vm11, %v3321_v16  ;;  %4591 = vmatpush.msra.mxu2 %v9701_v17 }
 0x639   : > { %4344 = vmatpush.msra.mxu0 %v9632_v24  ;;  %v7510_v24 = vld [vmem:[%s11747_s5 + $0x100] sm:$0xff] }
 0x63a   : > { %4592 = vmatpush.msra.mxu2 %v9709_v57 }
 0x63b   : > { %4345 = vmatpush.msra.mxu0 %v9641_v35  ;;  %7523 = vmatmul.msk.f32.gmra.mxu2 %vm3140_vm10, %v7509_v18  ;;  %v7558_v18 = vld [vmem:[%s11747_s5 + $0x178] sm:$0xff] }
 0x63d   : > { %4346 = vmatpush.msra.mxu0 %v9651_v38 }
 0x63e   : > { %v3203_v0 = vpop.f32.mrf.mxu2 }
 0x63f   : > { %4347 = vmatpush.msra.mxu0 %v9659_v58  ;;  %v3324_v50 = vpop.f32.mrf.mxu3  ;;  %7493 = vmatmul.msk.f32.gmra.mxu1 %vm3369_vm11, %v3203_v0  ;;  %v7511_v58 = vld [vmem:[%s11747_s5 + $0x108] sm:$0xff] }
 0x640   : > { %7479 = vmatmul.msk.f32.gmra.mxu0 %vm3369_vm11, %v3324_v50  ;;  %v7608_v50 = vld [vmem:[%s11747_s5 + $0x200] sm:$0xff] }
 0x641   : > { %4348 = vmatpush.msra.mxu0 %v9667_v21 }
 0x643   : > { %4349 = vmatpush.msra.mxu0 %v9674_v11  ;;  %7524 = vmatmul.msk.f32.gmra.mxu2 %vm3140_vm10, %v7510_v24 }
 0x645   : > { %4350 = vmatpush.msra.mxu0 %v9680_v63  ;;  %v7514_v63 = vld [vmem:[%s11747_s5 + $0x120] sm:$0xff] }
 0x646   : > { %v3206_v35 = vpop.f32.mrf.mxu2 }
 0x647   : > { %4351 = vmatpush.msra.mxu0 %v9686_v7  ;;  %v3327_v38 = vpop.f32.mrf.mxu3  ;;  %7494 = vmatmul.msk.f32.gmra.mxu1 %vm3369_vm11, %v3206_v35  ;;  %v7559_v35 = vld [vmem:[%s11747_s5 + $0x180] sm:$0xff] }
 0x648   : > { %7480 = vmatmul.msk.f32.gmra.mxu0 %vm3369_vm11, %v3327_v38 }
 0x649   : > { %4352 = vmatpush.msra.mxu0 %v9691_v31  ;;  %v7516_v31 = vld [vmem:[%s11747_s5 + $0x130] sm:$0xff] }
 0x64b   : > { %4353 = vmatpush.msra.mxu0 %v9696_v12  ;;  %7525 = vmatmul.msk.f32.gmra.mxu2 %vm3140_vm10, %v7511_v58  ;;  %v7609_v58 = vld [vmem:[%s11747_s5 + $0x208] sm:$0xff] }
 0x64d   : > { %4354 = vmatpush.msra.mxu0 %v9701_v17  ;;  %v7517_v17 = vld [vmem:[%s11747_s5 + $0x138] sm:$0xff] }
 0x64e   : > { %v3209_v21 = vpop.f32.mrf.mxu2 }
 0x64f   : > { %4355 = vmatpush.msra.mxu0 %v9709_v57  ;;  %v3330_v2 = vpop.f32.mrf.mxu3  ;;  %7495 = vmatmul.msk.f32.gmra.mxu1 %vm3369_vm11, %v3209_v21 }
 0x650   : > { %7481 = vmatmul.msk.f32.gmra.mxu0 %vm3369_vm11, %v3330_v2  ;;  %v7560_v2 = vld [vmem:[%s11747_s5 + $0x188] sm:$0xff] }
 0x653   : > { %7526 = vmatmul.msk.f32.gmra.mxu2 %vm3140_vm10, %v7512_v45 }
 0x656   : > { %v3212_v29 = vpop.f32.mrf.mxu2 }
 0x657   : > { %v3333_v11 = vpop.f32.mrf.mxu3  ;;  %7496 = vmatmul.msk.f32.gmra.mxu1 %vm3369_vm11, %v3212_v29  ;;  %v7610_v29 = vld [vmem:[%s11747_s5 + $0x210] sm:$0xff] }
 0x658   : > { %7482 = vmatmul.msk.f32.gmra.mxu0 %vm3369_vm11, %v3333_v11 }
 0x65b   : > { %7527 = vmatmul.msk.f32.gmra.mxu2 %vm3140_vm10, %v7513_v36  ;;  %v7561_v36 = vld [vmem:[%s11747_s5 + $0x190] sm:$0xff] }
 0x65e   : > { %v3215_v23 = vpop.f32.mrf.mxu2 }
 0x65f   : > { %v3336_v19 = vpop.f32.mrf.mxu3  ;;  %7497 = vmatmul.msk.f32.gmra.mxu1 %vm3369_vm11, %v3215_v23 }
 0x660   : > { %7483 = vmatmul.msk.f32.gmra.mxu0 %vm3369_vm11, %v3336_v19  ;;  %v7611_v19 = vld [vmem:[%s11747_s5 + $0x218] sm:$0xff] }
 0x663   : > { %7528 = vmatmul.msk.f32.gmra.mxu2 %vm3140_vm10, %v7514_v63 }
 0x666   : > { %v3218_v53 = vpop.f32.mrf.mxu2 }
 0x667   : > { %v3339_v10 = vpop.f32.mrf.mxu3  ;;  %7498 = vmatmul.msk.f32.gmra.mxu1 %vm3369_vm11, %v3218_v53  ;;  %v7562_v53 = vld [vmem:[%s11747_s5 + $0x198] sm:$0xff] }
 0x668   : > { %7484 = vmatmul.msk.f32.gmra.mxu0 %vm3369_vm11, %v3339_v10 }
 0x66b   : > { %7529 = vmatmul.msk.f32.gmra.mxu2 %vm3140_vm10, %v7515_v52  ;;  %v7632_v52 = vld [vmem:[%s11748_s6 + $0xc0] sm:$0xff] }
 0x66c   : > { %4221 = vmatpush.msrb.mxu3 %v7632_v52 }
 0x66e   : > { %v3221_v7 = vpop.f32.mrf.mxu2 }
 0x66f   : > { %v3342_v60 = vpop.f32.mrf.mxu3  ;;  %7499 = vmatmul.msk.f32.gmra.mxu1 %vm3369_vm11, %v3221_v7  ;;  %v7612_v7 = vld [vmem:[%s11747_s5 + $0x220] sm:$0xff] }
 0x670   : > { %7485 = vmatmul.msk.f32.gmra.mxu0 %vm3369_vm11, %v3342_v60 }
 0x673   : > { %7530 = vmatmul.msk.f32.gmra.mxu2 %vm3140_vm10, %v7516_v31  ;;  %v7563_v31 = vld [vmem:[%s11747_s5 + $0x1a0] sm:$0xff] }
 0x676   : > { %v3224_v46 = vpop.f32.mrf.mxu2 }
 0x677   : > { %v3345_v12 = vpop.f32.mrf.mxu3  ;;  %7500 = vmatmul.msk.f32.gmra.mxu1 %vm3369_vm11, %v3224_v46  ;;  %v7585_v46 = vld [vmem:[%s11748_s6 + $0x98] sm:$0xff] }
 0x678   : > { %7486 = vmatmul.msk.f32.gmra.mxu0 %vm3369_vm11, %v3345_v12  ;;  %3984 = vmatpush.msrb.mxu1 %v7585_v46 }
 0x67b   : > { %7531 = vmatmul.msk.f32.gmra.mxu2 %vm3140_vm10, %v7517_v17  ;;  %v7631_v17 = vld [vmem:[%s11748_s6 + $0xb8] sm:$0xff] }
 0x67c   : > { %4222 = vmatpush.msrb.mxu3 %v7631_v17  ;;  %v7653_v17 = vld [vmem:[%s11747_s5 + $0x260] sm:$0xff] }
 0x67e   : > { %v3227_v56 = vpop.f32.mrf.mxu2  ;;  %4223 = vmatpush.msrb.mxu3 %v7630_v54 }
 0x67f   : > { %v3348_v57 = vpop.f32.mrf.mxu3  ;;  %7501 = vmatmul.msk.f32.gmra.mxu1 %vm3369_vm11, %v3227_v56  ;;  %v7613_v56 = vld [vmem:[%s11747_s5 + $0x228] sm:$0xff] }
 0x680   : > { %7487 = vmatmul.msk.f32.gmra.mxu0 %vm3369_vm11, %v3348_v57  ;;  %4224 = vmatpush.msrb.mxu3 %v7629_v40 }
 0x683   : > { %7532 = vmatmul.msk.f32.gmra.mxu2 %vm3140_vm10, %v7518_v3  ;;  %v7584_v3 = vld [vmem:[%s11748_s6 + $0x90] sm:$0xff] }
 0x684   : > { %3985 = vmatpush.msrb.mxu1 %v7584_v3 }
 0x686   : > { %v3230_v27 = vpop.f32.mrf.mxu2 }
 0x687   : > { %v3351_v42 = vpop.f32.mrf.mxu3  ;;  %7502 = vmatmul.msk.f32.gmra.mxu1 %vm3369_vm11, %v3230_v27  ;;  %v7583_v27 = vld [vmem:[%s11748_s6 + $0x88] sm:$0xff] }
 0x688   : > { %7488 = vmatmul.msk.f32.gmra.mxu0 %vm3369_vm11, %v3351_v42  ;;  %v7628_v42 = vld [vmem:[%s11748_s6 + $0xa0] sm:$0xff]  ;;  %3986 = vmatpush.msrb.mxu1 %v7583_v27 }
 0x689   : > { %4225 = vmatpush.msrb.mxu3 %v7628_v42  ;;  %v7704_v42 = vld [vmem:[%s11747_s5 + $0x2f0] sm:$0xff] }
 0x68a   : > { %3987 = vmatpush.msrb.mxu1 %v7582_v30 }
 0x68b   : > { %7533 = vmatmul.msk.f32.gmra.mxu2 %vm3140_vm10, %v7519_v20  ;;  %v7694_v20 = vld [vmem:[%s11747_s5 + $0x2a0] sm:$0xff] }
 0x68e   : > { %v3233_v39 = vpop.f32.mrf.mxu2 }
 0x68f   : > { %v3354_v44 = vpop.f32.mrf.mxu3  ;;  %7503 = vmatmul.msk.f32.gmra.mxu1 %vm3369_vm11, %v3233_v39 }
 0x690   : > { %7489 = vmatmul.msk.f32.gmra.mxu0 %vm3369_vm11, %v3354_v44  ;;  %v7565_v44 = vld [vmem:[%s11747_s5 + $0x1b0] sm:$0xff] }
 0x693   : > { %7614 = vmatmul.msk.f32.vlgmr.msrb.gmra.mxu2 %vm3140_vm10, %v7600_v28  ;;  %v7581_v28 = vld [vmem:[%s11748_s6 + $0x78] sm:$0xff] }
 0x694   : > { %3988 = vmatpush.msrb.mxu1 %v7581_v28  ;;  %v7655_v28 = vld [vmem:[%s11747_s5 + $0x270] sm:$0xff] }
 0x696   : > { %v3236_v59 = vpop.f32.mrf.mxu2 }
 0x697   : > { %v3357_v55 = vpop.f32.mrf.mxu3  ;;  %7504 = vmatmul.msk.f32.gmra.mxu1 %vm3369_vm11, %v3236_v59 }
 0x698   : > { %7490 = vmatmul.msk.f32.gmra.mxu0 %vm3369_vm11, %v3357_v55  ;;  %v7695_v55 = vld [vmem:[%s11747_s5 + $0x2a8] sm:$0xff] }
 0x69b   : > { %7615 = vmatmul.msk.f32.gmra.mxu2 %vm3140_vm10, %v7601_v49 }
 0x69e   : > { %v3239_v37 = vpop.f32.mrf.mxu2 }
 0x69f   : > { %v3360_v9 = vpop.f32.mrf.mxu3  ;;  %7505 = vmatmul.msk.f32.gmra.mxu1 %vm3369_vm11, %v3239_v37  ;;  %v7566_v37 = vld [vmem:[%s11747_s5 + $0x1b8] sm:$0xff] }
 0x6a0   : > { %7491 = vmatmul.msk.f32.gmra.mxu0 %vm3369_vm11, %v3360_v9 }
 0x6a3   : > { %7616 = vmatmul.msk.f32.gmra.mxu2 %vm3140_vm10, %v7602_v15  ;;  %v7696_v15 = vld [vmem:[%s11747_s5 + $0x2b0] sm:$0xff] }
 0x6a6   : > { %v3646_v13 = vpop.f32.mrf.mxu2 }
 0x6a7   : > { %7539 = vmatmul.msk.f32.vlgmr.msra.gmra.mxu3 %vm3369_vm11, %v3646_v13  ;;  %v7647_v13 = vld [vmem:[%s11747_s5 + $0x230] sm:$0xff] }
 0x6a8   : > { %7567 = vmatmul.msk.f32.vlgmr.msrb.gmra.mxu0 %vm3140_vm10, %v7553_v48 }
 0x6ab   : > { %7617 = vmatmul.msk.f32.gmra.mxu2 %vm3140_vm10, %v7603_v32 }
 0x6ae   : > { %v3649_v25 = vpop.f32.mrf.mxu2 }
 0x6af   : > { %7540 = vmatmul.msk.f32.gmra.mxu3 %vm3369_vm11, %v3649_v25  ;;  %v7697_v25 = vld [vmem:[%s11747_s5 + $0x2b8] sm:$0xff] }
 0x6b0   : > { %7568 = vmatmul.msk.f32.gmra.mxu0 %vm3140_vm10, %v7554_v61 }
 0x6b3   : > { %7618 = vmatmul.msk.f32.gmra.mxu2 %vm3140_vm10, %v7604_v43 }
 0x6b4   : > { %v10185_v61 = vpop.f32.mrf.mxu1 }
 0x6b5   : > { %v10016_v14 = vpop.f32.mrf.mxu0 }
 0x6b6   : > { %v3652_v62 = vpop.f32.mrf.mxu2 }
 0x6b7   : > { %7541 = vmatmul.msk.f32.gmra.mxu3 %vm3369_vm11, %v3652_v62 }
 0x6b8   : > { %7569 = vmatmul.msk.f32.gmra.mxu0 %vm3140_vm10, %v7555_v47  ;;  %v7648_v47 = vld [vmem:[%s11747_s5 + $0x238] sm:$0xff] }
 0x6bb   : > { %7619 = vmatmul.msk.f32.gmra.mxu2 %vm3140_vm10, %v7605_v8  ;;  %v7698_v8 = vld [vmem:[%s11747_s5 + $0x2c0] sm:$0xff] }
 0x6bd   : > { %v10027_v33 = vpop.f32.mrf.mxu0 }
 0x6be   : > { %v3655_v51 = vpop.f32.mrf.mxu2 }
 0x6bf   : > { %7542 = vmatmul.msk.f32.gmra.mxu3 %vm3369_vm11, %v3655_v51 }
 0x6c0   : > { %7570 = vmatmul.msk.f32.gmra.mxu0 %vm3140_vm10, %v7556_v1  ;;  %v10201_v1 = vpop.f32.mrf.mxu1 }
 0x6c3   : > { %7620 = vmatmul.msk.f32.gmra.mxu2 %vm3140_vm10, %v7606_v5  ;;  %v7649_v5 = vld [vmem:[%s11747_s5 + $0x240] sm:$0xff] }
 0x6c5   : > { %v10038_v22 = vpop.f32.mrf.mxu0 }
 0x6c6   : > { %v3658_v4 = vpop.f32.mrf.mxu2 }
 0x6c7   : > { %7543 = vmatmul.msk.f32.gmra.mxu3 %vm3369_vm11, %v3658_v4  ;;  %v7699_v4 = vld [vmem:[%s11747_s5 + $0x2c8] sm:$0xff] }
 0x6c8   : > { %7571 = vmatmul.msk.f32.gmra.mxu0 %vm3140_vm10, %v7557_v34 }
 0x6cb   : > { %7621 = vmatmul.msk.f32.gmra.mxu2 %vm3140_vm10, %v7607_v26 }
 0x6cd   : > { %v10049_v16 = vpop.f32.mrf.mxu0 }
 0x6ce   : > { %v3661_v0 = vpop.f32.mrf.mxu2 }
 0x6cf   : > { %7544 = vmatmul.msk.f32.gmra.mxu3 %vm3369_vm11, %v3661_v0 }
 0x6d0   : > { %7572 = vmatmul.msk.f32.gmra.mxu0 %vm3140_vm10, %v7558_v18  ;;  %v10216_v18 = vpop.f32.mrf.mxu1 }
 0x6d3   : > { %7622 = vmatmul.msk.f32.gmra.mxu2 %vm3140_vm10, %v7608_v50  ;;  %v7650_v50 = vld [vmem:[%s11747_s5 + $0x248] sm:$0xff] }
 0x6d5   : > { %v10060_v24 = vpop.f32.mrf.mxu0 }
 0x6d6   : > { %v3664_v38 = vpop.f32.mrf.mxu2 }
 0x6d7   : > { %7545 = vmatmul.msk.f32.gmra.mxu3 %vm3369_vm11, %v3664_v38  ;;  %v7700_v38 = vld [vmem:[%s11747_s5 + $0x2d0] sm:$0xff] }
 0x6d8   : > { %7573 = vmatmul.msk.f32.gmra.mxu0 %vm3140_vm10, %v7559_v35 }
 0x6db   : > { %7623 = vmatmul.msk.f32.gmra.mxu2 %vm3140_vm10, %v7609_v58 }
 0x6dd   : > { %v10071_v21 = vpop.f32.mrf.mxu0 }
 0x6de   : > { %v3667_v45 = vpop.f32.mrf.mxu2 }
 0x6df   : > { %7546 = vmatmul.msk.f32.gmra.mxu3 %vm3369_vm11, %v3667_v45  ;;  %v7651_v45 = vld [vmem:[%s11747_s5 + $0x250] sm:$0xff] }
 0x6e0   : > { %7574 = vmatmul.msk.f32.gmra.mxu0 %vm3140_vm10, %v7560_v2 }
 0x6e3   : > { %7624 = vmatmul.msk.f32.gmra.mxu2 %vm3140_vm10, %v7610_v29  ;;  %v10234_v29 = vpop.f32.mrf.mxu1 }
 0x6e5   : > { %v10082_v11 = vpop.f32.mrf.mxu0 }
 0x6e6   : > { %v3670_v23 = vpop.f32.mrf.mxu2 }
 0x6e7   : > { %7547 = vmatmul.msk.f32.gmra.mxu3 %vm3369_vm11, %v3670_v23  ;;  %v7701_v23 = vld [vmem:[%s11747_s5 + $0x2d8] sm:$0xff] }
 0x6e8   : > { %7575 = vmatmul.msk.f32.gmra.mxu0 %vm3140_vm10, %v7561_v36 }
 0x6eb   : > { %7625 = vmatmul.msk.f32.gmra.mxu2 %vm3140_vm10, %v7611_v19 }
 0x6ed   : > { %v10093_v63 = vpop.f32.mrf.mxu0 }
 0x6ee   : > { %v3673_v10 = vpop.f32.mrf.mxu2 }
 0x6ef   : > { %7548 = vmatmul.msk.f32.gmra.mxu3 %vm3369_vm11, %v3673_v10  ;;  %v7652_v10 = vld [vmem:[%s11747_s5 + $0x258] sm:$0xff] }
 0x6f0   : > { %7576 = vmatmul.msk.f32.gmra.mxu0 %vm3140_vm10, %v7562_v53 }
 0x6f3   : > { %7626 = vmatmul.msk.f32.gmra.mxu2 %vm3140_vm10, %v7612_v7  ;;  %v10250_v7 = vpop.f32.mrf.mxu1 }
 0x6f5   : > { %v10107_v60 = vpop.f32.mrf.mxu0 }
 0x6f6   : > { %v3676_v12 = vpop.f32.mrf.mxu2 }
 0x6f7   : > { %7549 = vmatmul.msk.f32.gmra.mxu3 %vm3369_vm11, %v3676_v12 }
 0x6f8   : > { %7577 = vmatmul.msk.f32.gmra.mxu0 %vm3140_vm10, %v7563_v31  ;;  %v7702_v31 = vld [vmem:[%s11747_s5 + $0x2e0] sm:$0xff] }
 0x6fb   : > { %7627 = vmatmul.msk.f32.gmra.mxu2 %vm3140_vm10, %v7613_v56  ;;  %v10267_v54 = vpop.f32.mrf.mxu1 }
 0x6fd   : > { %v10124_v57 = vpop.f32.mrf.mxu0 }
 0x6fe   : > { %v3679_v41 = vpop.f32.mrf.mxu2 }
 0x6ff   : > { %7550 = vmatmul.msk.f32.gmra.mxu3 %vm3369_vm11, %v3679_v41  ;;  %v7654_v41 = vld [vmem:[%s11747_s5 + $0x268] sm:$0xff] }
 0x700   : > { %7578 = vmatmul.msk.f32.gmra.mxu0 %vm3140_vm10, %v7564_v6  ;;  %v7703_v6 = vld [vmem:[%s11747_s5 + $0x2e8] sm:$0xff] }
 0x703   : > { %7708 = vmatmul.msk.f32.vlgmr.msra.gmra.mxu2 %vm3140_vm10, %v7694_v20  ;;  %v10284_v20 = vpop.f32.mrf.mxu1 }
 0x705   : > { %v10153_v39 = vpop.f32.mrf.mxu0 }
 0x706   : > { %v3682_v59 = vpop.f32.mrf.mxu2 }
 0x707   : > { %7551 = vmatmul.msk.f32.gmra.mxu3 %vm3369_vm11, %v3682_v59 }
 0x708   : > { %7579 = vmatmul.msk.f32.gmra.mxu0 %vm3140_vm10, %v7565_v44 }
 0x70b   : > { %7709 = vmatmul.msk.f32.gmra.mxu2 %vm3140_vm10, %v7695_v55  ;;  %v7705_v55 = vld [vmem:[%s11747_s5 + $0x2f8] sm:$0xff] }
 0x70d   : > { %v10167_v49 = vpop.f32.mrf.mxu0 }
 0x70e   : > { %v3685_v9 = vpop.f32.mrf.mxu2 }
 0x70f   : > { %7552 = vmatmul.msk.f32.gmra.mxu3 %vm3369_vm11, %v3685_v9 }
 0x710   : > { %7580 = vmatmul.msk.f32.gmra.mxu0 %vm3140_vm10, %v7566_v37 }
 0x713   : > { %7710 = vmatmul.msk.f32.gmra.mxu2 %vm3140_vm10, %v7696_v15  ;;  %v7656_v15 = vld [vmem:[%s11747_s5 + $0x278] sm:$0xff] }
 0x715   : > { %v10178_v48 = vpop.f32.mrf.mxu0 }
 0x716   : > { %v4120_v32 = vpop.f32.mrf.mxu2 }
 0x717   : > { %7633 = vmatmul.msk.f32.vlgmr.msrb.gmra.mxu3 %vm3369_vm11, %v4120_v32 }
 0x718   : > { %7661 = vmatmul.msk.f32.vlgmr.msra.gmra.mxu0 %vm3140_vm10, %v7647_v13  ;;  %v10302_v13 = vpop.f32.mrf.mxu1 }
 0x71b   : > { %7711 = vmatmul.msk.f32.gmra.mxu2 %vm3140_vm10, %v7697_v25  ;;  %v7706_v25 = vld [vmem:[%s11747_s5 + $0x300] sm:$0xff] }
 0x71d   : > { %v10191_v43 = vpop.f32.mrf.mxu0 }
 0x71e   : > { %v4123_v62 = vpop.f32.mrf.mxu2 }
 0x71f   : > { %7634 = vmatmul.msk.f32.gmra.mxu3 %vm3369_vm11, %v4123_v62  ;;  %v7726_v62 = vld [vmem:[%s11748_s6 + $0x110] sm:$0xff] }
 0x720   : > { %7662 = vmatmul.msk.f32.gmra.mxu0 %vm3140_vm10, %v7648_v47  ;;  %4695 = vmatpush.msra.mxu3 %v7726_v62 }
 0x723   : > { %7712 = vmatmul.msk.f32.gmra.mxu2 %vm3140_vm10, %v7698_v8 }
 0x725   : > { %v3883_v51 = vpop.f32.mrf.mxu0 }
 0x726   : > { %7586 = vmatmul.msk.f32.vlgmr.msrb.gmra.mxu1 %vm3369_vm11, %v3883_v51  ;;  %v4126_v34 = vpop.f32.mrf.mxu2  ;;  %v7657_v51 = vld [vmem:[%s11747_s5 + $0x280] sm:$0xff] }
 0x727   : > { %7635 = vmatmul.msk.f32.gmra.mxu3 %vm3369_vm11, %v4126_v34 }
 0x728   : > { %7663 = vmatmul.msk.f32.gmra.mxu0 %vm3140_vm10, %v7649_v5  ;;  %v7679_v5 = vld [vmem:[%s11748_s6 + $0xe8] sm:$0xff] }
 0x729   : > { %4458 = vmatpush.msra.mxu1 %v7679_v5 }
 0x72a   : > { %v10213_v26 = vpop.f32.mrf.mxu3 }
 0x72b   : > { %7713 = vmatmul.msk.f32.gmra.mxu2 %vm3140_vm10, %v7699_v4  ;;  %v10324_v4 = vpop.f32.mrf.mxu1 }
 0x72d   : > { %v3886_v0 = vpop.f32.mrf.mxu0 }
 0x72e   : > { %7587 = vmatmul.msk.f32.gmra.mxu1 %vm3369_vm11, %v3886_v0  ;;  %v4129_v35 = vpop.f32.mrf.mxu2  ;;  %v7707_v0 = vld [vmem:[%s11747_s5 + $0x308] sm:$0xff] }
 0x72f   : > { %7636 = vmatmul.msk.f32.gmra.mxu3 %vm3369_vm11, %v4129_v35  ;;  %v7725_v35 = vld [vmem:[%s11748_s6 + $0x108] sm:$0xff] }
 0x730   : > { %7664 = vmatmul.msk.f32.gmra.mxu0 %vm3140_vm10, %v7650_v50  ;;  %4696 = vmatpush.msra.mxu3 %v7725_v35 }
 0x732   : > { %v10227_v58 = vpop.f32.mrf.mxu3 }
 0x733   : > { %7714 = vmatmul.msk.f32.gmra.mxu2 %vm3140_vm10, %v7700_v38 }
 0x735   : > { %v3889_v2 = vpop.f32.mrf.mxu0 }
 0x736   : > { %7588 = vmatmul.msk.f32.gmra.mxu1 %vm3369_vm11, %v3889_v2  ;;  %v4132_v36 = vpop.f32.mrf.mxu2  ;;  %v7658_v2 = vld [vmem:[%s11747_s5 + $0x288] sm:$0xff] }
 0x737   : > { %7637 = vmatmul.msk.f32.gmra.mxu3 %vm3369_vm11, %v4132_v36  ;;  %v7678_v36 = vld [vmem:[%s11748_s6 + $0xe0] sm:$0xff] }
 0x738   : > { %7665 = vmatmul.msk.f32.gmra.mxu0 %vm3140_vm10, %v7651_v45  ;;  %v7724_v45 = vld [vmem:[%s11748_s6 + $0x100] sm:$0xff]  ;;  %4459 = vmatpush.msra.mxu1 %v7678_v36  ;;  %v3531_v36 = vadd.f32 %v10185_v61, %v10016_v14 }
 0x739   : > { %4697 = vmatpush.msra.mxu3 %v7724_v45 }
 0x73a   : > { %v10241_v19 = vpop.f32.mrf.mxu3 }
 0x73b   : > { %7715 = vmatmul.msk.f32.gmra.mxu2 %vm3140_vm10, %v7701_v23  ;;  %v7723_v23 = vld [vmem:[%s11748_s6 + $0xf8] sm:$0xff] }
 0x73c   : > { %4698 = vmatpush.msra.mxu3 %v7723_v23  ;;  %v3795_v23 = vadd.f32 %v10213_v26, %v3531_v36 }
 0x73d   : > { %v3892_v53 = vpop.f32.mrf.mxu0 }
 0x73e   : > { %7589 = vmatmul.msk.f32.gmra.mxu1 %vm3369_vm11, %v3892_v53  ;;  %v4135_v52 = vpop.f32.mrf.mxu2  ;;  %v7677_v53 = vld [vmem:[%s11748_s6 + $0xd8] sm:$0xff] }
 0x73f   : > { %7638 = vmatmul.msk.f32.gmra.mxu3 %vm3369_vm11, %v4135_v52  ;;  %v7722_v52 = vld [vmem:[%s11748_s6 + $0xf0] sm:$0xff]  ;;  %4460 = vmatpush.msra.mxu1 %v7677_v53 }
 0x740   : > { %7666 = vmatmul.msk.f32.gmra.mxu0 %vm3140_vm10, %v7652_v10  ;;  %4699 = vmatpush.msra.mxu3 %v7722_v52 }
 0x742   : > { %v10255_v46 = vpop.f32.mrf.mxu3 }
 0x743   : > { %7716 = vmatmul.msk.f32.gmra.mxu2 %vm3140_vm10, %v7702_v31  ;;  %v10356_v31 = vpop.f32.mrf.mxu1 }
 0x745   : > { %v3895_v12 = vpop.f32.mrf.mxu0 }
 0x746   : > { %7590 = vmatmul.msk.f32.gmra.mxu1 %vm3369_vm11, %v3895_v12  ;;  %v4138_v56 = vpop.f32.mrf.mxu2 }
 0x747   : > { %7639 = vmatmul.msk.f32.gmra.mxu3 %vm3369_vm11, %v4138_v56 }
 0x748   : > { %7667 = vmatmul.msk.f32.gmra.mxu0 %vm3140_vm10, %v7653_v17  ;;  %v7676_v17 = vld [vmem:[%s11748_s6 + $0xd0] sm:$0xff] }
 0x749   : > { %4461 = vmatpush.msra.mxu1 %v7676_v17 }
 0x74a   : > { %v10269_v3 = vpop.f32.mrf.mxu3 }
 0x74b   : > { %7717 = vmatmul.msk.f32.gmra.mxu2 %vm3140_vm10, %v7703_v6  ;;  %v7659_v6 = vld [vmem:[%s11747_s5 + $0x290] sm:$0xff] }
 0x74d   : > { %v3898_v40 = vpop.f32.mrf.mxu0 }
 0x74e   : > { %7591 = vmatmul.msk.f32.gmra.mxu1 %vm3369_vm11, %v3898_v40  ;;  %v4141_v27 = vpop.f32.mrf.mxu2  ;;  %v7675_v40 = vld [vmem:[%s11748_s6 + $0xc8] sm:$0xff] }
 0x74f   : > { %7640 = vmatmul.msk.f32.gmra.mxu3 %vm3369_vm11, %v4141_v27  ;;  %4462 = vmatpush.msra.mxu1 %v7675_v40  ;;  %v3534_v40 = vadd.f32 %v10201_v1, %v10027_v33 }
 0x750   : > { %7668 = vmatmul.msk.f32.gmra.mxu0 %vm3140_vm10, %v7654_v41 }
 0x751   : > { %v3796_v14 = vadd.f32 %v10227_v58, %v3534_v40 }
 0x752   : > { %v10281_v30 = vpop.f32.mrf.mxu3 }
 0x753   : > { %7718 = vmatmul.msk.f32.gmra.mxu2 %vm3140_vm10, %v7704_v42  ;;  %v10374_v42 = vpop.f32.mrf.mxu1 }
 0x755   : > { %v3901_v44 = vpop.f32.mrf.mxu0 }
 0x756   : > { %7592 = vmatmul.msk.f32.gmra.mxu1 %vm3369_vm11, %v3901_v44  ;;  %v4144_v59 = vpop.f32.mrf.mxu2 }
 0x757   : > { %7641 = vmatmul.msk.f32.gmra.mxu3 %vm3369_vm11, %v4144_v59 }
 0x758   : > { %7669 = vmatmul.msk.f32.gmra.mxu0 %vm3140_vm10, %v7655_v28  ;;  %v7660_v28 = vld [vmem:[%s11747_s5 + $0x298] sm:$0xff] }
 0x75a   : > { %v10295_v37 = vpop.f32.mrf.mxu3 }
 0x75b   : > { %7719 = vmatmul.msk.f32.gmra.mxu2 %vm3140_vm10, %v7705_v55 }
 0x75d   : > { %v3904_v9 = vpop.f32.mrf.mxu0 }
 0x75e   : > { %7593 = vmatmul.msk.f32.gmra.mxu1 %vm3369_vm11, %v3904_v9  ;;  %v4147_v32 = vpop.f32.mrf.mxu2 }
 0x75f   : > { %7642 = vmatmul.msk.f32.gmra.mxu3 %vm3369_vm11, %v4147_v32 }
 0x760   : > { %7670 = vmatmul.msk.f32.gmra.mxu0 %vm3140_vm10, %v7656_v15  ;;  %v10385_v15 = vpop.f32.mrf.mxu1 }
 0x762   : > { %v10309_v47 = vpop.f32.mrf.mxu3 }
 0x763   : > { %7720 = vmatmul.msk.f32.gmra.mxu2 %vm3140_vm10, %v7706_v25 }
 0x765   : > { %v3907_v8 = vpop.f32.mrf.mxu0 }
 0x766   : > { %7594 = vmatmul.msk.f32.gmra.mxu1 %vm3369_vm11, %v3907_v8  ;;  %v4150_v34 = vpop.f32.mrf.mxu2 }
 0x767   : > { %7643 = vmatmul.msk.f32.gmra.mxu3 %vm3369_vm11, %v4150_v34 }
 0x768   : > { %7671 = vmatmul.msk.f32.gmra.mxu0 %vm3140_vm10, %v7657_v51  ;;  %v10392_v51 = vpop.f32.mrf.mxu1 }
 0x76a   : > { %v10329_v50 = vpop.f32.mrf.mxu3 }
 0x76b   : > { %7721 = vmatmul.msk.f32.gmra.mxu2 %vm3140_vm10, %v7707_v0 }
 0x76d   : > { %v3910_v38 = vpop.f32.mrf.mxu0 }
 0x76e   : > { %7595 = vmatmul.msk.f32.gmra.mxu1 %vm3369_vm11, %v3910_v38  ;;  %v4153_v10 = vpop.f32.mrf.mxu2 }
 0x76f   : > { %7644 = vmatmul.msk.f32.gmra.mxu3 %vm3369_vm11, %v4153_v10 }
 0x770   : > { %7672 = vmatmul.msk.f32.gmra.mxu0 %vm3140_vm10, %v7658_v2  ;;  %v10398_v35 = vpop.f32.mrf.mxu1 }
 0x772   : > { %v10358_v12 = vpop.f32.mrf.mxu3 }
 0x775   : > { %v3913_v56 = vpop.f32.mrf.mxu0 }
 0x776   : > { %7596 = vmatmul.msk.f32.gmra.mxu1 %vm3369_vm11, %v3913_v56  ;;  %v4156_v41 = vpop.f32.mrf.mxu2 }
 0x777   : > { %7645 = vmatmul.msk.f32.gmra.mxu3 %vm3369_vm11, %v4156_v41 }
 0x778   : > { %7673 = vmatmul.msk.f32.gmra.mxu0 %vm3140_vm10, %v7659_v6 }
 0x77a   : > { %v10372_v27 = vpop.f32.mrf.mxu3 }
 0x77d   : > { %v3916_v44 = vpop.f32.mrf.mxu0 }
 0x77e   : > { %7597 = vmatmul.msk.f32.gmra.mxu1 %vm3369_vm11, %v3916_v44  ;;  %v4159_v59 = vpop.f32.mrf.mxu2 }
 0x77f   : > { %7646 = vmatmul.msk.f32.gmra.mxu3 %vm3369_vm11, %v4159_v59 }
 0x780   : > { %7674 = vmatmul.msk.f32.gmra.mxu0 %vm3140_vm10, %v7660_v28  ;;  %vm4815_vm10 = vcmask 916480  }
 0x782   : > { %v10382_v55 = vpop.f32.mrf.mxu3 }
 0x785   : > { %v3919_v9 = vpop.f32.mrf.mxu0 }
 0x786   : > { %7598 = vmatmul.msk.f32.gmra.mxu1 %vm3369_vm11, %v3919_v9  ;;  %v4594_v32 = vpop.f32.mrf.mxu2  ;;  %v3537_v9 = vadd.f32 %v10216_v18, %v10038_v22 }
 0x787   : > { %7727 = vmatmul.msk.f32.vlgmr.msra.gmra.mxu3 %vm3369_vm11, %v4594_v32 }
 0x788   : > { %v3797_v33 = vadd.f32 %v10241_v19, %v3537_v9 }
 0x78a   : > { %v10388_v25 = vpop.f32.mrf.mxu3 }
 0x78d   : > { %v3922_v62 = vpop.f32.mrf.mxu0 }
 0x78e   : > { %7599 = vmatmul.msk.f32.gmra.mxu1 %vm3369_vm11, %v3922_v62  ;;  %v4597_v8 = vpop.f32.mrf.mxu2 }
 0x78f   : > { %7728 = vmatmul.msk.f32.gmra.mxu3 %vm3369_vm11, %v4597_v8 }
 0x792   : > { %v10394_v5 = vpop.f32.mrf.mxu3 }
 0x795   : > { %v4357_v34 = vpop.f32.mrf.mxu0 }
 0x796   : > { %7680 = vmatmul.msk.f32.vlgmr.msra.gmra.mxu1 %vm3369_vm11, %v4357_v34  ;;  %v4600_v0 = vpop.f32.mrf.mxu2 }
 0x797   : > { %7729 = vmatmul.msk.f32.gmra.mxu3 %vm3369_vm11, %v4600_v0  ;;  %v3540_v0 = vadd.f32 %v10234_v29, %v10049_v16 }
 0x799   : > { %v3798_v22 = vadd.f32 %v10255_v46, %v3540_v0 }
 0x79a   : > { %v4227_v38 = vpop.f32.mrf.mxu3 }
 0x79d   : > { %v4360_v2 = vpop.f32.mrf.mxu0 }
 0x79e   : > { %7681 = vmatmul.msk.f32.gmra.mxu1 %vm3369_vm11, %v4360_v2  ;;  %v4603_v45 = vpop.f32.mrf.mxu2 }
 0x79f   : > { %7730 = vmatmul.msk.f32.gmra.mxu3 %vm3369_vm11, %v4603_v45 }
 0x7a2   : > { %v4230_v10 = vpop.f32.mrf.mxu3 }
 0x7a3   : > { %v3990_v53 = vpop.f32.mrf.mxu1 }
 0x7a4   : > { %v4032_v52 = vadd.f32 %v3990_v53, %v3795_v23 }
 0x7a5   : > { %v4363_v17 = vpop.f32.mrf.mxu0 }
 0x7a6   : > { %v10405_v56 = vadd.f32 %v4227_v38, %v4032_v52  ;;  %7682 = vmatmul.msk.f32.gmra.mxu1 %vm3369_vm11, %v4363_v17  ;;  %v4606_v6 = vpop.f32.mrf.mxu2 }
 0x7a7   : > { %7731 = vmatmul.msk.f32.gmra.mxu3 %vm3369_vm11, %v4606_v6 }
 0x7a8   : > { %11828 = vst [vmem:[#allocation9_spill] sm:$0xff] %v10405_v56 }
 0x7aa   : > { %v4233_v41 = vpop.f32.mrf.mxu3 }
 0x7ab   : > { %v3993_v61 = vpop.f32.mrf.mxu1 }
 0x7ac   : > { %v4033_v44 = vadd.f32 %v3993_v61, %v3796_v14 }
 0x7ad   : > { %v4366_v26 = vpop.f32.mrf.mxu0 }
 0x7ae   : > { %v10412_v28 = vadd.f32 %v4230_v10, %v4033_v44  ;;  %7683 = vmatmul.msk.f32.gmra.mxu1 %vm3369_vm11, %v4366_v26  ;;  %v4609_v59 = vpop.f32.mrf.mxu2 }
 0x7af   : > { %7732 = vmatmul.msk.f32.gmra.mxu3 %vm3369_vm11, %v4609_v59 }
 0x7b0   : > { %11829 = vst [vmem:[#allocation26_spill] sm:$0xff] %v10412_v28 }
 0x7b2   : > { %v4236_v32 = vpop.f32.mrf.mxu3 }
 0x7b3   : > { %v3996_v1 = vpop.f32.mrf.mxu1 }
 0x7b4   : > { %v4034_v62 = vadd.f32 %v3996_v1, %v3797_v33 }
 0x7b5   : > { %v4369_v58 = vpop.f32.mrf.mxu0 }
 0x7b6   : > { %v10419_v8 = vadd.f32 %v4233_v41, %v4034_v62  ;;  %7684 = vmatmul.msk.f32.gmra.mxu1 %vm3369_vm11, %v4369_v58  ;;  %v4612_v34 = vpop.f32.mrf.mxu2 }
 0x7b7   : > { %7733 = vmatmul.msk.f32.gmra.mxu3 %vm3369_vm11, %v4612_v34 }
 0x7b8   : > { %11830 = vst [vmem:[#allocation8_spill] sm:$0xff] %v10419_v8  ;;  %v7793_v8 = vld [vmem:[%s11750_s8 + $0x50] sm:$0xff] }
 0x7ba   : > { %v10426_v38 = vpop.f32.mrf.mxu3 }
 0x7bb   : > { %v3999_v18 = vpop.f32.mrf.mxu1  ;;  %11831 = vst [vmem:[#allocation7_spill] sm:$0xff] %v10426_v38  ;;  %v3564_v38 = vadd.f32 %v10385_v15, %v10167_v49 }
 0x7bc   : > { %v4035_v19 = vadd.f32 %v3999_v18, %v3798_v22 }
 0x7bd   : > { %v4372_v2 = vpop.f32.mrf.mxu0 }
 0x7be   : > { %v10428_v45 = vadd.f32 %v4236_v32, %v4035_v19  ;;  %7685 = vmatmul.msk.f32.gmra.mxu1 %vm3369_vm11, %v4372_v2  ;;  %v4615_v36 = vpop.f32.mrf.mxu2 }
 0x7bf   : > { %7734 = vmatmul.msk.f32.gmra.mxu3 %vm3369_vm11, %v4615_v36 }
 0x7c0   : > { %11832 = vst [vmem:[#allocation10_spill] sm:$0xff] %v10428_v45 }
 0x7c2   : > { %v10434_v53 = vpop.f32.mrf.mxu3 }
 0x7c3   : > { %v10432_v23 = vpop.f32.mrf.mxu1  ;;  %11833 = vst [vmem:[#allocation25_spill] sm:$0xff] %v10434_v53  ;;  %v3806_v53 = vadd.f32 %v10382_v55, %v3564_v38  ;;  %v3552_v55 = vadd.f32 %v10302_v13, %v10093_v63  ;;  %v3546_v63 = vadd.f32 %v10267_v54, %v10071_v21 }
 0x7c5   : > { %v4375_v16 = vpop.f32.mrf.mxu0 }
 0x7c6   : > { %7686 = vmatmul.msk.f32.gmra.mxu1 %vm3369_vm11, %v4375_v16  ;;  %v4618_v29 = vpop.f32.mrf.mxu2 }
 0x7c7   : > { %7735 = vmatmul.msk.f32.gmra.mxu3 %vm3369_vm11, %v4618_v29 }
 0x7ca   : > { %v10440_v10 = vpop.f32.mrf.mxu3 }
 0x7cb   : > { %v10438_v46 = vpop.f32.mrf.mxu1 }
 0x7cd   : > { %v4378_v52 = vpop.f32.mrf.mxu0 }
 0x7ce   : > { %7687 = vmatmul.msk.f32.gmra.mxu1 %vm3369_vm11, %v4378_v52  ;;  %v4621_v17 = vpop.f32.mrf.mxu2 }
 0x7cf   : > { %7736 = vmatmul.msk.f32.gmra.mxu3 %vm3369_vm11, %v4621_v17 }
 0x7d2   : > { %v10446_v40 = vpop.f32.mrf.mxu3 }
 0x7d3   : > { %v10444_v6 = vpop.f32.mrf.mxu1 }
 0x7d5   : > { %v4381_v14 = vpop.f32.mrf.mxu0 }
 0x7d6   : > { %7688 = vmatmul.msk.f32.gmra.mxu1 %vm3369_vm11, %v4381_v14  ;;  %v4624_v61 = vpop.f32.mrf.mxu2 }
 0x7d7   : > { %7737 = vmatmul.msk.f32.gmra.mxu3 %vm3369_vm11, %v4624_v61 }
 0x7da   : > { %v10452_v44 = vpop.f32.mrf.mxu3 }
 0x7db   : > { %v10450_v41 = vpop.f32.mrf.mxu1 }
 0x7dd   : > { %v4384_v26 = vpop.f32.mrf.mxu0 }
 0x7de   : > { %7689 = vmatmul.msk.f32.gmra.mxu1 %vm3369_vm11, %v4384_v26  ;;  %v4627_v59 = vpop.f32.mrf.mxu2 }
 0x7df   : > { %7738 = vmatmul.msk.f32.gmra.mxu3 %vm3369_vm11, %v4627_v59 }
 0x7e2   : > { %v10458_v33 = vpop.f32.mrf.mxu3 }
 0x7e3   : > { %v10456_v9 = vpop.f32.mrf.mxu1 }
 0x7e5   : > { %v4387_v1 = vpop.f32.mrf.mxu0 }
 0x7e6   : > { %7690 = vmatmul.msk.f32.gmra.mxu1 %vm3369_vm11, %v4387_v1  ;;  %v4630_v32 = vpop.f32.mrf.mxu2 }
 0x7e7   : > { %7739 = vmatmul.msk.f32.gmra.mxu3 %vm3369_vm11, %v4630_v32 }
 0x7ea   : > { %v10464_v58 = vpop.f32.mrf.mxu3 }
 0x7eb   : > { %v10462_v62 = vpop.f32.mrf.mxu1 }
 0x7ed   : > { %v4390_v34 = vpop.f32.mrf.mxu0 }
 0x7ee   : > { %7691 = vmatmul.msk.f32.gmra.mxu1 %vm3369_vm11, %v4390_v34  ;;  %v4633_v0 = vpop.f32.mrf.mxu2 }
 0x7ef   : > { %7740 = vmatmul.msk.f32.gmra.mxu3 %vm3369_vm11, %v4633_v0 }
 0x7f2   : > { %v10468_v18 = vpop.f32.mrf.mxu3 }
 0x7f3   : > { %v4020_v22 = vpop.f32.mrf.mxu1 }
 0x7f5   : > { %v4393_v19 = vpop.f32.mrf.mxu0 }
 0x7f6   : > { %7692 = vmatmul.msk.f32.gmra.mxu1 %vm3369_vm11, %v4393_v19 }
 0x7fa   : > { %v4263_v36 = vpop.f32.mrf.mxu3 }
 0x7fb   : > { %v4023_v2 = vpop.f32.mrf.mxu1 }
 0x7fc   : > { %v4043_v15 = vadd.f32 %v4023_v2, %v3806_v53 }
 0x7fd   : > { %v4396_v16 = vpop.f32.mrf.mxu0 }
 0x7fe   : > { %7693 = vmatmul.msk.f32.gmra.mxu1 %vm3369_vm11, %v4396_v16  ;;  %vm5072_vm11 = vcmask 392192  }
 0x802   : > { %v10472_v52 = vpop.f32.mrf.mxu3 }
 0x803   : > { %v4026_v29 = vpop.f32.mrf.mxu1 }
 0x80a   : > { %v10474_v14 = vpop.f32.mrf.mxu3 }
 0x80b   : > { %v4029_v17 = vpop.f32.mrf.mxu1  ;;  %11834 = vst [vmem:[#allocation27_spill] sm:$0xff] %v10474_v14 }
 0x812   : > { %v10478_v26 = vpop.f32.mrf.mxu3 }
 0x813   : > { %v10476_v61 = vpop.f32.mrf.mxu1  ;;  %11836 = vst [vmem:[#allocation4_spill] sm:$0xff] %v10478_v26 }
 0x814   : > { %11835 = vst [vmem:[#allocation3_spill] sm:$0xff] %v10476_v61 }
 0x81a   : > { %v10482_v1 = vpop.f32.mrf.mxu3 }
 0x81b   : > { %v10480_v59 = vpop.f32.mrf.mxu1  ;;  %11838 = vst [vmem:[#allocation23_spill] sm:$0xff] %v10482_v1 }
 0x81c   : > { %11837 = vst [vmem:[#allocation11_spill] sm:$0xff] %v10480_v59 }
 0x822   : > { %v10486_v34 = vpop.f32.mrf.mxu3 }
 0x823   : > { %v10484_v32 = vpop.f32.mrf.mxu1  ;;  %11840 = vst [vmem:[#allocation5_spill] sm:$0xff] %v10486_v34 }
 0x824   : > { %11839 = vst [vmem:[#allocation24_spill] sm:$0xff] %v10484_v32 }
 0x82a   : > { %v10490_v19 = vpop.f32.mrf.mxu3 }
 0x82b   : > { %v10488_v0 = vpop.f32.mrf.mxu1  ;;  %11842 = vst [vmem:[#allocation21_spill] sm:$0xff] %v10490_v19  ;;  %v7794_v19 = vld [vmem:[%s11750_s8 + $0x58] sm:$0xff] }
 0x82c   : > { %11841 = vst [vmem:[#allocation6_spill] sm:$0xff] %v10488_v0  ;;  %5131 = vmatpush.msrb.mxu2 %v7794_v19  ;;  %v7792_v0 = vld [vmem:[%s11750_s8 + $0x48] sm:$0xff]  ;;  %v7790_v19 = vld [vmem:[%s11750_s8 + $0x38] sm:$0xff] }
 0x82e   : > { %5132 = vmatpush.msrb.mxu2 %v7793_v8  ;;  %v7789_v8 = vld [vmem:[%s11750_s8 + $0x30] sm:$0xff] }
 0x830   : > { %5133 = vmatpush.msrb.mxu2 %v7792_v0  ;;  %v3567_v0 = vadd.f32 %v10392_v51, %v10178_v48 }
 0x832   : > { %v10494_v56 = vpop.f32.mrf.mxu3 }
 0x833   : > { %v10492_v16 = vpop.f32.mrf.mxu1  ;;  %11844 = vst [vmem:[#allocation2_spill] sm:$0xff] %v10494_v56 }
 0x834   : > { %11843 = vst [vmem:[#allocation22_spill] sm:$0xff] %v10492_v16 }
 0x83a   : > { %v10498_v61 = vpop.f32.mrf.mxu3 }
 0x83b   : > { %v10496_v14 = vpop.f32.mrf.mxu1  ;;  %11846 = vst [vmem:[#allocation20_spill] sm:$0xff] %v10498_v61  ;;  %v7791_v61 = vld [vmem:[%s11750_s8 + $0x40] sm:$0xff] }
 0x83c   : > { %11845 = vst [vmem:[#allocation19_spill] sm:$0xff] %v10496_v14  ;;  %5134 = vmatpush.msrb.mxu2 %v7791_v61  ;;  %v3807_v61 = vadd.f32 %v10388_v25, %v3567_v0  ;;  %v3555_v25 = vadd.f32 %v10324_v4, %v10107_v60  ;;  %v3802_v60 = vadd.f32 %v10309_v47, %v3552_v55  ;;  %v11862_v55 = vld [vmem:[#allocation10_spill] sm:$0xff] }
 0x83e   : > { %5135 = vmatpush.msrb.mxu2 %v7790_v19  ;;  %v3561_v19 = vadd.f32 %v10374_v42, %v10153_v39 }
 0x840   : > { %5136 = vmatpush.msrb.mxu2 %v7789_v8  ;;  %v4044_v8 = vadd.f32 %v4026_v29, %v3807_v61  ;;  %v3805_v48 = vadd.f32 %v10372_v27, %v3561_v19 }
 0x842   : > { %v10502_v59 = vpop.f32.mrf.mxu3  ;;  %v4042_v42 = vadd.f32 %v4020_v22, %v3805_v48  ;;  %v4281_v51 = vadd.f32 %v4263_v36, %v4044_v8 }
 0x843   : > { %v10500_v26 = vpop.f32.mrf.mxu1  ;;  %11848 = vst [vmem:[#allocation17_spill] sm:$0xff] %v10502_v59  ;;  %v11858_v0 = vld [vmem:[#allocation19_spill] sm:$0xff] }
 0x844   : > { %11847 = vst [vmem:[#allocation12_spill] sm:$0xff] %v10500_v26  ;;  %v3570_v26 = vadd.f32 %v10398_v35, %v10191_v43  ;;  %v3803_v35 = vadd.f32 %v10329_v50, %v3555_v25  ;;  %v4039_v50 = vadd.f32 %v10450_v41, %v3802_v60 }
 0x846   : > { %v3808_v49 = vadd.f32 %v10394_v5, %v3570_v26  ;;  %v3549_v5 = vadd.f32 %v10284_v20, %v10082_v11  ;;  %v4040_v4 = vadd.f32 %v10456_v9, %v3803_v35  ;;  %v3543_v9 = vadd.f32 %v10250_v7, %v10060_v24  ;;  %v11863_v35 = vld [vmem:[#allocation6_spill] sm:$0xff] }
 0x848   : > { %v4045_v43 = vadd.f32 %v4029_v17, %v3808_v49  ;;  %v3801_v13 = vadd.f32 %v10295_v37, %v3549_v5  ;;  %v4277_v21 = vadd.f32 %v10452_v44, %v4040_v4  ;;  %v3799_v41 = vadd.f32 %v10269_v3, %v3543_v9  ;;  %v11865_v4 = vld [vmem:[#allocation8_spill] sm:$0xff] }
 0x84a   : > { %v10506_v28 = vpop.f32.mrf.mxu3  ;;  %v4282_v38 = vadd.f32 %v10472_v52, %v4045_v43  ;;  %v4038_v2 = vadd.f32 %v10444_v6, %v3801_v13  ;;  %v4036_v7 = vadd.f32 %v10432_v23, %v3799_v41  ;;  %v11859_v19 = vld [vmem:[#allocation17_spill] sm:$0xff] }
 0x84b   : > { %v10504_v1 = vpop.f32.mrf.mxu1  ;;  %11850 = vst [vmem:[#allocation16_spill] sm:$0xff] %v10506_v28 }
 0x84c   : > { %11849 = vst [vmem:[#allocation18_spill] sm:$0xff] %v10504_v1  ;;  %v3558_v1 = vadd.f32 %v10356_v31, %v10124_v57  ;;  %v4280_v31 = vadd.f32 %v10468_v18, %v4043_v15  ;;  %v11860_v15 = vld [vmem:[#allocation22_spill] sm:$0xff] }
 0x84e   : > { %v3804_v39 = vadd.f32 %v10358_v12, %v3558_v1  ;;  %v4279_v12 = vadd.f32 %v10464_v58, %v4042_v42  ;;  %v3800_v58 = vadd.f32 %v10281_v30, %v3546_v63  ;;  %v4275_v30 = vadd.f32 %v10440_v10, %v4038_v2  ;;  %v11872_v2 = vld [vmem:[#allocation3_spill] sm:$0xff] }
 0x850   : > { %v4041_v57 = vadd.f32 %v10462_v62, %v3804_v39  ;;  %v4037_v29 = vadd.f32 %v10438_v46, %v3800_v58  ;;  %v11854_v46 = vld [vmem:[#allocation25_spill] sm:$0xff]  ;;  %v11861_v39 = vld [vmem:[#allocation20_spill] sm:$0xff] }
 0x851   : > { %v11871_v58 = vld [vmem:[#allocation9_spill] sm:$0xff] }
 0x852   : > { %v10510_v32 = vpop.f32.mrf.mxu3  ;;  %v4278_v11 = vadd.f32 %v10458_v33, %v4041_v57  ;;  %v4276_v33 = vadd.f32 %v10446_v40, %v4039_v50  ;;  %v4274_v40 = vadd.f32 %v11854_v46, %v4037_v29  ;;  %v11856_v23 = vld [vmem:[#allocation16_spill] sm:$0xff]  ;;  %v4509_v57 = vadd.f32 %v11863_v35, %v11862_v55  ;;  %v4799_v46 = vld [vmem:[%s11749_s7] sm:$0xff]  ;;  %v4808_v55 = vld [vmem:[%s11749_s7 + $0x48] sm:$0xff] }
 0x853   : > { %v10508_v34 = vpop.f32.mrf.mxu1  ;;  %11851 = vst [vmem:[#allocation15_spill] sm:$0xff] %v10510_v32  ;;  %v11874_v29 = vld [vmem:[#allocation4_spill] sm:$0xff]  ;;  %v7766_v35 = vld [vmem:[%s11749_s7 + $0xc8] sm:$0xff] }
 0x854   : > { %v4511_v61 = vadd.f32 %v11858_v0, %v4274_v40  ;;  %v4803_v0 = vld [vmem:[%s11749_s7 + $0x20] sm:$0xff] }
 0x85a   : > { %v4731_v45 = vpop.f32.mrf.mxu3  ;;  %v11853_v44 = vld [vmem:[#allocation15_spill] sm:$0xff] }
 0x85b   : > { %v4491_v56 = vpop.f32.mrf.mxu1 }
 0x85c   : > { %v4515_v54 = vadd.f32 %v4491_v56, %v4278_v11  ;;  %v11852_v56 = vld [vmem:[#allocation18_spill] sm:$0xff] }
 0x85d   : > { %v4513_v6 = vadd.f32 %v11852_v56, %v4276_v33 }
 0x85f   : > { %v4750_v8 = vadd.f32 %v11859_v19, %v4513_v6  ;;  %v4804_v19 = vld [vmem:[%s11749_s7 + $0x28] sm:$0xff] }
 0x861   : > { %v4778_v5 = vmul.f32 -4.1687, %v4750_v8  ;;  %vm4764_vm2 = vcmp.gt.f32.partialorder %v4750_v8, 0.0 }
 0x862   : > { %v4734_v59 = vpop.f32.mrf.mxu3 }
 0x863   : > { %v4494_v16 = vpop.f32.mrf.mxu1  ;;  %v10622_v9 = vsel %vm4764_vm2, %v4750_v8, %v4778_v5  ;;  %v7762_v8 = vld [vmem:[%s11749_s7 + $0xa8] sm:$0xff]  ;;  %v4933_v5 = vld [vmem:[%s11750_s8 + $0x20] sm:$0xff] }
 0x864   : > { %v4516_v20 = vadd.f32 %v4494_v16, %v4279_v12  ;;  %v11866_v12 = vld [vmem:[#allocation24_spill] sm:$0xff] }
 0x866   : > { %v4753_v52 = vadd.f32 %v4731_v45, %v4516_v20  ;;  %v11855_v45 = vld [vmem:[#allocation12_spill] sm:$0xff]  ;;  %v11870_v20 = vld [vmem:[#allocation5_spill] sm:$0xff] }
 0x868   : > { %v4781_v10 = vmul.f32 -4.1687, %v4753_v52  ;;  %vm4767_vm15 = vcmp.gt.f32.partialorder %v4753_v52, 0.0 }
 0x86a   : > { %v4737_v28 = vpop.f32.mrf.mxu3  ;;  %v10598_v43 = vsel %vm4767_vm15, %v4753_v52, %v4781_v10  ;;  %v7759_v10 = vld [vmem:[%s11749_s7 + $0x90] sm:$0xff] }
 0x86b   : > { %v4497_v14 = vpop.f32.mrf.mxu1 }
 0x86c   : > { %v4517_v53 = vadd.f32 %v4497_v14, %v4280_v31  ;;  %v4752_v14 = vadd.f32 %v11853_v44, %v4515_v54  ;;  %v11864_v31 = vld [vmem:[#allocation2_spill] sm:$0xff]  ;;  %v11873_v54 = vld [vmem:[#allocation23_spill] sm:$0xff] }
 0x86e   : > { %v4754_v37 = vadd.f32 %v4734_v59, %v4517_v53  ;;  %v4512_v59 = vadd.f32 %v11855_v45, %v4275_v30  ;;  %v4780_v48 = vmul.f32 -4.1687, %v4752_v14  ;;  %vm4766_vm0 = vcmp.gt.f32.partialorder %v4752_v14, 0.0  ;;  %v11867_v53 = vld [vmem:[#allocation21_spill] sm:$0xff]  ;;  %v7757_v45 = vld [vmem:[%s11749_s7 + $0x80] sm:$0xff] }
 0x870   : > { %v4782_v3 = vmul.f32 -4.1687, %v4754_v37  ;;  %vm4768_vm14 = vcmp.gt.f32.partialorder %v4754_v37, 0.0  ;;  %v4749_v42 = vadd.f32 %v11861_v39, %v4512_v59  ;;  %v10606_v60 = vsel %vm4766_vm0, %v4752_v14, %v4780_v48  ;;  %v4800_v59 = vld [vmem:[%s11749_s7 + $0x8] sm:$0xff]  ;;  %v4805_v48 = vld [vmem:[%s11749_s7 + $0x30] sm:$0xff]  ;;  %v7764_v39 = vld [vmem:[%s11749_s7 + $0xb8] sm:$0xff] }
 0x872   : > { %v4740_v22 = vpop.f32.mrf.mxu3  ;;  %v10591_v49 = vsel %vm4768_vm14, %v4754_v37, %v4782_v3  ;;  %v4777_v13 = vmul.f32 -4.1687, %v4749_v42  ;;  %vm4763_vm3 = vcmp.gt.f32.partialorder %v4749_v42, 0.0 }
 0x873   : > { %v4500_v32 = vpop.f32.mrf.mxu1 }
 0x874   : > { %v4518_v27 = vadd.f32 %v4500_v32, %v4281_v51  ;;  %v10630_v41 = vsel %vm4763_vm3, %v4749_v42, %v4777_v13  ;;  %v4807_v42 = vld [vmem:[%s11749_s7 + $0x40] sm:$0xff] }
 0x875   : > { %v4929_v13 = vld [vmem:[%s11750_s8] sm:$0xff] }
 0x876   : > { %v4755_v47 = vadd.f32 %v4737_v28, %v4518_v27  ;;  %v4514_v28 = vadd.f32 %v10508_v34, %v4277_v21  ;;  %v11857_v34 = vld [vmem:[#allocation7_spill] sm:$0xff]  ;;  %v4748_v27 = vadd.f32 %v11864_v31, %v4511_v61  ;;  %v4506_v21 = vadd.f32 %v11872_v2, %v11871_v58  ;;  %v7761_v61 = vld [vmem:[%s11749_s7 + $0xa0] sm:$0xff]  ;;  %v7767_v31 = vld [vmem:[%s11749_s7 + $0xd0] sm:$0xff] }
 0x877   : > { %v4273_v16 = vadd.f32 %v11857_v34, %v4036_v7  ;;  %v4802_v34 = vld [vmem:[%s11749_s7 + $0x18] sm:$0xff] }
 0x878   : > { %v4783_v17 = vmul.f32 -4.1687, %v4755_v47  ;;  %vm4769_vm13 = vcmp.gt.f32.partialorder %v4755_v47, 0.0  ;;  %v4751_v1 = vadd.f32 %v11856_v23, %v4514_v28  ;;  %vm4762_vm4 = vcmp.gt.f32.partialorder %v4748_v27, 0.0  ;;  %v7758_v23 = vld [vmem:[%s11749_s7 + $0x88] sm:$0xff]  ;;  %v4814_v58 = vld [vmem:[%s11749_s7 + $0x78] sm:$0xff] }
 0x879   : > { %v4510_v25 = vadd.f32 %v11860_v15, %v4273_v16  ;;  %v7760_v16 = vld [vmem:[%s11749_s7 + $0x98] sm:$0xff]  ;;  %v7763_v15 = vld [vmem:[%s11749_s7 + $0xb0] sm:$0xff] }
 0x87a   : > { %v10583_v32 = vsel %vm4769_vm13, %v4755_v47, %v4783_v17  ;;  %v4779_v51 = vmul.f32 -4.1687, %v4751_v1  ;;  %vm4765_vm1 = vcmp.gt.f32.partialorder %v4751_v1, 0.0  ;;  %v4746_v47 = vadd.f32 %v11870_v20, %v4509_v57  ;;  %v11875_v17 = vld [vmem:[#allocation27_spill] sm:$0xff]  ;;  %v4809_v57 = vld [vmem:[%s11749_s7 + $0x50] sm:$0xff]  ;;  %v7772_v2 = vld [vmem:[%s11749_s7 + $0xf8] sm:$0xff] }
 0x87b   : > { %v4503_v62 = vpop.f32.mrf.mxu1  ;;  %v4747_v63 = vadd.f32 %v11867_v53, %v4510_v25  ;;  %v4806_v25 = vld [vmem:[%s11749_s7 + $0x38] sm:$0xff]  ;;  %v4931_v53 = vld [vmem:[%s11750_s8 + $0x10] sm:$0xff]  ;;  %v7770_v20 = vld [vmem:[%s11749_s7 + $0xe8] sm:$0xff] }
 0x87c   : > { %v4519_v18 = vadd.f32 %v4503_v62, %v4282_v38  ;;  %v4508_v38 = vadd.f32 %v11866_v12, %v11865_v4  ;;  %v10614_v50 = vsel %vm4765_vm1, %v4751_v1, %v4779_v51  ;;  %v11868_v62 = vld [vmem:[#allocation26_spill] sm:$0xff]  ;;  %v4774_v28 = vmul.f32 -4.1687, %v4746_v47  ;;  %v4801_v1 = vld [vmem:[%s11749_s7 + $0x10] sm:$0xff]  ;;  %v4932_v4 = vld [vmem:[%s11750_s8 + $0x18] sm:$0xff] }
 0x87d   : > { %vm4761_vm5 = vcmp.gt.f32.partialorder %v4747_v63, 0.0  ;;  %vm4760_vm6 = vcmp.gt.f32.partialorder %v4746_v47, 0.0  ;;  %v7765_v51 = vld [vmem:[%s11749_s7 + $0xc0] sm:$0xff]  ;;  %v4810_v12 = vld [vmem:[%s11749_s7 + $0x58] sm:$0xff] }
 0x87e   : > { %v4756_v36 = vadd.f32 %v4740_v22, %v4519_v18  ;;  %v11869_v22 = vld [vmem:[#allocation11_spill] sm:$0xff]  ;;  %v4776_v18 = vmul.f32 -4.1687, %v4748_v27  ;;  %v4745_v37 = vadd.f32 %v11873_v54, %v4508_v38  ;;  %v10647_v6 = vsel %vm4760_vm6, %v4746_v47, %v4774_v28  ;;  %v7768_v38 = vld [vmem:[%s11749_s7 + $0xd8] sm:$0xff]  ;;  %v4813_v47 = vld [vmem:[%s11749_s7 + $0x70] sm:$0xff] }
 0x87f   : > { %v4507_v11 = vadd.f32 %v11869_v22, %v11868_v62  ;;  %v4811_v62 = vld [vmem:[%s11749_s7 + $0x60] sm:$0xff] }
 0x880   : > { %vm4770_vm12 = vcmp.gt.f32.partialorder %v4756_v36, 0.0  ;;  %v4784_v24 = vmul.f32 -4.1687, %v4756_v36  ;;  %v10636_v52 = vsel %vm4762_vm4, %v4748_v27, %v4776_v18  ;;  %v4773_v7 = vmul.f32 -4.1687, %v4745_v37  ;;  %v4934_v27 = vld [vmem:[%s11750_s8 + $0x28] sm:$0xff] }
 0x881   : > { %v4744_v33 = vadd.f32 %v11874_v29, %v4507_v11  ;;  %vm4759_vm7 = vcmp.gt.f32.partialorder %v4745_v37, 0.0  ;;  %5244 = vmatpush.msrb.mxu3 %v4934_v27  ;;  %v7769_v22 = vld [vmem:[%s11749_s7 + $0xe0] sm:$0xff]  ;;  %v4812_v11 = vld [vmem:[%s11749_s7 + $0x68] sm:$0xff]  ;;  %v7771_v18 = vld [vmem:[%s11749_s7 + $0xf0] sm:$0xff] }
 0x882   : > { %v10576_v26 = vsel %vm4770_vm12, %v4756_v36, %v4784_v24  ;;  %v4775_v36 = vmul.f32 -4.1687, %v4747_v63  ;;  %v4743_v24 = vadd.f32 %v11875_v17, %v4506_v21  ;;  %v10652_v14 = vsel %vm4759_vm7, %v4745_v37, %v4773_v7  ;;  %v7827_v37 = vld [vmem:[%s11749_s7 + $0x100] sm:$0xff] }
 0x883   : > { %4866 = vmatpush.msrb.mxu0 %v10576_v26  ;;  %5002 = vmatpush.msrb.mxu1 %v10576_v26  ;;  %v4772_v56 = vmul.f32 -4.1687, %v4744_v33  ;;  %vm4758_vm8 = vcmp.gt.f32.partialorder %v4744_v33, 0.0  ;;  %v7831_v28 = vld [vmem:[%s11749_s7 + $0x120] sm:$0xff] }
 0x884   : > { %5632 = vmatpush.msra.mxu2 %v10576_v26  ;;  %v10642_v30 = vsel %vm4761_vm5, %v4747_v63, %v4775_v36  ;;  %v4771_v44 = vmul.f32 -4.1687, %v4743_v24  ;;  %vm4757_vm9 = vcmp.gt.f32.partialorder %v4743_v24, 0.0  ;;  %5245 = vmatpush.msrb.mxu3 %v4933_v5  ;;  %v4930_v63 = vld [vmem:[%s11750_s8 + $0x8] sm:$0xff] }
 0x885   : > { %4867 = vmatpush.msrb.mxu0 %v10583_v32  ;;  %5003 = vmatpush.msrb.mxu1 %v10583_v32  ;;  %v10657_v3 = vsel %vm4758_vm8, %v4744_v33, %v4772_v56  ;;  %v7828_v33 = vld [vmem:[%s11749_s7 + $0x108] sm:$0xff]  ;;  %v7833_v56 = vld [vmem:[%s11749_s7 + $0x130] sm:$0xff] }
 0x886   : > { %5633 = vmatpush.msra.mxu2 %v10583_v32  ;;  %v10665_v40 = vsel %vm4757_vm9, %v4743_v24, %v4771_v44  ;;  %5246 = vmatpush.msrb.mxu3 %v4932_v4  ;;  %v7832_v24 = vld [vmem:[%s11749_s7 + $0x128] sm:$0xff]  ;;  %v7841_v4 = vld [vmem:[%s11749_s7 + $0x170] sm:$0xff] }
 0x887   : > { %4868 = vmatpush.msrb.mxu0 %v10591_v49  ;;  %5004 = vmatpush.msrb.mxu1 %v10591_v49 }
 0x888   : > { %5634 = vmatpush.msra.mxu2 %v10591_v49  ;;  %5247 = vmatpush.msrb.mxu3 %v4931_v53  ;;  %v7842_v53 = vld [vmem:[%s11749_s7 + $0x178] sm:$0xff] }
 0x889   : > { %4869 = vmatpush.msrb.mxu0 %v10598_v43  ;;  %5005 = vmatpush.msrb.mxu1 %v10598_v43 }
 0x88a   : > { %5635 = vmatpush.msra.mxu2 %v10598_v43  ;;  %5248 = vmatpush.msrb.mxu3 %v4930_v63  ;;  %v7881_v63 = vld [vmem:[%s11749_s7 + $0x180] sm:$0xff] }
 0x88b   : > { %4870 = vmatpush.msrb.mxu0 %v10606_v60  ;;  %5006 = vmatpush.msrb.mxu1 %v10606_v60 }
 0x88c   : > { %5636 = vmatpush.msra.mxu2 %v10606_v60  ;;  %5249 = vmatpush.msrb.mxu3 %v4929_v13 }
 0x88d   : > { %4871 = vmatpush.msrb.mxu0 %v10614_v50  ;;  %5007 = vmatpush.msrb.mxu1 %v10614_v50 }
 0x88e   : > { %5637 = vmatpush.msra.mxu2 %v10614_v50 }
 0x88f   : > { %4872 = vmatpush.msrb.mxu0 %v10622_v9  ;;  %5008 = vmatpush.msrb.mxu1 %v10622_v9 }
 0x890   : > { %5638 = vmatpush.msra.mxu2 %v10622_v9 }
 0x891   : > { %4873 = vmatpush.msrb.mxu0 %v10630_v41  ;;  %5009 = vmatpush.msrb.mxu1 %v10630_v41 }
 0x892   : > { %5639 = vmatpush.msra.mxu2 %v10630_v41 }
 0x893   : > { %4874 = vmatpush.msrb.mxu0 %v10636_v52  ;;  %5010 = vmatpush.msrb.mxu1 %v10636_v52 }
 0x894   : > { %5640 = vmatpush.msra.mxu2 %v10636_v52 }
 0x895   : > { %4875 = vmatpush.msrb.mxu0 %v10642_v30  ;;  %5011 = vmatpush.msrb.mxu1 %v10642_v30 }
 0x896   : > { %5641 = vmatpush.msra.mxu2 %v10642_v30 }
 0x897   : > { %4876 = vmatpush.msrb.mxu0 %v10647_v6  ;;  %5012 = vmatpush.msrb.mxu1 %v10647_v6 }
 0x898   : > { %5642 = vmatpush.msra.mxu2 %v10647_v6 }
 0x899   : > { %4877 = vmatpush.msrb.mxu0 %v10652_v14  ;;  %5013 = vmatpush.msrb.mxu1 %v10652_v14 }
 0x89a   : > { %5643 = vmatpush.msra.mxu2 %v10652_v14 }
 0x89b   : > { %4878 = vmatpush.msrb.mxu0 %v10657_v3  ;;  %5014 = vmatpush.msrb.mxu1 %v10657_v3 }
 0x89c   : > { %5644 = vmatpush.msra.mxu2 %v10657_v3 }
 0x89d   : > { %4879 = vmatpush.msrb.mxu0 %v10665_v40  ;;  %5015 = vmatpush.msrb.mxu1 %v10665_v40 }
 0x89e   : > { %5645 = vmatpush.msra.mxu2 %v10665_v40  ;;  %7741 = vmatmul.msk.f32.vlgmr.msrb.gmra.mxu0 %vm4815_vm10, %v4799_v46 }
 0x89f   : > { %7773 = vmatmul.msk.f32.vlgmr.msrb.gmra.mxu1 %vm4815_vm10, %v7757_v45  ;;  %5366 = vmatpush.msra.mxu0 %v10576_v26 }
 0x8a1   : > { %5367 = vmatpush.msra.mxu0 %v10583_v32 }
 0x8a3   : > { %5368 = vmatpush.msra.mxu0 %v10591_v49 }
 0x8a5   : > { %5369 = vmatpush.msra.mxu0 %v10598_v43 }
 0x8a6   : > { %7742 = vmatmul.msk.f32.gmra.mxu0 %vm4815_vm10, %v4800_v59 }
 0x8a7   : > { %7774 = vmatmul.msk.f32.gmra.mxu1 %vm4815_vm10, %v7758_v23  ;;  %5370 = vmatpush.msra.mxu0 %v10606_v60  ;;  %v7836_v23 = vld [vmem:[%s11749_s7 + $0x148] sm:$0xff] }
 0x8a9   : > { %5371 = vmatpush.msra.mxu0 %v10614_v50 }
 0x8ab   : > { %5372 = vmatpush.msra.mxu0 %v10622_v9 }
 0x8ad   : > { %5373 = vmatpush.msra.mxu0 %v10630_v41 }
 0x8ae   : > { %7743 = vmatmul.msk.f32.gmra.mxu0 %vm4815_vm10, %v4801_v1  ;;  %v7864_v1 = vld [vmem:[%s11750_s8 + $0x88] sm:$0xff] }
 0x8af   : > { %7775 = vmatmul.msk.f32.gmra.mxu1 %vm4815_vm10, %v7759_v10  ;;  %5374 = vmatpush.msra.mxu0 %v10636_v52 }
 0x8b0   : > { %5494 = vmatpush.msra.mxu1 %v7864_v1 }
 0x8b1   : > { %5375 = vmatpush.msra.mxu0 %v10642_v30 }
 0x8b3   : > { %5376 = vmatpush.msra.mxu0 %v10647_v6 }
 0x8b5   : > { %5377 = vmatpush.msra.mxu0 %v10652_v14 }
 0x8b6   : > { %7744 = vmatmul.msk.f32.gmra.mxu0 %vm4815_vm10, %v4802_v34 }
 0x8b7   : > { %7776 = vmatmul.msk.f32.gmra.mxu1 %vm4815_vm10, %v7760_v16  ;;  %5378 = vmatpush.msra.mxu0 %v10657_v3  ;;  %v7837_v16 = vld [vmem:[%s11749_s7 + $0x150] sm:$0xff] }
 0x8b9   : > { %5379 = vmatpush.msra.mxu0 %v10665_v40 }
 0x8bb   : > { %5898 = vmatpush.msrb.mxu0 %v10576_v26 }
 0x8bd   : > { %5899 = vmatpush.msrb.mxu0 %v10583_v32 }
 0x8be   : > { %7745 = vmatmul.msk.f32.gmra.mxu0 %vm4815_vm10, %v4803_v0 }
 0x8bf   : > { %5900 = vmatpush.msrb.mxu0 %v10591_v49  ;;  %7777 = vmatmul.msk.f32.gmra.mxu1 %vm4815_vm10, %v7761_v61 }
 0x8c1   : > { %5901 = vmatpush.msrb.mxu0 %v10598_v43 }
 0x8c3   : > { %5902 = vmatpush.msrb.mxu0 %v10606_v60 }
 0x8c5   : > { %5903 = vmatpush.msrb.mxu0 %v10614_v50 }
 0x8c6   : > { %7746 = vmatmul.msk.f32.gmra.mxu0 %vm4815_vm10, %v4804_v19  ;;  %v7838_v19 = vld [vmem:[%s11749_s7 + $0x158] sm:$0xff] }
 0x8c7   : > { %5904 = vmatpush.msrb.mxu0 %v10622_v9  ;;  %7778 = vmatmul.msk.f32.gmra.mxu1 %vm4815_vm10, %v7762_v8  ;;  %v7863_v8 = vld [vmem:[%s11750_s8 + $0x80] sm:$0xff] }
 0x8c8   : > { %5495 = vmatpush.msra.mxu1 %v7863_v8 }
 0x8c9   : > { %5905 = vmatpush.msrb.mxu0 %v10630_v41 }
 0x8cb   : > { %5906 = vmatpush.msrb.mxu0 %v10636_v52 }
 0x8cd   : > { %5907 = vmatpush.msrb.mxu0 %v10642_v30 }
 0x8ce   : > { %7747 = vmatmul.msk.f32.gmra.mxu0 %vm4815_vm10, %v4805_v48  ;;  %v7862_v48 = vld [vmem:[%s11750_s8 + $0x78] sm:$0xff] }
 0x8cf   : > { %5908 = vmatpush.msrb.mxu0 %v10647_v6  ;;  %7779 = vmatmul.msk.f32.gmra.mxu1 %vm4815_vm10, %v7763_v15  ;;  %v7861_v15 = vld [vmem:[%s11750_s8 + $0x70] sm:$0xff] }
 0x8d0   : > { %5496 = vmatpush.msra.mxu1 %v7862_v48  ;;  %v7946_v48 = vld [vmem:[%s11749_s7 + $0x258] sm:$0xff] }
 0x8d1   : > { %5909 = vmatpush.msrb.mxu0 %v10652_v14 }
 0x8d2   : > { %5497 = vmatpush.msra.mxu1 %v7861_v15 }
 0x8d3   : > { %5910 = vmatpush.msrb.mxu0 %v10657_v3 }
 0x8d5   : > { %5911 = vmatpush.msrb.mxu0 %v10665_v40 }
 0x8d6   : > { %7748 = vmatmul.msk.f32.gmra.mxu0 %vm4815_vm10, %v4806_v25  ;;  %v7860_v25 = vld [vmem:[%s11750_s8 + $0x68] sm:$0xff] }
 0x8d7   : > { %7780 = vmatmul.msk.f32.gmra.mxu1 %vm4815_vm10, %v7764_v39 }
 0x8d8   : > { %5498 = vmatpush.msra.mxu1 %v7860_v25  ;;  %v7917_v25 = vld [vmem:[%s11750_s8 + $0xb0] sm:$0xff] }
 0x8de   : > { %7749 = vmatmul.msk.f32.gmra.mxu0 %vm4815_vm10, %v4807_v42 }
 0x8df   : > { %7781 = vmatmul.msk.f32.gmra.mxu1 %vm4815_vm10, %v7765_v51  ;;  %v7839_v51 = vld [vmem:[%s11749_s7 + $0x160] sm:$0xff] }
 0x8e6   : > { %7750 = vmatmul.msk.f32.gmra.mxu0 %vm4815_vm10, %v4808_v55  ;;  %v7859_v55 = vld [vmem:[%s11750_s8 + $0x60] sm:$0xff] }
 0x8e7   : > { %7782 = vmatmul.msk.f32.gmra.mxu1 %vm4815_vm10, %v7766_v35 }
 0x8e8   : > { %5499 = vmatpush.msra.mxu1 %v7859_v55 }
 0x8ee   : > { %7751 = vmatmul.msk.f32.gmra.mxu0 %vm4815_vm10, %v4809_v57 }
 0x8ef   : > { %7783 = vmatmul.msk.f32.gmra.mxu1 %vm4815_vm10, %v7767_v31  ;;  %v7840_v31 = vld [vmem:[%s11749_s7 + $0x168] sm:$0xff] }
 0x8f6   : > { %7752 = vmatmul.msk.f32.gmra.mxu0 %vm4815_vm10, %v4810_v12 }
 0x8f7   : > { %7784 = vmatmul.msk.f32.gmra.mxu1 %vm4815_vm10, %v7768_v38 }
 0x8fe   : > { %7753 = vmatmul.msk.f32.gmra.mxu0 %vm4815_vm10, %v4811_v62  ;;  %v7935_v62 = vld [vmem:[%s11749_s7 + $0x200] sm:$0xff] }
 0x8ff   : > { %7785 = vmatmul.msk.f32.gmra.mxu1 %vm4815_vm10, %v7769_v22 }
 0x906   : > { %7754 = vmatmul.msk.f32.gmra.mxu0 %vm4815_vm10, %v4812_v11  ;;  %v7882_v11 = vld [vmem:[%s11749_s7 + $0x188] sm:$0xff] }
 0x907   : > { %7786 = vmatmul.msk.f32.gmra.mxu1 %vm4815_vm10, %v7770_v20 }
 0x90e   : > { %7755 = vmatmul.msk.f32.gmra.mxu0 %vm4815_vm10, %v4813_v47  ;;  %v7936_v47 = vld [vmem:[%s11749_s7 + $0x208] sm:$0xff] }
 0x90f   : > { %7787 = vmatmul.msk.f32.gmra.mxu1 %vm4815_vm10, %v7771_v18 }
 0x916   : > { %7756 = vmatmul.msk.f32.gmra.mxu0 %vm4815_vm10, %v4814_v58  ;;  %v7883_v58 = vld [vmem:[%s11749_s7 + $0x190] sm:$0xff] }
 0x917   : > { %7788 = vmatmul.msk.f32.gmra.mxu1 %vm4815_vm10, %v7772_v2 }
 0x91b   : > { %v4881_v21 = vpop.f32.mrf.mxu0 }
 0x91c   : > { %v5017_v54 = vpop.f32.mrf.mxu1  ;;  %7811 = vmatmul.msk.f32.vlgmr.msrb.gmra.mxu3 %vm5072_vm11, %v4881_v21  ;;  %v7937_v21 = vld [vmem:[%s11749_s7 + $0x210] sm:$0xff] }
 0x91d   : > { %7795 = vmatmul.msk.f32.vlgmr.msrb.gmra.mxu2 %vm5072_vm11, %v5017_v54 }
 0x91e   : > { %6164 = vmatpush.msrb.mxu2 %v10576_v26  ;;  %7843 = vmatmul.msk.f32.vlgmr.msra.gmra.mxu0 %vm4815_vm10, %v7827_v37  ;;  %v7884_v37 = vld [vmem:[%s11749_s7 + $0x198] sm:$0xff] }
 0x91f   : > { %6430 = vmatpush.msra.mxu0 %v10576_v26 }
 0x920   : > { %6165 = vmatpush.msrb.mxu2 %v10583_v32 }
 0x921   : > { %6431 = vmatpush.msra.mxu0 %v10583_v32 }
 0x922   : > { %6166 = vmatpush.msrb.mxu2 %v10591_v49 }
 0x923   : > { %v4884_v36 = vpop.f32.mrf.mxu0  ;;  %6432 = vmatpush.msra.mxu0 %v10591_v49  ;;  %v7829_v49 = vld [vmem:[%s11749_s7 + $0x110] sm:$0xff] }
 0x924   : > { %6167 = vmatpush.msrb.mxu2 %v10598_v43  ;;  %v5020_v29 = vpop.f32.mrf.mxu1  ;;  %7812 = vmatmul.msk.f32.gmra.mxu3 %vm5072_vm11, %v4884_v36 }
 0x925   : > { %7796 = vmatmul.msk.f32.gmra.mxu2 %vm5072_vm11, %v5020_v29  ;;  %6433 = vmatpush.msra.mxu0 %v10598_v43  ;;  %v7938_v29 = vld [vmem:[%s11749_s7 + $0x218] sm:$0xff] }
 0x926   : > { %6168 = vmatpush.msrb.mxu2 %v10606_v60  ;;  %7844 = vmatmul.msk.f32.gmra.mxu0 %vm4815_vm10, %v7828_v33 }
 0x927   : > { %6434 = vmatpush.msra.mxu0 %v10606_v60 }
 0x928   : > { %6169 = vmatpush.msrb.mxu2 %v10614_v50 }
 0x929   : > { %6435 = vmatpush.msra.mxu0 %v10614_v50  ;;  %v7830_v50 = vld [vmem:[%s11749_s7 + $0x118] sm:$0xff] }
 0x92a   : > { %6170 = vmatpush.msrb.mxu2 %v10622_v9 }
 0x92b   : > { %v4887_v26 = vpop.f32.mrf.mxu0  ;;  %6436 = vmatpush.msra.mxu0 %v10622_v9 }
 0x92c   : > { %6171 = vmatpush.msrb.mxu2 %v10630_v41  ;;  %v5023_v32 = vpop.f32.mrf.mxu1  ;;  %7813 = vmatmul.msk.f32.gmra.mxu3 %vm5072_vm11, %v4887_v26  ;;  %v7885_v26 = vld [vmem:[%s11749_s7 + $0x1a0] sm:$0xff] }
 0x92d   : > { %7797 = vmatmul.msk.f32.gmra.mxu2 %vm5072_vm11, %v5023_v32  ;;  %6437 = vmatpush.msra.mxu0 %v10630_v41 }
 0x92e   : > { %6172 = vmatpush.msrb.mxu2 %v10636_v52  ;;  %7845 = vmatmul.msk.f32.gmra.mxu0 %vm4815_vm10, %v7829_v49  ;;  %v7939_v49 = vld [vmem:[%s11749_s7 + $0x220] sm:$0xff] }
 0x92f   : > { %6438 = vmatpush.msra.mxu0 %v10636_v52 }
 0x930   : > { %6173 = vmatpush.msrb.mxu2 %v10642_v30 }
 0x931   : > { %6439 = vmatpush.msra.mxu0 %v10642_v30 }
 0x932   : > { %6174 = vmatpush.msrb.mxu2 %v10647_v6 }
 0x933   : > { %v4890_v43 = vpop.f32.mrf.mxu0  ;;  %6440 = vmatpush.msra.mxu0 %v10647_v6 }
 0x934   : > { %6175 = vmatpush.msrb.mxu2 %v10652_v14  ;;  %v5026_v60 = vpop.f32.mrf.mxu1  ;;  %7814 = vmatmul.msk.f32.gmra.mxu3 %vm5072_vm11, %v4890_v43 }
 0x935   : > { %7798 = vmatmul.msk.f32.gmra.mxu2 %vm5072_vm11, %v5026_v60  ;;  %6441 = vmatpush.msra.mxu0 %v10652_v14  ;;  %v7834_v14 = vld [vmem:[%s11749_s7 + $0x138] sm:$0xff]  ;;  %v7886_v60 = vld [vmem:[%s11749_s7 + $0x1a8] sm:$0xff] }
 0x936   : > { %6176 = vmatpush.msrb.mxu2 %v10657_v3  ;;  %7846 = vmatmul.msk.f32.gmra.mxu0 %vm4815_vm10, %v7830_v50 }
 0x937   : > { %6442 = vmatpush.msra.mxu0 %v10657_v3 }
 0x938   : > { %6177 = vmatpush.msrb.mxu2 %v10665_v40 }
 0x939   : > { %6443 = vmatpush.msra.mxu0 %v10665_v40  ;;  %v7835_v40 = vld [vmem:[%s11749_s7 + $0x140] sm:$0xff] }
 0x93b   : > { %v4893_v9 = vpop.f32.mrf.mxu0 }
 0x93c   : > { %v5029_v41 = vpop.f32.mrf.mxu1  ;;  %7815 = vmatmul.msk.f32.gmra.mxu3 %vm5072_vm11, %v4893_v9  ;;  %v7940_v9 = vld [vmem:[%s11749_s7 + $0x228] sm:$0xff] }
 0x93d   : > { %7799 = vmatmul.msk.f32.gmra.mxu2 %vm5072_vm11, %v5029_v41 }
 0x93e   : > { %7847 = vmatmul.msk.f32.gmra.mxu0 %vm4815_vm10, %v7831_v28  ;;  %v7887_v28 = vld [vmem:[%s11749_s7 + $0x1b0] sm:$0xff] }
 0x943   : > { %v4896_v52 = vpop.f32.mrf.mxu0 }
 0x944   : > { %v5032_v17 = vpop.f32.mrf.mxu1  ;;  %7816 = vmatmul.msk.f32.gmra.mxu3 %vm5072_vm11, %v4896_v52 }
 0x945   : > { %7800 = vmatmul.msk.f32.gmra.mxu2 %vm5072_vm11, %v5032_v17  ;;  %v7941_v17 = vld [vmem:[%s11749_s7 + $0x230] sm:$0xff] }
 0x946   : > { %7848 = vmatmul.msk.f32.gmra.mxu0 %vm4815_vm10, %v7832_v24 }
 0x94b   : > { %v4899_v7 = vpop.f32.mrf.mxu0 }
 0x94c   : > { %v5035_v30 = vpop.f32.mrf.mxu1  ;;  %7817 = vmatmul.msk.f32.gmra.mxu3 %vm5072_vm11, %v4899_v7  ;;  %v7888_v7 = vld [vmem:[%s11749_s7 + $0x1b8] sm:$0xff] }
 0x94d   : > { %7801 = vmatmul.msk.f32.gmra.mxu2 %vm5072_vm11, %v5035_v30 }
 0x94e   : > { %7849 = vmatmul.msk.f32.gmra.mxu0 %vm4815_vm10, %v7833_v56  ;;  %v7942_v56 = vld [vmem:[%s11749_s7 + $0x238] sm:$0xff] }
 0x953   : > { %v4902_v6 = vpop.f32.mrf.mxu0 }
 0x954   : > { %v5038_v44 = vpop.f32.mrf.mxu1  ;;  %7818 = vmatmul.msk.f32.gmra.mxu3 %vm5072_vm11, %v4902_v6 }
 0x955   : > { %7802 = vmatmul.msk.f32.gmra.mxu2 %vm5072_vm11, %v5038_v44  ;;  %v7889_v44 = vld [vmem:[%s11749_s7 + $0x1c0] sm:$0xff] }
 0x956   : > { %7850 = vmatmul.msk.f32.gmra.mxu0 %vm4815_vm10, %v7834_v14 }
 0x95b   : > { %v4905_v3 = vpop.f32.mrf.mxu0 }
 0x95c   : > { %v5041_v46 = vpop.f32.mrf.mxu1  ;;  %7819 = vmatmul.msk.f32.gmra.mxu3 %vm5072_vm11, %v4905_v3  ;;  %v7943_v3 = vld [vmem:[%s11749_s7 + $0x240] sm:$0xff] }
 0x95d   : > { %7803 = vmatmul.msk.f32.gmra.mxu2 %vm5072_vm11, %v5041_v46 }
 0x95e   : > { %7851 = vmatmul.msk.f32.gmra.mxu0 %vm4815_vm10, %v7835_v40  ;;  %v7918_v40 = vld [vmem:[%s11750_s8 + $0xb8] sm:$0xff] }
 0x95f   : > { %5760 = vmatpush.msra.mxu3 %v7918_v40  ;;  %v7991_v40 = vld [vmem:[%s11749_s7 + $0x290] sm:$0xff] }
 0x961   : > { %5761 = vmatpush.msra.mxu3 %v7917_v25 }
 0x963   : > { %v4908_v45 = vpop.f32.mrf.mxu0 }
 0x964   : > { %v5044_v59 = vpop.f32.mrf.mxu1  ;;  %7820 = vmatmul.msk.f32.gmra.mxu3 %vm5072_vm11, %v4908_v45  ;;  %v7890_v45 = vld [vmem:[%s11749_s7 + $0x1c8] sm:$0xff] }
 0x965   : > { %7804 = vmatmul.msk.f32.gmra.mxu2 %vm5072_vm11, %v5044_v59 }
 0x966   : > { %7852 = vmatmul.msk.f32.gmra.mxu0 %vm4815_vm10, %v7836_v23  ;;  %v7944_v23 = vld [vmem:[%s11749_s7 + $0x248] sm:$0xff] }
 0x96b   : > { %v4911_v10 = vpop.f32.mrf.mxu0 }
 0x96c   : > { %v5047_v34 = vpop.f32.mrf.mxu1  ;;  %7821 = vmatmul.msk.f32.gmra.mxu3 %vm5072_vm11, %v4911_v10  ;;  %v7972_v10 = vld [vmem:[%s11750_s8 + $0xe8] sm:$0xff] }
 0x96d   : > { %7805 = vmatmul.msk.f32.gmra.mxu2 %vm5072_vm11, %v5047_v34  ;;  %v7891_v34 = vld [vmem:[%s11749_s7 + $0x1d0] sm:$0xff]  ;;  %6026 = vmatpush.msrb.mxu1 %v7972_v10 }
 0x96e   : > { %7853 = vmatmul.msk.f32.gmra.mxu0 %vm4815_vm10, %v7837_v16 }
 0x973   : > { %v4914_v0 = vpop.f32.mrf.mxu0 }
 0x974   : > { %v5050_v61 = vpop.f32.mrf.mxu1  ;;  %7822 = vmatmul.msk.f32.gmra.mxu3 %vm5072_vm11, %v4914_v0  ;;  %v7945_v0 = vld [vmem:[%s11749_s7 + $0x250] sm:$0xff] }
 0x975   : > { %7806 = vmatmul.msk.f32.gmra.mxu2 %vm5072_vm11, %v5050_v61 }
 0x976   : > { %7854 = vmatmul.msk.f32.gmra.mxu0 %vm4815_vm10, %v7838_v19  ;;  %v7892_v19 = vld [vmem:[%s11749_s7 + $0x1d8] sm:$0xff] }
 0x97b   : > { %v4917_v39 = vpop.f32.mrf.mxu0 }
 0x97c   : > { %v5053_v42 = vpop.f32.mrf.mxu1  ;;  %7823 = vmatmul.msk.f32.gmra.mxu3 %vm5072_vm11, %v4917_v39  ;;  %v7893_v39 = vld [vmem:[%s11749_s7 + $0x1e0] sm:$0xff] }
 0x97d   : > { %7807 = vmatmul.msk.f32.gmra.mxu2 %vm5072_vm11, %v5053_v42  ;;  %v7916_v42 = vld [vmem:[%s11750_s8 + $0xa8] sm:$0xff] }
 0x97e   : > { %7855 = vmatmul.msk.f32.gmra.mxu0 %vm4815_vm10, %v7839_v51  ;;  %5762 = vmatpush.msra.mxu3 %v7916_v42  ;;  %v7915_v51 = vld [vmem:[%s11750_s8 + $0xa0] sm:$0xff] }
 0x980   : > { %5763 = vmatpush.msra.mxu3 %v7915_v51  ;;  %v8047_v51 = vld [vmem:[%s11749_s7 + $0x320] sm:$0xff] }
 0x983   : > { %v4920_v35 = vpop.f32.mrf.mxu0 }
 0x984   : > { %v5056_v57 = vpop.f32.mrf.mxu1  ;;  %7824 = vmatmul.msk.f32.gmra.mxu3 %vm5072_vm11, %v4920_v35  ;;  %v7947_v35 = vld [vmem:[%s11749_s7 + $0x260] sm:$0xff] }
 0x985   : > { %7808 = vmatmul.msk.f32.gmra.mxu2 %vm5072_vm11, %v5056_v57  ;;  %v7914_v57 = vld [vmem:[%s11750_s8 + $0x98] sm:$0xff] }
 0x986   : > { %7856 = vmatmul.msk.f32.gmra.mxu0 %vm4815_vm10, %v7840_v31  ;;  %5764 = vmatpush.msra.mxu3 %v7914_v57 }
 0x98b   : > { %v4923_v27 = vpop.f32.mrf.mxu0 }
 0x98c   : > { %v5059_v5 = vpop.f32.mrf.mxu1  ;;  %7825 = vmatmul.msk.f32.gmra.mxu3 %vm5072_vm11, %v4923_v27  ;;  %v7913_v27 = vld [vmem:[%s11750_s8 + $0x90] sm:$0xff] }
 0x98d   : > { %7809 = vmatmul.msk.f32.gmra.mxu2 %vm5072_vm11, %v5059_v5  ;;  %v7971_v5 = vld [vmem:[%s11750_s8 + $0xe0] sm:$0xff]  ;;  %5765 = vmatpush.msra.mxu3 %v7913_v27  ;;  %v7994_v27 = vld [vmem:[%s11749_s7 + $0x2a8] sm:$0xff] }
 0x98e   : > { %7857 = vmatmul.msk.f32.gmra.mxu0 %vm4815_vm10, %v7841_v4  ;;  %6027 = vmatpush.msrb.mxu1 %v7971_v5  ;;  %v7894_v4 = vld [vmem:[%s11749_s7 + $0x1e8] sm:$0xff] }
 0x993   : > { %v4926_v12 = vpop.f32.mrf.mxu0 }
 0x994   : > { %v5062_v38 = vpop.f32.mrf.mxu1  ;;  %7826 = vmatmul.msk.f32.gmra.mxu3 %vm5072_vm11, %v4926_v12  ;;  %v7970_v12 = vld [vmem:[%s11750_s8 + $0xd8] sm:$0xff] }
 0x995   : > { %7810 = vmatmul.msk.f32.gmra.mxu2 %vm5072_vm11, %v5062_v38  ;;  %6028 = vmatpush.msrb.mxu1 %v7970_v12  ;;  %v7969_v38 = vld [vmem:[%s11750_s8 + $0xd0] sm:$0xff] }
 0x996   : > { %7858 = vmatmul.msk.f32.gmra.mxu0 %vm4815_vm10, %v7842_v53 }
 0x997   : > { %6029 = vmatpush.msrb.mxu1 %v7969_v38 }
 0x99b   : > { %v5381_v13 = vpop.f32.mrf.mxu0 }
 0x99c   : > { %7865 = vmatmul.msk.f32.vlgmr.msra.gmra.mxu1 %vm5072_vm11, %v5381_v13  ;;  %v7968_v13 = vld [vmem:[%s11750_s8 + $0xc8] sm:$0xff] }
 0x99d   : > { %7897 = vmatmul.msk.f32.vlgmr.msra.gmra.mxu2 %vm4815_vm10, %v7881_v63  ;;  %v7948_v63 = vld [vmem:[%s11749_s7 + $0x268] sm:$0xff]  ;;  %6030 = vmatpush.msrb.mxu1 %v7968_v13 }
 0x99e   : > { %7951 = vmatmul.msk.f32.vlgmr.msrb.gmra.mxu0 %vm4815_vm10, %v7935_v62 }
 0x99f   : > { %v11168_v62 = vpop.f32.mrf.mxu3 }
 0x9a0   : > { %v10993_v22 = vpop.f32.mrf.mxu2 }
 0x9a3   : > { %v5384_v20 = vpop.f32.mrf.mxu0 }
 0x9a4   : > { %7866 = vmatmul.msk.f32.gmra.mxu1 %vm5072_vm11, %v5384_v20  ;;  %v7967_v20 = vld [vmem:[%s11750_s8 + $0xc0] sm:$0xff] }
 0x9a5   : > { %7898 = vmatmul.msk.f32.gmra.mxu2 %vm4815_vm10, %v7882_v11  ;;  %6031 = vmatpush.msrb.mxu1 %v7967_v20  ;;  %v8049_v20 = vld [vmem:[%s11749_s7 + $0x330] sm:$0xff] }
 0x9a6   : > { %7952 = vmatmul.msk.f32.gmra.mxu0 %vm4815_vm10, %v7936_v47  ;;  %v7895_v47 = vld [vmem:[%s11749_s7 + $0x1f0] sm:$0xff] }
 0x9a8   : > { %v11004_v18 = vpop.f32.mrf.mxu2 }
 0x9ab   : > { %v5387_v2 = vpop.f32.mrf.mxu0 }
 0x9ac   : > { %7867 = vmatmul.msk.f32.gmra.mxu1 %vm5072_vm11, %v5387_v2  ;;  %v7949_v2 = vld [vmem:[%s11749_s7 + $0x270] sm:$0xff] }
 0x9ad   : > { %7899 = vmatmul.msk.f32.gmra.mxu2 %vm4815_vm10, %v7883_v58 }
 0x9ae   : > { %7953 = vmatmul.msk.f32.gmra.mxu0 %vm4815_vm10, %v7937_v21  ;;  %v11185_v21 = vpop.f32.mrf.mxu3 }
 0x9b0   : > { %v11015_v54 = vpop.f32.mrf.mxu2 }
 0x9b3   : > { %v5390_v36 = vpop.f32.mrf.mxu0 }
 0x9b4   : > { %7868 = vmatmul.msk.f32.gmra.mxu1 %vm5072_vm11, %v5390_v36  ;;  %v7896_v36 = vld [vmem:[%s11749_s7 + $0x1f8] sm:$0xff] }
 0x9b5   : > { %7900 = vmatmul.msk.f32.gmra.mxu2 %vm4815_vm10, %v7884_v37 }
 0x9b6   : > { %7954 = vmatmul.msk.f32.gmra.mxu0 %vm4815_vm10, %v7938_v29 }
 0x9b8   : > { %v11026_v33 = vpop.f32.mrf.mxu2 }
 0x9bb   : > { %v5393_v32 = vpop.f32.mrf.mxu0 }
 0x9bc   : > { %7869 = vmatmul.msk.f32.gmra.mxu1 %vm5072_vm11, %v5393_v32 }
 0x9bd   : > { %7901 = vmatmul.msk.f32.gmra.mxu2 %vm4815_vm10, %v7885_v26  ;;  %v7950_v26 = vld [vmem:[%s11749_s7 + $0x278] sm:$0xff] }
 0x9be   : > { %7955 = vmatmul.msk.f32.gmra.mxu0 %vm4815_vm10, %v7939_v49  ;;  %v11200_v49 = vpop.f32.mrf.mxu3 }
 0x9c0   : > { %v11037_v43 = vpop.f32.mrf.mxu2 }
 0x9c3   : > { %v5396_v50 = vpop.f32.mrf.mxu0 }
 0x9c4   : > { %7870 = vmatmul.msk.f32.gmra.mxu1 %vm5072_vm11, %v5396_v50  ;;  %v7989_v50 = vld [vmem:[%s11749_s7 + $0x280] sm:$0xff] }
 0x9c5   : > { %7902 = vmatmul.msk.f32.gmra.mxu2 %vm4815_vm10, %v7886_v60 }
 0x9c6   : > { %7956 = vmatmul.msk.f32.gmra.mxu0 %vm4815_vm10, %v7940_v9 }
 0x9c8   : > { %v11048_v41 = vpop.f32.mrf.mxu2 }
 0x9cb   : > { %v5399_v52 = vpop.f32.mrf.mxu0 }
 0x9cc   : > { %7871 = vmatmul.msk.f32.gmra.mxu1 %vm5072_vm11, %v5399_v52 }
 0x9cd   : > { %7903 = vmatmul.msk.f32.gmra.mxu2 %vm4815_vm10, %v7887_v28  ;;  %v8043_v28 = vld [vmem:[%s11749_s7 + $0x300] sm:$0xff] }
 0x9ce   : > { %7957 = vmatmul.msk.f32.gmra.mxu0 %vm4815_vm10, %v7941_v17 }
 0x9d0   : > { %v11059_v24 = vpop.f32.mrf.mxu2 }
 0x9d3   : > { %v5402_v30 = vpop.f32.mrf.mxu0 }
 0x9d4   : > { %7872 = vmatmul.msk.f32.gmra.mxu1 %vm5072_vm11, %v5402_v30  ;;  %v11219_v30 = vpop.f32.mrf.mxu3 }
 0x9d5   : > { %7904 = vmatmul.msk.f32.gmra.mxu2 %vm4815_vm10, %v7888_v7  ;;  %v7990_v7 = vld [vmem:[%s11749_s7 + $0x288] sm:$0xff] }
 0x9d6   : > { %7958 = vmatmul.msk.f32.gmra.mxu0 %vm4815_vm10, %v7942_v56 }
 0x9d8   : > { %v11070_v6 = vpop.f32.mrf.mxu2 }
 0x9db   : > { %v5405_v14 = vpop.f32.mrf.mxu0 }
 0x9dc   : > { %7873 = vmatmul.msk.f32.gmra.mxu1 %vm5072_vm11, %v5405_v14 }
 0x9dd   : > { %7905 = vmatmul.msk.f32.gmra.mxu2 %vm4815_vm10, %v7889_v44  ;;  %v8044_v44 = vld [vmem:[%s11749_s7 + $0x308] sm:$0xff] }
 0x9de   : > { %7959 = vmatmul.msk.f32.gmra.mxu0 %vm4815_vm10, %v7943_v3 }
 0x9e0   : > { %v11081_v46 = vpop.f32.mrf.mxu2 }
 0x9e3   : > { %v5408_v59 = vpop.f32.mrf.mxu0 }
 0x9e4   : > { %7874 = vmatmul.msk.f32.gmra.mxu1 %vm5072_vm11, %v5408_v59  ;;  %v8045_v59 = vld [vmem:[%s11749_s7 + $0x310] sm:$0xff] }
 0x9e5   : > { %7906 = vmatmul.msk.f32.gmra.mxu2 %vm4815_vm10, %v7890_v45 }
 0x9e6   : > { %7960 = vmatmul.msk.f32.gmra.mxu0 %vm4815_vm10, %v7944_v23  ;;  %v11238_v23 = vpop.f32.mrf.mxu3 }
 0x9e8   : > { %v11095_v1 = vpop.f32.mrf.mxu2 }
 0x9eb   : > { %v5411_v16 = vpop.f32.mrf.mxu0 }
 0x9ec   : > { %7875 = vmatmul.msk.f32.gmra.mxu1 %vm5072_vm11, %v5411_v16  ;;  %v7992_v16 = vld [vmem:[%s11749_s7 + $0x298] sm:$0xff] }
 0x9ed   : > { %7907 = vmatmul.msk.f32.gmra.mxu2 %vm4815_vm10, %v7891_v34 }
 0x9ee   : > { %7961 = vmatmul.msk.f32.gmra.mxu0 %vm4815_vm10, %v7945_v0 }
 0x9f0   : > { %v11109_v61 = vpop.f32.mrf.mxu2 }
 0x9f3   : > { %v5414_v8 = vpop.f32.mrf.mxu0 }
 0x9f4   : > { %7876 = vmatmul.msk.f32.gmra.mxu1 %vm5072_vm11, %v5414_v8  ;;  %v11253_v8 = vpop.f32.mrf.mxu3 }
 0x9f5   : > { %7908 = vmatmul.msk.f32.gmra.mxu2 %vm4815_vm10, %v7892_v19  ;;  %v8046_v19 = vld [vmem:[%s11749_s7 + $0x318] sm:$0xff] }
 0x9f6   : > { %7962 = vmatmul.msk.f32.gmra.mxu0 %vm4815_vm10, %v7946_v48 }
 0x9f8   : > { %v11120_v15 = vpop.f32.mrf.mxu2 }
 0x9fb   : > { %v5417_v55 = vpop.f32.mrf.mxu0 }
 0x9fc   : > { %7877 = vmatmul.msk.f32.gmra.mxu1 %vm5072_vm11, %v5417_v55 }
 0x9fd   : > { %7909 = vmatmul.msk.f32.gmra.mxu2 %vm4815_vm10, %v7893_v39  ;;  %v7993_v39 = vld [vmem:[%s11749_s7 + $0x2a0] sm:$0xff] }
 0x9fe   : > { %7963 = vmatmul.msk.f32.gmra.mxu0 %vm4815_vm10, %v7947_v35  ;;  %v11268_v35 = vpop.f32.mrf.mxu3 }
 0xa00   : > { %v11143_v31 = vpop.f32.mrf.mxu2 }
 0xa03   : > { %v5420_v53 = vpop.f32.mrf.mxu0 }
 0xa04   : > { %7878 = vmatmul.msk.f32.gmra.mxu1 %vm5072_vm11, %v5420_v53  ;;  %v7995_v53 = vld [vmem:[%s11749_s7 + $0x2b0] sm:$0xff] }
 0xa05   : > { %7910 = vmatmul.msk.f32.gmra.mxu2 %vm4815_vm10, %v7894_v4  ;;  %v8048_v4 = vld [vmem:[%s11749_s7 + $0x328] sm:$0xff] }
 0xa06   : > { %7964 = vmatmul.msk.f32.gmra.mxu0 %vm4815_vm10, %v7948_v63  ;;  %v11287_v63 = vpop.f32.mrf.mxu3 }
 0xa08   : > { %v11171_v11 = vpop.f32.mrf.mxu2 }
 0xa0b   : > { %v5423_v58 = vpop.f32.mrf.mxu0 }
 0xa0c   : > { %7879 = vmatmul.msk.f32.gmra.mxu1 %vm5072_vm11, %v5423_v58 }
 0xa0d   : > { %7911 = vmatmul.msk.f32.gmra.mxu2 %vm4815_vm10, %v7895_v47 }
 0xa0e   : > { %7965 = vmatmul.msk.f32.gmra.mxu0 %vm4815_vm10, %v7949_v2  ;;  %v7996_v2 = vld [vmem:[%s11749_s7 + $0x2b8] sm:$0xff] }
 0xa10   : > { %v11187_v37 = vpop.f32.mrf.mxu2 }
 0xa13   : > { %v5426_v29 = vpop.f32.mrf.mxu0 }
 0xa14   : > { %7880 = vmatmul.msk.f32.gmra.mxu1 %vm5072_vm11, %v5426_v29  ;;  %v8050_v29 = vld [vmem:[%s11749_s7 + $0x338] sm:$0xff] }
 0xa15   : > { %7912 = vmatmul.msk.f32.gmra.mxu2 %vm4815_vm10, %v7896_v36 }
 0xa16   : > { %7966 = vmatmul.msk.f32.gmra.mxu0 %vm4815_vm10, %v7950_v26  ;;  %v11306_v26 = vpop.f32.mrf.mxu3 }
 0xa18   : > { %v11198_v32 = vpop.f32.mrf.mxu2 }
 0xa19   : > { %v11202_v60 = vpop.f32.mrf.mxu1 }
 0xa1b   : > { %v5913_v9 = vpop.f32.mrf.mxu0 }
 0xa1c   : > { %7973 = vmatmul.msk.f32.vlgmr.msrb.gmra.mxu1 %vm5072_vm11, %v5913_v9 }
 0xa1d   : > { %8005 = vmatmul.msk.f32.vlgmr.msrb.gmra.mxu2 %vm4815_vm10, %v7989_v50 }
 0xa1e   : > { %8059 = vmatmul.msk.f32.vlgmr.msra.gmra.mxu0 %vm4815_vm10, %v8043_v28  ;;  %v7997_v28 = vld [vmem:[%s11749_s7 + $0x2c0] sm:$0xff] }
 0xa20   : > { %v5647_v52 = vpop.f32.mrf.mxu2 }
 0xa21   : > { %7919 = vmatmul.msk.f32.vlgmr.msra.gmra.mxu3 %vm5072_vm11, %v5647_v52  ;;  %v11214_v17 = vpop.f32.mrf.mxu1 }
 0xa23   : > { %v5916_v56 = vpop.f32.mrf.mxu0 }
 0xa24   : > { %7974 = vmatmul.msk.f32.gmra.mxu1 %vm5072_vm11, %v5916_v56  ;;  %v11321_v56 = vpop.f32.mrf.mxu3 }
 0xa25   : > { %8006 = vmatmul.msk.f32.gmra.mxu2 %vm4815_vm10, %v7990_v7  ;;  %v8051_v7 = vld [vmem:[%s11749_s7 + $0x340] sm:$0xff] }
 0xa26   : > { %8060 = vmatmul.msk.f32.gmra.mxu0 %vm4815_vm10, %v8044_v44 }
 0xa28   : > { %v5650_v14 = vpop.f32.mrf.mxu2 }
 0xa29   : > { %7920 = vmatmul.msk.f32.gmra.mxu3 %vm5072_vm11, %v5650_v14  ;;  %v11228_v3 = vpop.f32.mrf.mxu1 }
 0xa2b   : > { %v5919_v45 = vpop.f32.mrf.mxu0 }
 0xa2c   : > { %7975 = vmatmul.msk.f32.gmra.mxu1 %vm5072_vm11, %v5919_v45  ;;  %v8026_v45 = vld [vmem:[%s11750_s8 + $0x118] sm:$0xff] }
 0xa2d   : > { %8007 = vmatmul.msk.f32.gmra.mxu2 %vm4815_vm10, %v7991_v40  ;;  %v7998_v40 = vld [vmem:[%s11749_s7 + $0x2c8] sm:$0xff]  ;;  %6292 = vmatpush.msrb.mxu3 %v8026_v45  ;;  %v8079_v45 = vld [vmem:[%s11750_s8 + $0x140] sm:$0xff] }
 0xa2e   : > { %8061 = vmatmul.msk.f32.gmra.mxu0 %vm4815_vm10, %v8045_v59 }
 0xa30   : > { %v5653_v10 = vpop.f32.mrf.mxu2 }
 0xa31   : > { %7921 = vmatmul.msk.f32.gmra.mxu3 %vm5072_vm11, %v5653_v10  ;;  %v11242_v34 = vpop.f32.mrf.mxu1  ;;  %v8052_v10 = vld [vmem:[%s11749_s7 + $0x348] sm:$0xff] }
 0xa33   : > { %v5922_v0 = vpop.f32.mrf.mxu0 }
 0xa34   : > { %7976 = vmatmul.msk.f32.gmra.mxu1 %vm5072_vm11, %v5922_v0  ;;  %v11339_v0 = vpop.f32.mrf.mxu3 }
 0xa35   : > { %8008 = vmatmul.msk.f32.gmra.mxu2 %vm4815_vm10, %v7992_v16 }
 0xa36   : > { %8062 = vmatmul.msk.f32.gmra.mxu0 %vm4815_vm10, %v8046_v19 }
 0xa38   : > { %v5656_v48 = vpop.f32.mrf.mxu2 }
 0xa39   : > { %7922 = vmatmul.msk.f32.gmra.mxu3 %vm5072_vm11, %v5656_v48  ;;  %v11256_v25 = vpop.f32.mrf.mxu1  ;;  %v7999_v48 = vld [vmem:[%s11749_s7 + $0x2d0] sm:$0xff] }
 0xa3b   : > { %v5925_v42 = vpop.f32.mrf.mxu0 }
 0xa3c   : > { %7977 = vmatmul.msk.f32.gmra.mxu1 %vm5072_vm11, %v5925_v42 }
 0xa3d   : > { %8009 = vmatmul.msk.f32.gmra.mxu2 %vm4815_vm10, %v7993_v39  ;;  %v8080_v39 = vld [vmem:[%s11750_s8 + $0x148] sm:$0xff] }
 0xa3e   : > { %8063 = vmatmul.msk.f32.gmra.mxu0 %vm4815_vm10, %v8047_v51  ;;  %v8053_v51 = vld [vmem:[%s11749_s7 + $0x350] sm:$0xff]  ;;  %6558 = vmatpush.msra.mxu1 %v8080_v39  ;;  %v8056_v39 = vld [vmem:[%s11749_s7 + $0x368] sm:$0xff] }
 0xa40   : > { %v5659_v55 = vpop.f32.mrf.mxu2  ;;  %6559 = vmatpush.msra.mxu1 %v8079_v45 }
 0xa41   : > { %7923 = vmatmul.msk.f32.gmra.mxu3 %vm5072_vm11, %v5659_v55  ;;  %v11270_v57 = vpop.f32.mrf.mxu1 }
 0xa43   : > { %v5928_v5 = vpop.f32.mrf.mxu0 }
 0xa44   : > { %7978 = vmatmul.msk.f32.gmra.mxu1 %vm5072_vm11, %v5928_v5  ;;  %v8000_v5 = vld [vmem:[%s11749_s7 + $0x2d8] sm:$0xff] }
 0xa45   : > { %8010 = vmatmul.msk.f32.gmra.mxu2 %vm4815_vm10, %v7994_v27 }
 0xa46   : > { %8064 = vmatmul.msk.f32.gmra.mxu0 %vm4815_vm10, %v8048_v4  ;;  %v11361_v4 = vpop.f32.mrf.mxu3 }
 0xa48   : > { %v5662_v12 = vpop.f32.mrf.mxu2 }
 0xa49   : > { %7924 = vmatmul.msk.f32.gmra.mxu3 %vm5072_vm11, %v5662_v12  ;;  %v11282_v38 = vpop.f32.mrf.mxu1 }
 0xa4b   : > { %v5931_v13 = vpop.f32.mrf.mxu0 }
 0xa4c   : > { %7979 = vmatmul.msk.f32.gmra.mxu1 %vm5072_vm11, %v5931_v13 }
 0xa4d   : > { %8011 = vmatmul.msk.f32.gmra.mxu2 %vm4815_vm10, %v7995_v53  ;;  %v8054_v53 = vld [vmem:[%s11749_s7 + $0x358] sm:$0xff] }
 0xa4e   : > { %8065 = vmatmul.msk.f32.gmra.mxu0 %vm4815_vm10, %v8049_v20  ;;  %v8025_v20 = vld [vmem:[%s11750_s8 + $0x110] sm:$0xff] }
 0xa4f   : > { %6293 = vmatpush.msrb.mxu3 %v8025_v20 }
 0xa50   : > { %v5665_v47 = vpop.f32.mrf.mxu2 }
 0xa51   : > { %7925 = vmatmul.msk.f32.gmra.mxu3 %vm5072_vm11, %v5665_v47  ;;  %v11296_v58 = vpop.f32.mrf.mxu1  ;;  %v8024_v47 = vld [vmem:[%s11750_s8 + $0x108] sm:$0xff] }
 0xa52   : > { %6294 = vmatpush.msrb.mxu3 %v8024_v47  ;;  %v8057_v47 = vld [vmem:[%s11749_s7 + $0x370] sm:$0xff] }
 0xa53   : > { %v5934_v36 = vpop.f32.mrf.mxu0 }
 0xa54   : > { %7980 = vmatmul.msk.f32.gmra.mxu1 %vm5072_vm11, %v5934_v36  ;;  %v8001_v36 = vld [vmem:[%s11749_s7 + $0x2e0] sm:$0xff] }
 0xa55   : > { %8012 = vmatmul.msk.f32.gmra.mxu2 %vm4815_vm10, %v7996_v2 }
 0xa56   : > { %8066 = vmatmul.msk.f32.gmra.mxu0 %vm4815_vm10, %v8050_v29  ;;  %v8023_v29 = vld [vmem:[%s11750_s8 + $0x100] sm:$0xff] }
 0xa57   : > { %6295 = vmatpush.msrb.mxu3 %v8023_v29 }
 0xa58   : > { %v5668_v50 = vpop.f32.mrf.mxu2 }
 0xa59   : > { %7926 = vmatmul.msk.f32.gmra.mxu3 %vm5072_vm11, %v5668_v50  ;;  %v11310_v9 = vpop.f32.mrf.mxu1 }
 0xa5b   : > { %v5937_v52 = vpop.f32.mrf.mxu0 }
 0xa5c   : > { %7981 = vmatmul.msk.f32.gmra.mxu1 %vm5072_vm11, %v5937_v52  ;;  %v8022_v52 = vld [vmem:[%s11750_s8 + $0xf8] sm:$0xff] }
 0xa5d   : > { %8013 = vmatmul.msk.f32.gmra.mxu2 %vm4815_vm10, %v7997_v28  ;;  %v8055_v28 = vld [vmem:[%s11749_s7 + $0x360] sm:$0xff]  ;;  %6296 = vmatpush.msrb.mxu3 %v8022_v52 }
 0xa5e   : > { %8067 = vmatmul.msk.f32.gmra.mxu0 %vm4815_vm10, %v8051_v7  ;;  %v11392_v7 = vpop.f32.mrf.mxu3 }
 0xa60   : > { %v5671_v44 = vpop.f32.mrf.mxu2 }
 0xa61   : > { %7927 = vmatmul.msk.f32.gmra.mxu3 %vm5072_vm11, %v5671_v44  ;;  %v11324_v14 = vpop.f32.mrf.mxu1 }
 0xa63   : > { %v5940_v59 = vpop.f32.mrf.mxu0 }
 0xa64   : > { %7982 = vmatmul.msk.f32.gmra.mxu1 %vm5072_vm11, %v5940_v59  ;;  %v8078_v59 = vld [vmem:[%s11750_s8 + $0x138] sm:$0xff] }
 0xa65   : > { %8014 = vmatmul.msk.f32.gmra.mxu2 %vm4815_vm10, %v7998_v40  ;;  %v8021_v40 = vld [vmem:[%s11750_s8 + $0xf0] sm:$0xff]  ;;  %6560 = vmatpush.msra.mxu1 %v8078_v59 }
 0xa66   : > { %8068 = vmatmul.msk.f32.gmra.mxu0 %vm4815_vm10, %v8052_v10  ;;  %6297 = vmatpush.msrb.mxu3 %v8021_v40 }
 0xa68   : > { %v5674_v16 = vpop.f32.mrf.mxu2 }
 0xa69   : > { %7928 = vmatmul.msk.f32.gmra.mxu3 %vm5072_vm11, %v5674_v16  ;;  %v11341_v19 = vpop.f32.mrf.mxu1  ;;  %v8002_v16 = vld [vmem:[%s11749_s7 + $0x2e8] sm:$0xff] }
 0xa6b   : > { %v5943_v42 = vpop.f32.mrf.mxu0 }
 0xa6c   : > { %7983 = vmatmul.msk.f32.gmra.mxu1 %vm5072_vm11, %v5943_v42  ;;  %v8077_v42 = vld [vmem:[%s11750_s8 + $0x130] sm:$0xff] }
 0xa6d   : > { %8015 = vmatmul.msk.f32.gmra.mxu2 %vm4815_vm10, %v7999_v48  ;;  %6561 = vmatpush.msra.mxu1 %v8077_v42 }
 0xa6e   : > { %8069 = vmatmul.msk.f32.gmra.mxu0 %vm4815_vm10, %v8053_v51  ;;  %v8076_v51 = vld [vmem:[%s11750_s8 + $0x128] sm:$0xff] }
 0xa6f   : > { %6562 = vmatpush.msra.mxu1 %v8076_v51 }
 0xa70   : > { %v5677_v55 = vpop.f32.mrf.mxu2 }
 0xa71   : > { %7929 = vmatmul.msk.f32.gmra.mxu3 %vm5072_vm11, %v5677_v55  ;;  %v11356_v27 = vpop.f32.mrf.mxu1  ;;  %v11422_v55 = vpop.f32.mrf.mxu3 }
 0xa73   : > { %v5946_v12 = vpop.f32.mrf.mxu0 }
 0xa74   : > { %7984 = vmatmul.msk.f32.gmra.mxu1 %vm5072_vm11, %v5946_v12  ;;  %v8075_v12 = vld [vmem:[%s11750_s8 + $0x120] sm:$0xff] }
 0xa75   : > { %8016 = vmatmul.msk.f32.gmra.mxu2 %vm4815_vm10, %v8000_v5  ;;  %6563 = vmatpush.msra.mxu1 %v8075_v12 }
 0xa76   : > { %8070 = vmatmul.msk.f32.gmra.mxu0 %vm4815_vm10, %v8054_v53 }
 0xa78   : > { %v5680_v13 = vpop.f32.mrf.mxu2 }
 0xa79   : > { %7930 = vmatmul.msk.f32.gmra.mxu3 %vm5072_vm11, %v5680_v13  ;;  %v11376_v2 = vpop.f32.mrf.mxu1  ;;  %v8003_v13 = vld [vmem:[%s11749_s7 + $0x2f0] sm:$0xff]  ;;  %v11440_v29 = vpop.f32.mrf.mxu3 }
 0xa7b   : > { %v5949_v50 = vpop.f32.mrf.mxu0 }
 0xa7c   : > { %7985 = vmatmul.msk.f32.gmra.mxu1 %vm5072_vm11, %v5949_v50 }
 0xa7d   : > { %8017 = vmatmul.msk.f32.gmra.mxu2 %vm4815_vm10, %v8001_v36 }
 0xa7e   : > { %8071 = vmatmul.msk.f32.gmra.mxu0 %vm4815_vm10, %v8055_v28  ;;  %v8004_v28 = vld [vmem:[%s11749_s7 + $0x2f8] sm:$0xff] }
 0xa80   : > { %v5683_v44 = vpop.f32.mrf.mxu2 }
 0xa81   : > { %7931 = vmatmul.msk.f32.gmra.mxu3 %vm5072_vm11, %v5683_v44  ;;  %v11405_v10 = vpop.f32.mrf.mxu1  ;;  %v8058_v44 = vld [vmem:[%s11749_s7 + $0x378] sm:$0xff]  ;;  %v11454_v59 = vpop.f32.mrf.mxu3 }
 0xa83   : > { %v5952_v48 = vpop.f32.mrf.mxu0 }
 0xa84   : > { %7986 = vmatmul.msk.f32.gmra.mxu1 %vm5072_vm11, %v5952_v48 }
 0xa85   : > { %8018 = vmatmul.msk.f32.gmra.mxu2 %vm4815_vm10, %v8002_v16 }
 0xa86   : > { %8072 = vmatmul.msk.f32.gmra.mxu0 %vm4815_vm10, %v8056_v39  ;;  %v5252_v39 = vadd.f32 %v11168_v62, %v10993_v22 }
 0xa88   : > { %v5686_v5 = vpop.f32.mrf.mxu2  ;;  %v5549_v51 = vadd.f32 %v11202_v60, %v5252_v39 }
 0xa89   : > { %7932 = vmatmul.msk.f32.gmra.mxu3 %vm5072_vm11, %v5686_v5  ;;  %v11428_v53 = vpop.f32.mrf.mxu1 }
 0xa8b   : > { %v5955_v20 = vpop.f32.mrf.mxu0 }
 0xa8c   : > { %7987 = vmatmul.msk.f32.gmra.mxu1 %vm5072_vm11, %v5955_v20 }
 0xa8d   : > { %8019 = vmatmul.msk.f32.gmra.mxu2 %vm4815_vm10, %v8003_v13 }
 0xa8e   : > { %8073 = vmatmul.msk.f32.gmra.mxu0 %vm4815_vm10, %v8057_v47 }
 0xa90   : > { %v5689_v36 = vpop.f32.mrf.mxu2 }
 0xa91   : > { %7933 = vmatmul.msk.f32.gmra.mxu3 %vm5072_vm11, %v5689_v36  ;;  %v11442_v50 = vpop.f32.mrf.mxu1  ;;  %v5255_v36 = vadd.f32 %v11185_v21, %v11004_v18 }
 0xa93   : > { %v5958_v52 = vpop.f32.mrf.mxu0  ;;  %v5550_v22 = vadd.f32 %v11214_v17, %v5255_v36  ;;  %v5264_v36 = vadd.f32 %v11238_v23, %v11037_v43 }
 0xa94   : > { %7988 = vmatmul.msk.f32.gmra.mxu1 %vm5072_vm11, %v5958_v52 }
 0xa95   : > { %8020 = vmatmul.msk.f32.gmra.mxu2 %vm4815_vm10, %v8004_v28 }
 0xa96   : > { %8074 = vmatmul.msk.f32.gmra.mxu0 %vm4815_vm10, %v8058_v44 }
 0xa98   : > { %v5692_v40 = vpop.f32.mrf.mxu2 }
 0xa99   : > { %7934 = vmatmul.msk.f32.gmra.mxu3 %vm5072_vm11, %v5692_v40  ;;  %v6033_v45 = vpop.f32.mrf.mxu1 }
 0xa9b   : > { %v6445_v16 = vpop.f32.mrf.mxu0 }
 0xa9c   : > { %8081 = vmatmul.msk.f32.vlgmr.msra.gmra.mxu1 %vm5072_vm11, %v6445_v16 }
 0xaa0   : > { %v6179_v48 = vpop.f32.mrf.mxu2 }
 0xaa1   : > { %8027 = vmatmul.msk.f32.vlgmr.msrb.gmra.mxu3 %vm5072_vm11, %v6179_v48  ;;  %v6036_v42 = vpop.f32.mrf.mxu1 }
 0xaa3   : > { %v6448_v12 = vpop.f32.mrf.mxu0 }
 0xaa4   : > { %v5767_v5 = vpop.f32.mrf.mxu3  ;;  %8082 = vmatmul.msk.f32.gmra.mxu1 %vm5072_vm11, %v6448_v12 }
 0xaa5   : > { %v5815_v13 = vadd.f32 %v5767_v5, %v5549_v51 }
 0xaa7   : > { %v11462_v20 = vadd.f32 %v6033_v45, %v5815_v13  ;;  %v5258_v45 = vadd.f32 %v11200_v49, %v11015_v54 }
 0xaa8   : > { %v6182_v47 = vpop.f32.mrf.mxu2 }
 0xaa9   : > { %8028 = vmatmul.msk.f32.gmra.mxu3 %vm5072_vm11, %v6182_v47  ;;  %v6039_v28 = vpop.f32.mrf.mxu1  ;;  %v5551_v18 = vadd.f32 %v11228_v3, %v5258_v45 }
 0xaab   : > { %v6451_v52 = vpop.f32.mrf.mxu0 }
 0xaac   : > { %v5770_v62 = vpop.f32.mrf.mxu3  ;;  %8083 = vmatmul.msk.f32.gmra.mxu1 %vm5072_vm11, %v6451_v52 }
 0xaad   : > { %v5816_v44 = vadd.f32 %v5770_v62, %v5550_v22 }
 0xaaf   : > { %v11469_v60 = vadd.f32 %v6036_v42, %v5816_v44  ;;  %v5261_v42 = vadd.f32 %v11219_v30, %v11026_v33  ;;  %v5553_v33 = vadd.f32 %v11256_v25, %v5264_v36  ;;  %v5267_v44 = vadd.f32 %v11253_v8, %v11048_v41 }
 0xab0   : > { %v6185_v40 = vpop.f32.mrf.mxu2 }
 0xab1   : > { %8029 = vmatmul.msk.f32.gmra.mxu3 %vm5072_vm11, %v6185_v40  ;;  %v6042_v16 = vpop.f32.mrf.mxu1  ;;  %v5552_v54 = vadd.f32 %v11242_v34, %v5261_v42  ;;  %v5554_v43 = vadd.f32 %v11270_v57, %v5267_v44 }
 0xab3   : > { %v6454_v48 = vpop.f32.mrf.mxu0 }
 0xab4   : > { %v5773_v21 = vpop.f32.mrf.mxu3  ;;  %8084 = vmatmul.msk.f32.gmra.mxu1 %vm5072_vm11, %v6454_v48 }
 0xab5   : > { %v5817_v39 = vadd.f32 %v5773_v21, %v5551_v18  ;;  %v5270_v21 = vadd.f32 %v11268_v35, %v11059_v24 }
 0xab7   : > { %v11476_v17 = vadd.f32 %v6039_v28, %v5817_v39  ;;  %v5555_v41 = vadd.f32 %v11282_v38, %v5270_v21  ;;  %v5285_v21 = vadd.f32 %v11361_v4, %v11120_v15 }
 0xab8   : > { %v6188_v51 = vpop.f32.mrf.mxu2 }
 0xab9   : > { %8030 = vmatmul.msk.f32.gmra.mxu3 %vm5072_vm11, %v6188_v51  ;;  %v6045_v5 = vpop.f32.mrf.mxu1 }
 0xabb   : > { %v6457_v12 = vpop.f32.mrf.mxu0 }
 0xabc   : > { %v5776_v49 = vpop.f32.mrf.mxu3  ;;  %8085 = vmatmul.msk.f32.gmra.mxu1 %vm5072_vm11, %v6457_v12 }
 0xabd   : > { %v5818_v13 = vadd.f32 %v5776_v49, %v5552_v54 }
 0xabf   : > { %v11483_v3 = vadd.f32 %v6042_v16, %v5818_v13 }
 0xac0   : > { %v6191_v47 = vpop.f32.mrf.mxu2 }
 0xac1   : > { %8031 = vmatmul.msk.f32.gmra.mxu3 %vm5072_vm11, %v6191_v47  ;;  %v6048_v28 = vpop.f32.mrf.mxu1  ;;  %v5276_v47 = vadd.f32 %v11306_v26, %v11081_v46 }
 0xac3   : > { %v6460_v22 = vpop.f32.mrf.mxu0 }
 0xac4   : > { %v5779_v30 = vpop.f32.mrf.mxu3  ;;  %8086 = vmatmul.msk.f32.gmra.mxu1 %vm5072_vm11, %v6460_v22  ;;  %v5279_v22 = vadd.f32 %v11321_v56, %v11095_v1 }
 0xac5   : > { %v5819_v62 = vadd.f32 %v5779_v30, %v5553_v33 }
 0xac6   : > { %v5558_v46 = vadd.f32 %v11324_v14, %v5279_v22 }
 0xac7   : > { %v11490_v34 = vadd.f32 %v6045_v5, %v5819_v62  ;;  %v5273_v5 = vadd.f32 %v11287_v63, %v11070_v6  ;;  %v5557_v6 = vadd.f32 %v11310_v9, %v5276_v47 }
 0xac8   : > { %v6194_v52 = vpop.f32.mrf.mxu2 }
 0xac9   : > { %8032 = vmatmul.msk.f32.gmra.mxu3 %vm5072_vm11, %v6194_v52  ;;  %v6051_v40 = vpop.f32.mrf.mxu1  ;;  %v5556_v24 = vadd.f32 %v11296_v58, %v5273_v5 }
 0xacb   : > { %v6463_v45 = vpop.f32.mrf.mxu0 }
 0xacc   : > { %v5782_v23 = vpop.f32.mrf.mxu3  ;;  %8087 = vmatmul.msk.f32.gmra.mxu1 %vm5072_vm11, %v6463_v45 }
 0xacd   : > { %v5820_v16 = vadd.f32 %v5782_v23, %v5554_v43  ;;  %v5282_v43 = vadd.f32 %v11339_v0, %v11109_v61  ;;  %v5560_v61 = vadd.f32 %v11356_v27, %v5285_v21 }
 0xacf   : > { %v11497_v25 = vadd.f32 %v6048_v28, %v5820_v16  ;;  %v5559_v1 = vadd.f32 %v11341_v19, %v5282_v43 }
 0xad0   : > { %v6197_v18 = vpop.f32.mrf.mxu2 }
 0xad1   : > { %8033 = vmatmul.msk.f32.gmra.mxu3 %vm5072_vm11, %v6197_v18  ;;  %v6054_v48 = vpop.f32.mrf.mxu1 }
 0xad3   : > { %v6466_v39 = vpop.f32.mrf.mxu0 }
 0xad4   : > { %v5785_v8 = vpop.f32.mrf.mxu3  ;;  %8088 = vmatmul.msk.f32.gmra.mxu1 %vm5072_vm11, %v6466_v39 }
 0xad5   : > { %v5821_v51 = vadd.f32 %v5785_v8, %v5555_v41 }
 0xad7   : > { %v11504_v57 = vadd.f32 %v6051_v40, %v5821_v51  ;;  %v5288_v51 = vadd.f32 %v11392_v7, %v11143_v31 }
 0xad8   : > { %v6200_v42 = vpop.f32.mrf.mxu2 }
 0xad9   : > { %8034 = vmatmul.msk.f32.gmra.mxu3 %vm5072_vm11, %v6200_v42  ;;  %v6057_v54 = vpop.f32.mrf.mxu1  ;;  %v5561_v15 = vadd.f32 %v11376_v2, %v5288_v51 }
 0xadb   : > { %v6469_v49 = vpop.f32.mrf.mxu0 }
 0xadc   : > { %v5788_v35 = vpop.f32.mrf.mxu3  ;;  %8089 = vmatmul.msk.f32.gmra.mxu1 %vm5072_vm11, %v6469_v49 }
 0xadd   : > { %v5822_v12 = vadd.f32 %v5788_v35, %v5556_v24  ;;  %v5291_v35 = vadd.f32 %v11422_v55, %v11171_v11 }
 0xadf   : > { %v11511_v38 = vadd.f32 %v6054_v48, %v5822_v12  ;;  %v5562_v31 = vadd.f32 %v11405_v10, %v5291_v35 }
 0xae0   : > { %v6203_v13 = vpop.f32.mrf.mxu2 }
 0xae1   : > { %8035 = vmatmul.msk.f32.gmra.mxu3 %vm5072_vm11, %v6203_v13  ;;  %v6060_v36 = vpop.f32.mrf.mxu1 }
 0xae3   : > { %v6472_v28 = vpop.f32.mrf.mxu0 }
 0xae4   : > { %v5791_v63 = vpop.f32.mrf.mxu3  ;;  %8090 = vmatmul.msk.f32.gmra.mxu1 %vm5072_vm11, %v6472_v28 }
 0xae5   : > { %v5823_v33 = vadd.f32 %v5791_v63, %v5557_v6 }
 0xae7   : > { %v11518_v58 = vadd.f32 %v6057_v54, %v5823_v33 }
 0xae8   : > { %v6206_v30 = vpop.f32.mrf.mxu2 }
 0xae9   : > { %8036 = vmatmul.msk.f32.gmra.mxu3 %vm5072_vm11, %v6206_v30  ;;  %v6063_v62 = vpop.f32.mrf.mxu1  ;;  %v5297_v30 = vadd.f32 %v11454_v59, %v11198_v32 }
 0xaeb   : > { %v6475_v52 = vpop.f32.mrf.mxu0 }
 0xaec   : > { %v5794_v26 = vpop.f32.mrf.mxu3  ;;  %8091 = vmatmul.msk.f32.gmra.mxu1 %vm5072_vm11, %v6475_v52 }
 0xaed   : > { %v5824_v44 = vadd.f32 %v5794_v26, %v5558_v46 }
 0xaef   : > { %v11525_v9 = vadd.f32 %v6060_v36, %v5824_v44  ;;  %v5294_v36 = vadd.f32 %v11440_v29, %v11187_v37  ;;  %v5564_v37 = vadd.f32 %v11442_v50, %v5297_v30 }
 0xaf0   : > { %v6209_v40 = vpop.f32.mrf.mxu2 }
 0xaf1   : > { %8037 = vmatmul.msk.f32.gmra.mxu3 %vm5072_vm11, %v6209_v40  ;;  %v6066_v23 = vpop.f32.mrf.mxu1  ;;  %v5563_v11 = vadd.f32 %v11428_v53, %v5294_v36 }
 0xaf3   : > { %v6478_v45 = vpop.f32.mrf.mxu0 }
 0xaf4   : > { %v5797_v56 = vpop.f32.mrf.mxu3  ;;  %8092 = vmatmul.msk.f32.gmra.mxu1 %vm5072_vm11, %v6478_v45 }
 0xaf5   : > { %v5825_v16 = vadd.f32 %v5797_v56, %v5559_v1 }
 0xaf7   : > { %v11532_v14 = vadd.f32 %v6063_v62, %v5825_v16 }
 0xaf8   : > { %v6212_v18 = vpop.f32.mrf.mxu2 }
 0xaf9   : > { %8038 = vmatmul.msk.f32.gmra.mxu3 %vm5072_vm11, %v6212_v18  ;;  %v6069_v48 = vpop.f32.mrf.mxu1 }
 0xafb   : > { %v6481_v41 = vpop.f32.mrf.mxu0 }
 0xafc   : > { %v5800_v0 = vpop.f32.mrf.mxu3  ;;  %8093 = vmatmul.msk.f32.gmra.mxu1 %vm5072_vm11, %v6481_v41 }
 0xafd   : > { %v5826_v8 = vadd.f32 %v5800_v0, %v5560_v61 }
 0xaff   : > { %v11539_v19 = vadd.f32 %v6066_v23, %v5826_v8 }
 0xb00   : > { %v6215_v39 = vpop.f32.mrf.mxu2 }
 0xb01   : > { %8039 = vmatmul.msk.f32.gmra.mxu3 %vm5072_vm11, %v6215_v39  ;;  %v6072_v42 = vpop.f32.mrf.mxu1 }
 0xb03   : > { %v6484_v5 = vpop.f32.mrf.mxu0 }
 0xb04   : > { %v5803_v4 = vpop.f32.mrf.mxu3  ;;  %8094 = vmatmul.msk.f32.gmra.mxu1 %vm5072_vm11, %v6484_v5 }
 0xb05   : > { %v5827_v54 = vadd.f32 %v5803_v4, %v5561_v15 }
 0xb07   : > { %v11546_v27 = vadd.f32 %v6069_v48, %v5827_v54 }
 0xb08   : > { %v6218_v24 = vpop.f32.mrf.mxu2 }
 0xb09   : > { %8040 = vmatmul.msk.f32.gmra.mxu3 %vm5072_vm11, %v6218_v24  ;;  %v6075_v49 = vpop.f32.mrf.mxu1 }
 0xb0b   : > { %v6487_v12 = vpop.f32.mrf.mxu0 }
 0xb0c   : > { %v5806_v7 = vpop.f32.mrf.mxu3  ;;  %8095 = vmatmul.msk.f32.gmra.mxu1 %vm5072_vm11, %v6487_v12 }
 0xb0d   : > { %v5828_v13 = vadd.f32 %v5806_v7, %v5562_v31 }
 0xb0f   : > { %v11553_v2 = vadd.f32 %v6072_v42, %v5828_v13 }
 0xb10   : > { %v6221_v47 = vpop.f32.mrf.mxu2 }
 0xb11   : > { %8041 = vmatmul.msk.f32.gmra.mxu3 %vm5072_vm11, %v6221_v47  ;;  %v6078_v6 = vpop.f32.mrf.mxu1 }
 0xb13   : > { %v6490_v63 = vpop.f32.mrf.mxu0 }
 0xb14   : > { %v5809_v55 = vpop.f32.mrf.mxu3  ;;  %8096 = vmatmul.msk.f32.gmra.mxu1 %vm5072_vm11, %v6490_v63 }
 0xb15   : > { %v5829_v28 = vadd.f32 %v5809_v55, %v5563_v11 }
 0xb17   : > { %v6095_v10 = vadd.f32 %v6075_v49, %v5829_v28 }
 0xb18   : > { %v6224_v33 = vpop.f32.mrf.mxu2 }
 0xb19   : > { %8042 = vmatmul.msk.f32.gmra.mxu3 %vm5072_vm11, %v6224_v33  ;;  %v6565_v22 = vpop.f32.mrf.mxu1 }
 0xb1c   : > { %v5812_v29 = vpop.f32.mrf.mxu3 }
 0xb1d   : > { %v5830_v62 = vadd.f32 %v5812_v29, %v5564_v37 }
 0xb1f   : > { %v6096_v46 = vadd.f32 %v6078_v6, %v5830_v62 }
 0xb21   : > { %v6568_v26 = vpop.f32.mrf.mxu1 }
 0xb24   : > { %v6299_v53 = vpop.f32.mrf.mxu3 }
 0xb25   : > { %v6347_v52 = vadd.f32 %v6299_v53, %v11462_v20 }
 0xb27   : > { %v11565_v44 = vadd.f32 %v6565_v22, %v6347_v52 }
 0xb29   : > { %v6571_v40 = vpop.f32.mrf.mxu1  ;;  %vm6629_vm11 = vcmp.gt.f32.partialorder %v11565_v44, 0.0 }
 0xb2c   : > { %v6302_v43 = vpop.f32.mrf.mxu3 }
 0xb2d   : > { %v6348_v23 = vadd.f32 %v6302_v43, %v11469_v60 }
 0xb2f   : > { %v11568_v1 = vadd.f32 %v6568_v26, %v6348_v23 }
 0xb31   : > { %v6574_v32 = vpop.f32.mrf.mxu1  ;;  %vm6630_vm10 = vcmp.gt.f32.partialorder %v11568_v1, 0.0 }
 0xb34   : > { %v6305_v59 = vpop.f32.mrf.mxu3 }
 0xb35   : > { %v6349_v56 = vadd.f32 %v6305_v59, %v11476_v17 }
 0xb37   : > { %v11571_v50 = vadd.f32 %v6571_v40, %v6349_v56 }
 0xb39   : > { %v6577_v45 = vpop.f32.mrf.mxu1  ;;  %vm6631_vm9 = vcmp.gt.f32.partialorder %v11571_v50, 0.0 }
 0xb3c   : > { %v6308_v16 = vpop.f32.mrf.mxu3 }
 0xb3d   : > { %v6350_v18 = vadd.f32 %v6308_v16, %v11483_v3 }
 0xb3f   : > { %v11574_v21 = vadd.f32 %v6574_v32, %v6350_v18 }
 0xb41   : > { %v6580_v20 = vpop.f32.mrf.mxu1  ;;  %vm6632_vm8 = vcmp.gt.f32.partialorder %v11574_v21, 0.0 }
 0xb44   : > { %v6311_v48 = vpop.f32.mrf.mxu3 }
 0xb45   : > { %v6351_v61 = vadd.f32 %v6311_v48, %v11490_v34 }
 0xb47   : > { %v11577_v0 = vadd.f32 %v6577_v45, %v6351_v61 }
 0xb49   : > { %v6583_v60 = vpop.f32.mrf.mxu1  ;;  %vm6633_vm7 = vcmp.gt.f32.partialorder %v11577_v0, 0.0 }
 0xb4c   : > { %v6314_v41 = vpop.f32.mrf.mxu3 }
 0xb4d   : > { %v6352_v8 = vadd.f32 %v6314_v41, %v11497_v25 }
 0xb4f   : > { %v11580_v39 = vadd.f32 %v6580_v20, %v6352_v8 }
 0xb51   : > { %v6586_v17 = vpop.f32.mrf.mxu1  ;;  %vm6634_vm6 = vcmp.gt.f32.partialorder %v11580_v39, 0.0 }
 0xb54   : > { %v6317_v51 = vpop.f32.mrf.mxu3 }
 0xb55   : > { %v6353_v42 = vadd.f32 %v6317_v51, %v11504_v57 }
 0xb57   : > { %v11583_v15 = vadd.f32 %v6583_v60, %v6353_v42  ;;  %v6759_v42 = vld [vmem:[%s11752_s10 + $0x28] sm:$0xff] }
 0xb59   : > { %v6589_v3 = vpop.f32.mrf.mxu1  ;;  %v6651_v41 = vmul.f32 0.0658, %v11583_v15  ;;  %vm6635_vm5 = vcmp.gt.f32.partialorder %v11583_v15, 0.0 }
 0xb5c   : > { %v6320_v4 = vpop.f32.mrf.mxu3 }
 0xb5d   : > { %v6354_v5 = vadd.f32 %v6320_v4, %v11511_v38  ;;  %v6667_v4 = vsel %vm6635_vm5, %v11583_v15, %v6651_v41 }
 0xb5f   : > { %v11586_v54 = vadd.f32 %v6586_v17, %v6354_v5  ;;  %v6650_v17 = vmul.f32 0.0658, %v11580_v39  ;;  %v6648_v5 = vmul.f32 0.0658, %v11574_v21 }
 0xb61   : > { %v6592_v34 = vpop.f32.mrf.mxu1  ;;  %v6652_v61 = vmul.f32 0.0658, %v11586_v54  ;;  %vm6636_vm4 = vcmp.gt.f32.partialorder %v11586_v54, 0.0  ;;  %v6664_v15 = vsel %vm6632_vm8, %v11574_v21, %v6648_v5  ;;  %v6678_v21 = vld [vmem:[%s11751_s9 + $0x8] sm:$0xff] }
 0xb63   : > { %v6668_v51 = vsel %vm6636_vm4, %v11586_v54, %v6652_v61  ;;  %v6647_v54 = vmul.f32 0.0658, %v11571_v50 }
 0xb64   : > { %v6323_v24 = vpop.f32.mrf.mxu3 }
 0xb65   : > { %v6355_v35 = vadd.f32 %v6323_v24, %v11518_v58 }
 0xb67   : > { %v11589_v49 = vadd.f32 %v6589_v3, %v6355_v35  ;;  %v6649_v3 = vmul.f32 0.0658, %v11577_v0  ;;  %v6646_v35 = vmul.f32 0.0658, %v11568_v1 }
 0xb69   : > { %v6595_v25 = vpop.f32.mrf.mxu1  ;;  %v6653_v20 = vmul.f32 0.0658, %v11589_v49  ;;  %vm6637_vm3 = vcmp.gt.f32.partialorder %v11589_v49, 0.0  ;;  %v6665_v24 = vsel %vm6633_vm7, %v11577_v0, %v6649_v3  ;;  %v6677_v0 = vld [vmem:[%s11751_s9] sm:$0xff] }
 0xb6b   : > { %v6669_v8 = vsel %vm6637_vm3, %v11589_v49, %v6653_v20  ;;  %v6645_v49 = vmul.f32 0.0658, %v11565_v44 }
 0xb6c   : > { %v6326_v31 = vpop.f32.mrf.mxu3 }
 0xb71   : > { %v6598_v12 = vpop.f32.mrf.mxu1 }
 0xb74   : > { %v6329_v7 = vpop.f32.mrf.mxu3 }
 0xb75   : > { %v6357_v26 = vadd.f32 %v6329_v7, %v11532_v14  ;;  %v6757_v7 = vld [vmem:[%s11752_s10 + $0x18] sm:$0xff] }
 0xb79   : > { %v6601_v57 = vpop.f32.mrf.mxu1 }
 0xb7c   : > { %v6332_v13 = vpop.f32.mrf.mxu3 }
 0xb7d   : > { %v6358_v37 = vadd.f32 %v6332_v13, %v11539_v19  ;;  %v6623_v19 = vadd.f32 %v6595_v25, %v6357_v26  ;;  %v6662_v25 = vsel %vm6630_vm10, %v11568_v1, %v6646_v35  ;;  %v6679_v1 = vld [vmem:[%s11751_s9 + $0x10] sm:$0xff]  ;;  %v6682_v13 = vld [vmem:[%s11751_s9 + $0x28] sm:$0xff] }
 0xb7f   : > { %vm6639_vm1 = vcmp.gt.f32.partialorder %v6623_v19, 0.0 }
 0xb81   : > { %v6604_v36 = vpop.f32.mrf.mxu1 }
 0xb84   : > { %v6335_v47 = vpop.f32.mrf.mxu3 }
 0xb85   : > { %v6359_v58 = vadd.f32 %v6335_v47, %v11546_v27  ;;  %v6760_v27 = vld [vmem:[%s11752_s10 + $0x30] sm:$0xff] }
 0xb86   : > { %6816 = vmatpush.msra.mxu3 %v6760_v27  ;;  %v6683_v47 = vld [vmem:[%s11751_s9 + $0x30] sm:$0xff] }
 0xb87   : > { %v6625_v53 = vadd.f32 %v6601_v57, %v6359_v58  ;;  %v6756_v57 = vld [vmem:[%s11752_s10 + $0x10] sm:$0xff]  ;;  %v6690_v58 = vld [vmem:[%s11751_s9 + $0x68] sm:$0xff] }
 0xb88   : > { %6817 = vmatpush.msra.mxu3 %v6759_v42 }
 0xb89   : > { %v6607_v11 = vpop.f32.mrf.mxu1  ;;  %vm6641_vm15 = vcmp.gt.f32.partialorder %v6625_v53, 0.0 }
 0xb8c   : > { %v6338_v6 = vpop.f32.mrf.mxu3 }
 0xb8d   : > { %v6360_v63 = vadd.f32 %v6338_v6, %v11553_v2  ;;  %v6624_v2 = vadd.f32 %v6598_v12, %v6358_v37  ;;  %v6681_v12 = vld [vmem:[%s11751_s9 + $0x20] sm:$0xff] }
 0xb8e   : > { %v6685_v6 = vld [vmem:[%s11751_s9 + $0x40] sm:$0xff] }
 0xb8f   : > { %v6626_v29 = vadd.f32 %v6604_v36, %v6360_v63  ;;  %v6656_v59 = vmul.f32 0.0658, %v6624_v2  ;;  %vm6640_vm0 = vcmp.gt.f32.partialorder %v6624_v2, 0.0  ;;  %v6684_v36 = vld [vmem:[%s11751_s9 + $0x38] sm:$0xff]  ;;  %v6754_v63 = vld [vmem:[%s11752_s10] sm:$0xff] }
 0xb91   : > { %v6610_v33 = vpop.f32.mrf.mxu1  ;;  %v6658_v43 = vmul.f32 0.0658, %v6626_v29  ;;  %vm6642_vm14 = vcmp.gt.f32.partialorder %v6626_v29, 0.0  ;;  %v6672_v18 = vsel %vm6640_vm0, %v6624_v2, %v6656_v59 }
 0xb93   : > { %v6674_v56 = vsel %vm6642_vm14, %v6626_v29, %v6658_v43  ;;  %vm6884_vm14 = vcmask 470016  }
 0xb94   : > { %v6341_v55 = vpop.f32.mrf.mxu3 }
 0xb95   : > { %v6361_v38 = vadd.f32 %v6341_v55, %v6095_v10  ;;  %v6356_v10 = vadd.f32 %v6326_v31, %v11525_v9  ;;  %v6655_v9 = vmul.f32 0.0658, %v6623_v19  ;;  %v6661_v31 = vsel %vm6629_vm11, %v11565_v44, %v6645_v49  ;;  %v6680_v44 = vld [vmem:[%s11751_s9 + $0x18] sm:$0xff]  ;;  %v6686_v55 = vld [vmem:[%s11751_s9 + $0x48] sm:$0xff] }
 0xb97   : > { %v6627_v30 = vadd.f32 %v6607_v11, %v6361_v38  ;;  %v6622_v32 = vadd.f32 %v6592_v34, %v6356_v10  ;;  %v6671_v48 = vsel %vm6639_vm1, %v6623_v19, %v6655_v9  ;;  %v6666_v34 = vsel %vm6634_vm6, %v11580_v39, %v6650_v17  ;;  %v6755_v11 = vld [vmem:[%s11752_s10 + $0x8] sm:$0xff]  ;;  %v6687_v38 = vld [vmem:[%s11751_s9 + $0x50] sm:$0xff] }
 0xb98   : > { %v6663_v39 = vsel %vm6631_vm9, %v11571_v50, %v6647_v54  ;;  %v6758_v50 = vld [vmem:[%s11752_s10 + $0x20] sm:$0xff] }
 0xb99   : > { %v6659_v52 = vmul.f32 0.0658, %v6627_v30  ;;  %vm6643_vm13 = vcmp.gt.f32.partialorder %v6627_v30, 0.0  ;;  %v6654_v16 = vmul.f32 0.0658, %v6622_v32  ;;  %vm6638_vm2 = vcmp.gt.f32.partialorder %v6622_v32, 0.0  ;;  %6818 = vmatpush.msra.mxu3 %v6758_v50 }
 0xb9b   : > { %v6675_v14 = vsel %vm6643_vm13, %v6627_v30, %v6659_v52  ;;  %v6670_v60 = vsel %vm6638_vm2, %v6622_v32, %v6654_v16  ;;  %6819 = vmatpush.msra.mxu3 %v6757_v7  ;;  %v6691_v30 = vld [vmem:[%s11751_s9 + $0x70] sm:$0xf]  ;;  %vm6869_vm13 = vcmask 474112  }
 0xb9c   : > { %v6344_v28 = vpop.f32.mrf.mxu3 }
 0xb9d   : > { %v6362_v22 = vadd.f32 %v6344_v28, %v6096_v46  ;;  %v6657_v46 = vmul.f32 0.0658, %v6625_v53  ;;  %6820 = vmatpush.msra.mxu3 %v6756_v57  ;;  %v6688_v28 = vld [vmem:[%s11751_s9 + $0x58] sm:$0xff] }
 0xb9f   : > { %v6628_v62 = vadd.f32 %v6610_v33, %v6362_v22  ;;  %v6673_v45 = vsel %vm6641_vm15, %v6625_v53, %v6657_v46  ;;  %6821 = vmatpush.msra.mxu3 %v6755_v11  ;;  %v6689_v33 = vld [vmem:[%s11751_s9 + $0x60] sm:$0xff] }
 0xba1   : > { %vm6644_vm12 = vcmp.gt.f32.partialorder %v6628_v62, 0.0  ;;  %v6660_v40 = vmul.f32 0.0658, %v6628_v62  ;;  %6822 = vmatpush.msra.mxu3 %v6754_v63 }
 0xba3   : > { %v6676_v23 = vsel %vm6644_vm12, %v6628_v62, %v6660_v40  ;;  %vm6761_vm12 = vcmask 457728  }
 0xba4   : > { %6692 = vmatpush.msra.mxu2 %v6676_v23 }
 0xba6   : > { %6693 = vmatpush.msra.mxu2 %v6675_v14 }
 0xba8   : > { %6694 = vmatpush.msra.mxu2 %v6674_v56 }
 0xbaa   : > { %6695 = vmatpush.msra.mxu2 %v6673_v45 }
 0xbac   : > { %6696 = vmatpush.msra.mxu2 %v6672_v18 }
 0xbae   : > { %6697 = vmatpush.msra.mxu2 %v6671_v48 }
 0xbb0   : > { %6698 = vmatpush.msra.mxu2 %v6670_v60 }
 0xbb2   : > { %6699 = vmatpush.msra.mxu2 %v6669_v8 }
 0xbb4   : > { %6700 = vmatpush.msra.mxu2 %v6668_v51 }
 0xbb6   : > { %6701 = vmatpush.msra.mxu2 %v6667_v4 }
 0xbb8   : > { %6702 = vmatpush.msra.mxu2 %v6666_v34 }
 0xbba   : > { %6703 = vmatpush.msra.mxu2 %v6665_v24 }
 0xbbc   : > { %6704 = vmatpush.msra.mxu2 %v6664_v15 }
 0xbbe   : > { %6705 = vmatpush.msra.mxu2 %v6663_v39 }
 0xbc0   : > { %6706 = vmatpush.msra.mxu2 %v6662_v25 }
 0xbc2   : > { %6707 = vmatpush.msra.mxu2 %v6661_v31 }
 0xbc3   : > { %6708 = vmatmul.f32.vlgmr.msra.gmra.mxu2 %v6677_v0 }
 0xbcb   : > { %6711 = vmatmul.f32.gmra.mxu2 %v6678_v21 }
 0xbd3   : > { %6714 = vmatmul.f32.gmra.mxu2 %v6679_v1 }
 0xbdb   : > { %6717 = vmatmul.f32.gmra.mxu2 %v6680_v44 }
 0xbe3   : > { %6720 = vmatmul.f32.gmra.mxu2 %v6681_v12 }
 0xbeb   : > { %6723 = vmatmul.f32.gmra.mxu2 %v6682_v13 }
 0xbf3   : > { %6726 = vmatmul.f32.gmra.mxu2 %v6683_v47 }
 0xbfb   : > { %6729 = vmatmul.f32.gmra.mxu2 %v6684_v36 }
 0xc03   : > { %6732 = vmatmul.f32.gmra.mxu2 %v6685_v6 }
 0xc0b   : > { %6735 = vmatmul.f32.gmra.mxu2 %v6686_v55 }
 0xc13   : > { %6738 = vmatmul.f32.gmra.mxu2 %v6687_v38 }
 0xc1b   : > { %6741 = vmatmul.f32.gmra.mxu2 %v6688_v28 }
 0xc23   : > { %6744 = vmatmul.f32.gmra.mxu2 %v6689_v33 }
 0xc2b   : > { %6747 = vmatmul.f32.gmra.mxu2 %v6690_v58 }
 0xc33   : > { %6750 = vmatmul.f32.gmra.mxu2 %v6691_v30 }
 0xc46   : > { %v6709_v22 = vpop.f32.mrf.mxu2 }
 0xc47   : > { %8097 = vmatmul.msk.f32.vlgmr.msra.gmra.mxu3 %vm6761_vm12, %v6709_v22 }
 0xc4e   : > { %v6712_v37 = vpop.f32.mrf.mxu2 }
 0xc4f   : > { %8098 = vmatmul.msk.f32.gmra.mxu3 %vm6761_vm12, %v6712_v37 }
 0xc56   : > { %v6715_v29 = vpop.f32.mrf.mxu2 }
 0xc57   : > { %8099 = vmatmul.msk.f32.gmra.mxu3 %vm6761_vm12, %v6715_v29 }
 0xc5e   : > { %v6718_v62 = vpop.f32.mrf.mxu2 }
 0xc5f   : > { %8100 = vmatmul.msk.f32.gmra.mxu3 %vm6761_vm12, %v6718_v62 }
 0xc66   : > { %v6721_v26 = vpop.f32.mrf.mxu2 }
 0xc67   : > { %8101 = vmatmul.msk.f32.gmra.mxu3 %vm6761_vm12, %v6721_v26 }
 0xc6e   : > { %v6724_v53 = vpop.f32.mrf.mxu2 }
 0xc6f   : > { %8102 = vmatmul.msk.f32.gmra.mxu3 %vm6761_vm12, %v6724_v53 }
 0xc76   : > { %v6727_v52 = vpop.f32.mrf.mxu2 }
 0xc77   : > { %8103 = vmatmul.msk.f32.gmra.mxu3 %vm6761_vm12, %v6727_v52 }
 0xc7e   : > { %v6730_v40 = vpop.f32.mrf.mxu2 }
 0xc7f   : > { %8104 = vmatmul.msk.f32.gmra.mxu3 %vm6761_vm12, %v6730_v40 }
 0xc86   : > { %v6733_v10 = vpop.f32.mrf.mxu2 }
 0xc87   : > { %8105 = vmatmul.msk.f32.gmra.mxu3 %vm6761_vm12, %v6733_v10 }
 0xc8e   : > { %v6736_v2 = vpop.f32.mrf.mxu2 }
 0xc8f   : > { %8106 = vmatmul.msk.f32.gmra.mxu3 %vm6761_vm12, %v6736_v2 }
 0xc96   : > { %v6739_v43 = vpop.f32.mrf.mxu2 }
 0xc97   : > { %8107 = vmatmul.msk.f32.gmra.mxu3 %vm6761_vm12, %v6739_v43 }
 0xc9e   : > { %v6742_v23 = vpop.f32.mrf.mxu2 }
 0xc9f   : > { %8108 = vmatmul.msk.f32.gmra.mxu3 %vm6761_vm12, %v6742_v23 }
 0xca6   : > { %v6745_v27 = vpop.f32.mrf.mxu2 }
 0xca7   : > { %8109 = vmatmul.msk.f32.gmra.mxu3 %vm6761_vm12, %v6745_v27 }
 0xcae   : > { %v6748_v19 = vpop.f32.mrf.mxu2 }
 0xcaf   : > { %8110 = vmatmul.msk.f32.gmra.mxu3 %vm6761_vm12, %v6748_v19 }
 0xcb6   : > { %v6751_v46 = vpop.f32.mrf.mxu2 }
 0xcb7   : > { %8111 = vmatmul.msk.f32.gmra.mxu3 %vm6761_vm12, %v6751_v46 }
 0xcca   : > { %v6824_v14 = vpop.f32.mrf.mxu3 }
 0xccb   : > { %6870 = vst.msk [vmem:[%s11708_s30] sm:$0xff] %vm6869_vm13, %v6824_v14 }
 0xcd2   : > { %v6827_v32 = vpop.f32.mrf.mxu3 }
 0xcd3   : > { %6871 = vst.msk [vmem:[%s11708_s30 + $0x8] sm:$0xff] %vm6869_vm13, %v6827_v32 }
 0xcda   : > { %v6830_v59 = vpop.f32.mrf.mxu3 }
 0xcdb   : > { %6872 = vst.msk [vmem:[%s11708_s30 + $0x10] sm:$0xff] %vm6869_vm13, %v6830_v59 }
 0xce2   : > { %v6833_v56 = vpop.f32.mrf.mxu3 }
 0xce3   : > { %6873 = vst.msk [vmem:[%s11708_s30 + $0x18] sm:$0xff] %vm6869_vm13, %v6833_v56 }
 0xcea   : > { %v6836_v9 = vpop.f32.mrf.mxu3 }
 0xceb   : > { %6874 = vst.msk [vmem:[%s11708_s30 + $0x20] sm:$0xff] %vm6869_vm13, %v6836_v9 }
 0xcf2   : > { %v6839_v45 = vpop.f32.mrf.mxu3 }
 0xcf3   : > { %6875 = vst.msk [vmem:[%s11708_s30 + $0x28] sm:$0xff] %vm6869_vm13, %v6839_v45 }
 0xcfa   : > { %v6842_v16 = vpop.f32.mrf.mxu3 }
 0xcfb   : > { %6876 = vst.msk [vmem:[%s11708_s30 + $0x30] sm:$0xff] %vm6869_vm13, %v6842_v16 }
 0xd02   : > { %v6845_v18 = vpop.f32.mrf.mxu3 }
 0xd03   : > { %6877 = vst.msk [vmem:[%s11708_s30 + $0x38] sm:$0xff] %vm6869_vm13, %v6845_v18 }
 0xd0a   : > { %v6848_v20 = vpop.f32.mrf.mxu3 }
 0xd0b   : > { %6878 = vst.msk [vmem:[%s11708_s30 + $0x40] sm:$0xff] %vm6869_vm13, %v6848_v20 }
 0xd12   : > { %v6851_v48 = vpop.f32.mrf.mxu3 }
 0xd13   : > { %6879 = vst.msk [vmem:[%s11708_s30 + $0x48] sm:$0xff] %vm6869_vm13, %v6851_v48 }
 0xd1a   : > { %v6854_v61 = vpop.f32.mrf.mxu3 }
 0xd1b   : > { %6880 = vst.msk [vmem:[%s11708_s30 + $0x50] sm:$0xff] %vm6869_vm13, %v6854_v61 }
 0xd22   : > { %v6857_v60 = vpop.f32.mrf.mxu3 }
 0xd23   : > { %6881 = vst.msk [vmem:[%s11708_s30 + $0x58] sm:$0xff] %vm6869_vm13, %v6857_v60 }
 0xd2a   : > { %v6860_v41 = vpop.f32.mrf.mxu3 }
 0xd2b   : > { %6882 = vst.msk [vmem:[%s11708_s30 + $0x60] sm:$0xff] %vm6869_vm13, %v6860_v41 }
 0xd32   : > { %v6863_v8 = vpop.f32.mrf.mxu3 }
 0xd33   : > { %6883 = vst.msk [vmem:[%s11708_s30 + $0x68] sm:$0xff] %vm6869_vm13, %v6863_v8 }
 0xd3a   : > { %v6866_v17 = vpop.f32.mrf.mxu3 }
 0xd3b   : > { %6885 = vst.msk [vmem:[%s11708_s30 + $0x70] sm:$0xf] %vm6884_vm14, %v6866_v17 }
 0xd3c PF: > { %s21_s17 = sadd.s32 1, %s8136_s17  }
 0xd3d   : > { %p18_p4 = scmp.ge.s32.totalorder %s21_s17, 4  }
 0xd3f   :  { %20 = sbr.rel (!%p18_p4) target bundleno = 1 (0x1), region = 142 }

</bundles_post_ra>
